<compile_context>
chip_gen: v7x
topology: tpu7x:2x2x1
jax: 0.10.0
libtpu: 0.0.40
codegen_flags: <defaults>
</compile_context>

<pallas_src>
import jax
import jax.numpy as jnp
import numpy as np
from jax import lax
from jax.experimental import pallas as pl
from jax.experimental.pallas import tpu as pltpu

KSIZE = 7
PAD = 3  # padding for kernel_size=7


def _pick_tiles(n, c, hw, itemsize):
    """Pick (TB, SB): TB = batch rows per DMA block (multiple of 8 sublanes,
    ~2 MiB target, <=8 in-kernel sub-tiles, >=2 grid steps when N>=2);
    SB = in-kernel batch sub-tile that bounds vreg live ranges."""
    SB = 8
    per_batch = max(c * hw * itemsize, 1)
    tb = (2 * 1024 * 1024) // per_batch        # ~2 MiB input block target
    tb = min(tb, SB * 8)                       # cap unrolled sub-tile count at 8
    if n >= 2:
        tb = min(tb, pl.cdiv(n, 2))            # leave >=2 grid steps (v7x megacore)
    tb = max(SB, (tb // SB) * SB)              # sublane-aligned, >= 8
    return tb, SB


def _make_kernel(TB, SB, C, H, W, HW):
    n_sub = TB // SB
    inv_c = float(1.0 / C)
    L1 = HW + 2 * PAD          # flat map buffer (horizontal halo of 3 each side)
    L2 = HW + 6 * W            # row-partial buffer (vertical halo of 3 rows each side)
    OFF2 = 3 * W               # interior offset inside the row-partial buffer

    def kernel(x_ref, w_ref, cm_ref, o_ref, pbuf_ref, hbuf_ref):
        # x_ref   : (TB, C*HW)        VMEM  lane-dense input block
        # w_ref   : (2*7*7,)          SMEM  flattened conv weight
        # cm_ref  : (KSIZE, 1, HW)    VMEM  precomputed column-validity masks
        # o_ref   : (TB, HW)          VMEM  lane-dense output block
        # pbuf_ref: (2, SB, L1)       VMEM  zero-haloed flat avg/max maps
        # hbuf_ref: (KSIZE, SB, L2)   VMEM  zero-haloed horizontal row partials

        # Re-zero ONLY the halos, once per grid step (interiors are fully
        # overwritten every sub-tile).  Must stay per-step: with
        # dimension_semantics=("parallel",) each TensorCore has private,
        # uninitialized scratch, so a program_id==0-only init is unsafe.
        pbuf_ref[:, :, 0:PAD] = jnp.zeros((2, SB, PAD), jnp.float32)
        pbuf_ref[:, :, PAD + HW:] = jnp.zeros((2, SB, PAD), jnp.float32)
        hbuf_ref[:, :, 0:OFF2] = jnp.zeros((KSIZE, SB, OFF2), jnp.float32)
        hbuf_ref[:, :, OFF2 + HW:] = jnp.zeros((KSIZE, SB, OFF2), jnp.float32)

        # Hoist small constant reads out of the sub-tile loop.
        cmask = [cm_ref[kj] for kj in range(KSIZE)]                   # (1, HW) each
        wv = [[[w_ref[c * 49 + ki * KSIZE + kj] for kj in range(KSIZE)]
               for ki in range(KSIZE)] for c in range(2)]             # SMEM scalars

        def sub_body(si, carry):
            sub = pl.multiple_of(si * SB, SB)

            # ---- channel mean / max: running reductions over ref lane-slices
            x0 = x_ref[pl.ds(sub, SB), 0:HW].astype(jnp.float32)
            s = x0
            m = x0
            for c in range(1, C):
                xc = x_ref[pl.ds(sub, SB), c * HW:(c + 1) * HW].astype(jnp.float32)
                s = s + xc
                m = jnp.maximum(m, xc)
            pbuf_ref[0, :, PAD:PAD + HW] = s * inv_c      # mean map (conv in-ch 0)
            pbuf_ref[1, :, PAD:PAD + HW] = m              # max map  (conv in-ch 1)

            # ---- 7x7 conv (2 in -> 1 out), factored shifts on flat layout ----
            acc = jnp.zeros((SB, HW), jnp.float32)
            for c in range(2):
                # Horizontal taps: 7 halo-window reads, masked to valid columns,
                # shared across all 7 kernel rows.
                h = [pbuf_ref[c, :, kj:kj + HW] * cmask[kj] for kj in range(KSIZE)]
                # Row partials on the VPU, written into the zero-haloed buffer.
                for ki in range(KSIZE):
                    rp = h[0] * wv[c][ki][0]
                    for kj in range(1, KSIZE):
                        rp = rp + h[kj] * wv[c][ki][kj]
                    hbuf_ref[ki, :, OFF2:OFF2 + HW] = rp
                # Vertical taps: whole-row shifts via halo windows (no row mask).
                for ki in range(KSIZE):
                    acc = acc + hbuf_ref[ki, :, ki * W:ki * W + HW]

            o_ref[pl.ds(sub, SB), :] = jax.nn.sigmoid(acc).astype(o_ref.dtype)
            return carry

        lax.fori_loop(0, n_sub, sub_body, 0, unroll=True)

    return kernel


def spatial_attention(x, weight):
    """x: (N, C, H, W); weight: (1, 2, 7, 7). Returns (N, 1, H, W)."""
    N, C, H, W = x.shape
    HW = H * W
    TB, SB = _pick_tiles(N, C, HW, x.dtype.itemsize)

    n_blocks = pl.cdiv(N, TB)
    if N >= 2 and n_blocks < 2:
        n_blocks = 2                      # both v7x TensorCores get a block
    Np = n_blocks * TB

    x_flat = x.reshape(N, C * HW)         # free contiguous reshape
    if Np != N:
        # Pad ONLY the batch axis (never C: channel mean/max must see real data).
        x_flat = jnp.pad(x_flat, ((0, Np - N), (0, 0)))

    w_flat = weight.reshape(-1).astype(jnp.float32)   # (2*7*7,) -> SMEM

    # Column-validity masks for the 7 horizontal taps on the flattened H*W axis.
    col = np.arange(HW) % W
    cm = np.zeros((KSIZE, 1, HW), np.float32)
    for kj in range(KSIZE):
        d = kj - PAD
        cm[kj, 0] = ((col + d >= 0) & (col + d < W)).astype(np.float32)
    colmask = jnp.asarray(cm)

    kernel = _make_kernel(TB, SB, C, H, W, HW)
    L1 = HW + 2 * PAD
    L2 = HW + 6 * W

    out_flat = pl.pallas_call(
        kernel,
        out_shape=jax.ShapeDtypeStruct((Np, HW), x.dtype),
        grid_spec=pltpu.PrefetchScalarGridSpec(
            num_scalar_prefetch=0,
            grid=(Np // TB,),
            in_specs=[
                pl.BlockSpec((TB, C * HW), lambda b: (b, 0)),
                pl.BlockSpec(memory_space=pltpu.MemorySpace.SMEM),
                pl.BlockSpec((KSIZE, 1, HW), lambda b: (0, 0, 0)),
            ],
            out_specs=pl.BlockSpec((TB, HW), lambda b: (b, 0)),
            scratch_shapes=[
                pltpu.VMEM((2, SB, L1), jnp.float32),        # avg/max halo buffer
                pltpu.VMEM((KSIZE, SB, L2), jnp.float32),    # row-partial halo buffer
            ],
        ),
        compiler_params=pltpu.CompilerParams(
            dimension_semantics=("parallel",),               # batch blocks independent
            vmem_limit_bytes=32 * 1024 * 1024,               # safe on v5e/v6e/v7x
        ),
    )(x_flat, w_flat, colmask)

    return out_flat[:N].reshape(N, 1, H, W)


def spatial_attention_ref(x, weight):
    """Pure-JAX reference (mirrors the PyTorch forward)."""
    avg_out = jnp.mean(x, axis=1, keepdims=True)
    max_out = jnp.max(x, axis=1, keepdims=True)
    cat = jnp.concatenate([avg_out, max_out], axis=1)        # (N, 2, H, W)
    y = lax.conv_general_dilated(
        cat, weight,
        window_strides=(1, 1),
        padding=((PAD, PAD), (PAD, PAD)),
        dimension_numbers=("NCHW", "OIHW", "NCHW"),
    )
    return jax.nn.sigmoid(y)


if __name__ == "__main__":
    key = jax.random.PRNGKey(0)
    kx, kw = jax.random.split(key)

    N, C, H, W = 2, 4, 16, 16
    x = jax.random.normal(kx, (N, C, H, W), dtype=jnp.float32)

    # Conv2d(2, 1, 7, bias=False) weight, roughly PyTorch's default init bound.
    fan_in = 2 * KSIZE * KSIZE
    bound = 1.0 / float(np.sqrt(fan_in))
    weight = jax.random.uniform(
        kw, (1, 2, KSIZE, KSIZE), dtype=jnp.float32, minval=-bound, maxval=bound
    )

    out = spatial_attention(x, weight)
    out = jax.block_until_ready(out)

    ref = spatial_attention_ref(x, weight)
    assert out.shape == (N, 1, H, W)
    err = float(jnp.max(jnp.abs(out - ref)))
    assert err < 1e-5, f"max abs err = {err}"

    print("KERNEL_OK")
</pallas_src>

<mosaic_0001>
module attributes {stable_mosaic.version = 11 : i64} {
  func.func @kernel(%arg0: i32, %arg1: memref<8x1024xf32, #tpu.memory_space<vmem>>, %arg2: memref<98xf32, #tpu.memory_space<smem>>, %arg3: memref<7x1x256xf32, #tpu.memory_space<vmem>>, %arg4: memref<8x256xf32, #tpu.memory_space<vmem>>, %arg5: memref<2x8x262xf32, #tpu.memory_space<vmem>>, %arg6: memref<7x8x352xf32, #tpu.memory_space<vmem>>) attributes {dimension_semantics = [#tpu.dimension_semantics<parallel>], iteration_bounds = array<i64: 2>, scalar_prefetch = 0 : i64, scratch_operands = 2 : i64, tpu.core_type = #tpu.core_type<tc>, window_params = [{transform_indices = @transform_0, window_bounds = array<i64: 8, 1024>}, {transform_indices = @transform_1, window_bounds = array<i64: 98>}, {pipeline_mode = #tpu.pipeline_mode<synchronous>, transform_indices = @transform_2, window_bounds = array<i64: 7, 1, 256>}, {transform_indices = @transform_3, window_bounds = array<i64: 8, 256>}]} {
    %cst = arith.constant 0.000000e+00 : f32
    %0 = vector.broadcast %cst : f32 to vector<2x8x3xf32>
    %c0 = arith.constant 0 : index
    %c0_0 = arith.constant 0 : index
    %c0_1 = arith.constant 0 : index
    %1 = vector.load %arg5[%c0, %c0_0, %c0_1] : memref<2x8x262xf32, #tpu.memory_space<vmem>>, vector<2x8x3xf32>
    tpu.vector_store %arg5[%c0, %c0_0, %c0_1], %0 {strides = array<i32>} : memref<2x8x262xf32, #tpu.memory_space<vmem>>, vector<2x8x3xf32>,
    %cst_2 = arith.constant 0.000000e+00 : f32
    %2 = vector.broadcast %cst_2 : f32 to vector<2x8x3xf32>
    %c0_3 = arith.constant 0 : index
    %c0_4 = arith.constant 0 : index
    %c259 = arith.constant 259 : index
    %3 = vector.load %arg5[%c0_3, %c0_4, %c259] : memref<2x8x262xf32, #tpu.memory_space<vmem>>, vector<2x8x3xf32>
    tpu.vector_store %arg5[%c0_3, %c0_4, %c259], %2 {strides = array<i32>} : memref<2x8x262xf32, #tpu.memory_space<vmem>>, vector<2x8x3xf32>,
    %cst_5 = arith.constant 0.000000e+00 : f32
    %4 = vector.broadcast %cst_5 : f32 to vector<7x8x48xf32>
    %c0_6 = arith.constant 0 : index
    %c0_7 = arith.constant 0 : index
    %c0_8 = arith.constant 0 : index
    %5 = vector.load %arg6[%c0_6, %c0_7, %c0_8] : memref<7x8x352xf32, #tpu.memory_space<vmem>>, vector<7x8x48xf32>
    tpu.vector_store %arg6[%c0_6, %c0_7, %c0_8], %4 {strides = array<i32>} : memref<7x8x352xf32, #tpu.memory_space<vmem>>, vector<7x8x48xf32>,
    %cst_9 = arith.constant 0.000000e+00 : f32
    %6 = vector.broadcast %cst_9 : f32 to vector<7x8x48xf32>
    %c0_10 = arith.constant 0 : index
    %c0_11 = arith.constant 0 : index
    %c304 = arith.constant 304 : index
    %7 = vector.load %arg6[%c0_10, %c0_11, %c304] : memref<7x8x352xf32, #tpu.memory_space<vmem>>, vector<7x8x48xf32>
    tpu.vector_store %arg6[%c0_10, %c0_11, %c304], %6 {strides = array<i32>} : memref<7x8x352xf32, #tpu.memory_space<vmem>>, vector<7x8x48xf32>,
    %c0_12 = arith.constant 0 : index
    %c0_13 = arith.constant 0 : index
    %c0_14 = arith.constant 0 : index
    %8 = vector.load %arg3[%c0_12, %c0_13, %c0_14] : memref<7x1x256xf32, #tpu.memory_space<vmem>>, vector<1x1x256xf32>
    %9 = vector.shape_cast %8 : vector<1x1x256xf32> to vector<1x256xf32>
    %c1 = arith.constant 1 : index
    %c0_15 = arith.constant 0 : index
    %c0_16 = arith.constant 0 : index
    %10 = vector.load %arg3[%c1, %c0_15, %c0_16] : memref<7x1x256xf32, #tpu.memory_space<vmem>>, vector<1x1x256xf32>
    %11 = vector.shape_cast %10 : vector<1x1x256xf32> to vector<1x256xf32>
    %c2 = arith.constant 2 : index
    %c0_17 = arith.constant 0 : index
    %c0_18 = arith.constant 0 : index
    %12 = vector.load %arg3[%c2, %c0_17, %c0_18] : memref<7x1x256xf32, #tpu.memory_space<vmem>>, vector<1x1x256xf32>
    %13 = vector.shape_cast %12 : vector<1x1x256xf32> to vector<1x256xf32>
    %c3 = arith.constant 3 : index
    %c0_19 = arith.constant 0 : index
    %c0_20 = arith.constant 0 : index
    %14 = vector.load %arg3[%c3, %c0_19, %c0_20] : memref<7x1x256xf32, #tpu.memory_space<vmem>>, vector<1x1x256xf32>
    %15 = vector.shape_cast %14 : vector<1x1x256xf32> to vector<1x256xf32>
    %c4 = arith.constant 4 : index
    %c0_21 = arith.constant 0 : index
    %c0_22 = arith.constant 0 : index
    %16 = vector.load %arg3[%c4, %c0_21, %c0_22] : memref<7x1x256xf32, #tpu.memory_space<vmem>>, vector<1x1x256xf32>
    %17 = vector.shape_cast %16 : vector<1x1x256xf32> to vector<1x256xf32>
    %c5 = arith.constant 5 : index
    %c0_23 = arith.constant 0 : index
    %c0_24 = arith.constant 0 : index
    %18 = vector.load %arg3[%c5, %c0_23, %c0_24] : memref<7x1x256xf32, #tpu.memory_space<vmem>>, vector<1x1x256xf32>
    %19 = vector.shape_cast %18 : vector<1x1x256xf32> to vector<1x256xf32>
    %c6 = arith.constant 6 : index
    %c0_25 = arith.constant 0 : index
    %c0_26 = arith.constant 0 : index
    %20 = vector.load %arg3[%c6, %c0_25, %c0_26] : memref<7x1x256xf32, #tpu.memory_space<vmem>>, vector<1x1x256xf32>
    %21 = vector.shape_cast %20 : vector<1x1x256xf32> to vector<1x256xf32>
    %c0_27 = arith.constant 0 : index
    %22 = memref.load %arg2[%c0_27] : memref<98xf32, #tpu.memory_space<smem>>
    %c1_28 = arith.constant 1 : index
    %23 = memref.load %arg2[%c1_28] : memref<98xf32, #tpu.memory_space<smem>>
    %c2_29 = arith.constant 2 : index
    %24 = memref.load %arg2[%c2_29] : memref<98xf32, #tpu.memory_space<smem>>
    %c3_30 = arith.constant 3 : index
    %25 = memref.load %arg2[%c3_30] : memref<98xf32, #tpu.memory_space<smem>>
    %c4_31 = arith.constant 4 : index
    %26 = memref.load %arg2[%c4_31] : memref<98xf32, #tpu.memory_space<smem>>
    %c5_32 = arith.constant 5 : index
    %27 = memref.load %arg2[%c5_32] : memref<98xf32, #tpu.memory_space<smem>>
    %c6_33 = arith.constant 6 : index
    %28 = memref.load %arg2[%c6_33] : memref<98xf32, #tpu.memory_space<smem>>
    %c7 = arith.constant 7 : index
    %29 = memref.load %arg2[%c7] : memref<98xf32, #tpu.memory_space<smem>>
    %c8 = arith.constant 8 : index
    %30 = memref.load %arg2[%c8] : memref<98xf32, #tpu.memory_space<smem>>
    %c9 = arith.constant 9 : index
    %31 = memref.load %arg2[%c9] : memref<98xf32, #tpu.memory_space<smem>>
    %c10 = arith.constant 10 : index
    %32 = memref.load %arg2[%c10] : memref<98xf32, #tpu.memory_space<smem>>
    %c11 = arith.constant 11 : index
    %33 = memref.load %arg2[%c11] : memref<98xf32, #tpu.memory_space<smem>>
    %c12 = arith.constant 12 : index
    %34 = memref.load %arg2[%c12] : memref<98xf32, #tpu.memory_space<smem>>
    %c13 = arith.constant 13 : index
    %35 = memref.load %arg2[%c13] : memref<98xf32, #tpu.memory_space<smem>>
    %c14 = arith.constant 14 : index
    %36 = memref.load %arg2[%c14] : memref<98xf32, #tpu.memory_space<smem>>
    %c15 = arith.constant 15 : index
    %37 = memref.load %arg2[%c15] : memref<98xf32, #tpu.memory_space<smem>>
    %c16 = arith.constant 16 : index
    %38 = memref.load %arg2[%c16] : memref<98xf32, #tpu.memory_space<smem>>
    %c17 = arith.constant 17 : index
    %39 = memref.load %arg2[%c17] : memref<98xf32, #tpu.memory_space<smem>>
    %c18 = arith.constant 18 : index
    %40 = memref.load %arg2[%c18] : memref<98xf32, #tpu.memory_space<smem>>
    %c19 = arith.constant 19 : index
    %41 = memref.load %arg2[%c19] : memref<98xf32, #tpu.memory_space<smem>>
    %c20 = arith.constant 20 : index
    %42 = memref.load %arg2[%c20] : memref<98xf32, #tpu.memory_space<smem>>
    %c21 = arith.constant 21 : index
    %43 = memref.load %arg2[%c21] : memref<98xf32, #tpu.memory_space<smem>>
    %c22 = arith.constant 22 : index
    %44 = memref.load %arg2[%c22] : memref<98xf32, #tpu.memory_space<smem>>
    %c23 = arith.constant 23 : index
    %45 = memref.load %arg2[%c23] : memref<98xf32, #tpu.memory_space<smem>>
    %c24 = arith.constant 24 : index
    %46 = memref.load %arg2[%c24] : memref<98xf32, #tpu.memory_space<smem>>
    %c25 = arith.constant 25 : index
    %47 = memref.load %arg2[%c25] : memref<98xf32, #tpu.memory_space<smem>>
    %c26 = arith.constant 26 : index
    %48 = memref.load %arg2[%c26] : memref<98xf32, #tpu.memory_space<smem>>
    %c27 = arith.constant 27 : index
    %49 = memref.load %arg2[%c27] : memref<98xf32, #tpu.memory_space<smem>>
    %c28 = arith.constant 28 : index
    %50 = memref.load %arg2[%c28] : memref<98xf32, #tpu.memory_space<smem>>
    %c29 = arith.constant 29 : index
    %51 = memref.load %arg2[%c29] : memref<98xf32, #tpu.memory_space<smem>>
    %c30 = arith.constant 30 : index
    %52 = memref.load %arg2[%c30] : memref<98xf32, #tpu.memory_space<smem>>
    %c31 = arith.constant 31 : index
    %53 = memref.load %arg2[%c31] : memref<98xf32, #tpu.memory_space<smem>>
    %c32 = arith.constant 32 : index
    %54 = memref.load %arg2[%c32] : memref<98xf32, #tpu.memory_space<smem>>
    %c33 = arith.constant 33 : index
    %55 = memref.load %arg2[%c33] : memref<98xf32, #tpu.memory_space<smem>>
    %c34 = arith.constant 34 : index
    %56 = memref.load %arg2[%c34] : memref<98xf32, #tpu.memory_space<smem>>
    %c35 = arith.constant 35 : index
    %57 = memref.load %arg2[%c35] : memref<98xf32, #tpu.memory_space<smem>>
    %c36 = arith.constant 36 : index
    %58 = memref.load %arg2[%c36] : memref<98xf32, #tpu.memory_space<smem>>
    %c37 = arith.constant 37 : index
    %59 = memref.load %arg2[%c37] : memref<98xf32, #tpu.memory_space<smem>>
    %c38 = arith.constant 38 : index
    %60 = memref.load %arg2[%c38] : memref<98xf32, #tpu.memory_space<smem>>
    %c39 = arith.constant 39 : index
    %61 = memref.load %arg2[%c39] : memref<98xf32, #tpu.memory_space<smem>>
    %c40 = arith.constant 40 : index
    %62 = memref.load %arg2[%c40] : memref<98xf32, #tpu.memory_space<smem>>
    %c41 = arith.constant 41 : index
    %63 = memref.load %arg2[%c41] : memref<98xf32, #tpu.memory_space<smem>>
    %c42 = arith.constant 42 : index
    %64 = memref.load %arg2[%c42] : memref<98xf32, #tpu.memory_space<smem>>
    %c43 = arith.constant 43 : index
    %65 = memref.load %arg2[%c43] : memref<98xf32, #tpu.memory_space<smem>>
    %c44 = arith.constant 44 : index
    %66 = memref.load %arg2[%c44] : memref<98xf32, #tpu.memory_space<smem>>
    %c45 = arith.constant 45 : index
    %67 = memref.load %arg2[%c45] : memref<98xf32, #tpu.memory_space<smem>>
    %c46 = arith.constant 46 : index
    %68 = memref.load %arg2[%c46] : memref<98xf32, #tpu.memory_space<smem>>
    %c47 = arith.constant 47 : index
    %69 = memref.load %arg2[%c47] : memref<98xf32, #tpu.memory_space<smem>>
    %c48 = arith.constant 48 : index
    %70 = memref.load %arg2[%c48] : memref<98xf32, #tpu.memory_space<smem>>
    %c49 = arith.constant 49 : index
    %71 = memref.load %arg2[%c49] : memref<98xf32, #tpu.memory_space<smem>>
    %c50 = arith.constant 50 : index
    %72 = memref.load %arg2[%c50] : memref<98xf32, #tpu.memory_space<smem>>
    %c51 = arith.constant 51 : index
    %73 = memref.load %arg2[%c51] : memref<98xf32, #tpu.memory_space<smem>>
    %c52 = arith.constant 52 : index
    %74 = memref.load %arg2[%c52] : memref<98xf32, #tpu.memory_space<smem>>
    %c53 = arith.constant 53 : index
    %75 = memref.load %arg2[%c53] : memref<98xf32, #tpu.memory_space<smem>>
    %c54 = arith.constant 54 : index
    %76 = memref.load %arg2[%c54] : memref<98xf32, #tpu.memory_space<smem>>
    %c55 = arith.constant 55 : index
    %77 = memref.load %arg2[%c55] : memref<98xf32, #tpu.memory_space<smem>>
    %c56 = arith.constant 56 : index
    %78 = memref.load %arg2[%c56] : memref<98xf32, #tpu.memory_space<smem>>
    %c57 = arith.constant 57 : index
    %79 = memref.load %arg2[%c57] : memref<98xf32, #tpu.memory_space<smem>>
    %c58 = arith.constant 58 : index
    %80 = memref.load %arg2[%c58] : memref<98xf32, #tpu.memory_space<smem>>
    %c59 = arith.constant 59 : index
    %81 = memref.load %arg2[%c59] : memref<98xf32, #tpu.memory_space<smem>>
    %c60 = arith.constant 60 : index
    %82 = memref.load %arg2[%c60] : memref<98xf32, #tpu.memory_space<smem>>
    %c61 = arith.constant 61 : index
    %83 = memref.load %arg2[%c61] : memref<98xf32, #tpu.memory_space<smem>>
    %c62 = arith.constant 62 : index
    %84 = memref.load %arg2[%c62] : memref<98xf32, #tpu.memory_space<smem>>
    %c63 = arith.constant 63 : index
    %85 = memref.load %arg2[%c63] : memref<98xf32, #tpu.memory_space<smem>>
    %c64 = arith.constant 64 : index
    %86 = memref.load %arg2[%c64] : memref<98xf32, #tpu.memory_space<smem>>
    %c65 = arith.constant 65 : index
    %87 = memref.load %arg2[%c65] : memref<98xf32, #tpu.memory_space<smem>>
    %c66 = arith.constant 66 : index
    %88 = memref.load %arg2[%c66] : memref<98xf32, #tpu.memory_space<smem>>
    %c67 = arith.constant 67 : index
    %89 = memref.load %arg2[%c67] : memref<98xf32, #tpu.memory_space<smem>>
    %c68 = arith.constant 68 : index
    %90 = memref.load %arg2[%c68] : memref<98xf32, #tpu.memory_space<smem>>
    %c69 = arith.constant 69 : index
    %91 = memref.load %arg2[%c69] : memref<98xf32, #tpu.memory_space<smem>>
    %c70 = arith.constant 70 : index
    %92 = memref.load %arg2[%c70] : memref<98xf32, #tpu.memory_space<smem>>
    %c71 = arith.constant 71 : index
    %93 = memref.load %arg2[%c71] : memref<98xf32, #tpu.memory_space<smem>>
    %c72 = arith.constant 72 : index
    %94 = memref.load %arg2[%c72] : memref<98xf32, #tpu.memory_space<smem>>
    %c73 = arith.constant 73 : index
    %95 = memref.load %arg2[%c73] : memref<98xf32, #tpu.memory_space<smem>>
    %c74 = arith.constant 74 : index
    %96 = memref.load %arg2[%c74] : memref<98xf32, #tpu.memory_space<smem>>
    %c75 = arith.constant 75 : index
    %97 = memref.load %arg2[%c75] : memref<98xf32, #tpu.memory_space<smem>>
    %c76 = arith.constant 76 : index
    %98 = memref.load %arg2[%c76] : memref<98xf32, #tpu.memory_space<smem>>
    %c77 = arith.constant 77 : index
    %99 = memref.load %arg2[%c77] : memref<98xf32, #tpu.memory_space<smem>>
    %c78 = arith.constant 78 : index
    %100 = memref.load %arg2[%c78] : memref<98xf32, #tpu.memory_space<smem>>
    %c79 = arith.constant 79 : index
    %101 = memref.load %arg2[%c79] : memref<98xf32, #tpu.memory_space<smem>>
    %c80 = arith.constant 80 : index
    %102 = memref.load %arg2[%c80] : memref<98xf32, #tpu.memory_space<smem>>
    %c81 = arith.constant 81 : index
    %103 = memref.load %arg2[%c81] : memref<98xf32, #tpu.memory_space<smem>>
    %c82 = arith.constant 82 : index
    %104 = memref.load %arg2[%c82] : memref<98xf32, #tpu.memory_space<smem>>
    %c83 = arith.constant 83 : index
    %105 = memref.load %arg2[%c83] : memref<98xf32, #tpu.memory_space<smem>>
    %c84 = arith.constant 84 : index
    %106 = memref.load %arg2[%c84] : memref<98xf32, #tpu.memory_space<smem>>
    %c85 = arith.constant 85 : index
    %107 = memref.load %arg2[%c85] : memref<98xf32, #tpu.memory_space<smem>>
    %c86 = arith.constant 86 : index
    %108 = memref.load %arg2[%c86] : memref<98xf32, #tpu.memory_space<smem>>
    %c87 = arith.constant 87 : index
    %109 = memref.load %arg2[%c87] : memref<98xf32, #tpu.memory_space<smem>>
    %c88 = arith.constant 88 : index
    %110 = memref.load %arg2[%c88] : memref<98xf32, #tpu.memory_space<smem>>
    %c89 = arith.constant 89 : index
    %111 = memref.load %arg2[%c89] : memref<98xf32, #tpu.memory_space<smem>>
    %c90 = arith.constant 90 : index
    %112 = memref.load %arg2[%c90] : memref<98xf32, #tpu.memory_space<smem>>
    %c91 = arith.constant 91 : index
    %113 = memref.load %arg2[%c91] : memref<98xf32, #tpu.memory_space<smem>>
    %c92 = arith.constant 92 : index
    %114 = memref.load %arg2[%c92] : memref<98xf32, #tpu.memory_space<smem>>
    %c93 = arith.constant 93 : index
    %115 = memref.load %arg2[%c93] : memref<98xf32, #tpu.memory_space<smem>>
    %c94 = arith.constant 94 : index
    %116 = memref.load %arg2[%c94] : memref<98xf32, #tpu.memory_space<smem>>
    %c95 = arith.constant 95 : index
    %117 = memref.load %arg2[%c95] : memref<98xf32, #tpu.memory_space<smem>>
    %c96 = arith.constant 96 : index
    %118 = memref.load %arg2[%c96] : memref<98xf32, #tpu.memory_space<smem>>
    %c97 = arith.constant 97 : index
    %119 = memref.load %arg2[%c97] : memref<98xf32, #tpu.memory_space<smem>>
    %c0_i32 = arith.constant 0 : i32
    %c8_i32 = arith.constant 8 : i32
    %120 = arith.muli %c0_i32, %c8_i32 : i32
    %121 = tpu.assume_multiple %120, 8 : i32
    %122 = arith.index_cast %121 : i32 to index
    %c0_34 = arith.constant 0 : index
    %123 = vector.load %arg1[%122, %c0_34] : memref<8x1024xf32, #tpu.memory_space<vmem>>, vector<8x256xf32>
    %124 = arith.index_cast %121 : i32 to index
    %c256 = arith.constant 256 : index
    %125 = vector.load %arg1[%124, %c256] : memref<8x1024xf32, #tpu.memory_space<vmem>>, vector<8x256xf32>
    %126 = arith.addf %123, %125 : vector<8x256xf32>
    %127 = arith.maximumf %123, %125 : vector<8x256xf32>
    %128 = arith.index_cast %121 : i32 to index
    %c512 = arith.constant 512 : index
    %129 = vector.load %arg1[%128, %c512] : memref<8x1024xf32, #tpu.memory_space<vmem>>, vector<8x256xf32>
    %130 = arith.addf %126, %129 : vector<8x256xf32>
    %131 = arith.maximumf %127, %129 : vector<8x256xf32>
    %132 = arith.index_cast %121 : i32 to index
    %c768 = arith.constant 768 : index
    %133 = vector.load %arg1[%132, %c768] : memref<8x1024xf32, #tpu.memory_space<vmem>>, vector<8x256xf32>
    %134 = arith.addf %130, %133 : vector<8x256xf32>
    %135 = arith.maximumf %131, %133 : vector<8x256xf32>
    %cst_35 = arith.constant 2.500000e-01 : f32
    %136 = vector.broadcast %cst_35 : f32 to vector<8x256xf32>
    %137 = arith.mulf %134, %136 : vector<8x256xf32>
    %c0_36 = arith.constant 0 : index
    %c0_37 = arith.constant 0 : index
    %c3_38 = arith.constant 3 : index
    %138 = vector.load %arg5[%c0_36, %c0_37, %c3_38] : memref<2x8x262xf32, #tpu.memory_space<vmem>>, vector<1x8x256xf32>
    %139 = vector.shape_cast %138 : vector<1x8x256xf32> to vector<8x256xf32>
    %140 = vector.shape_cast %137 : vector<8x256xf32> to vector<1x8x256xf32>
    tpu.vector_store %arg5[%c0_36, %c0_37, %c3_38], %140 {strides = array<i32>} : memref<2x8x262xf32, #tpu.memory_space<vmem>>, vector<1x8x256xf32>,
    %c1_39 = arith.constant 1 : index
    %c0_40 = arith.constant 0 : index
    %c3_41 = arith.constant 3 : index
    %141 = vector.load %arg5[%c1_39, %c0_40, %c3_41] : memref<2x8x262xf32, #tpu.memory_space<vmem>>, vector<1x8x256xf32>
    %142 = vector.shape_cast %141 : vector<1x8x256xf32> to vector<8x256xf32>
    %143 = vector.shape_cast %135 : vector<8x256xf32> to vector<1x8x256xf32>
    tpu.vector_store %arg5[%c1_39, %c0_40, %c3_41], %143 {strides = array<i32>} : memref<2x8x262xf32, #tpu.memory_space<vmem>>, vector<1x8x256xf32>,
    %cst_42 = arith.constant 0.000000e+00 : f32
    %144 = vector.broadcast %cst_42 : f32 to vector<8x256xf32>
    %c0_43 = arith.constant 0 : index
    %c0_44 = arith.constant 0 : index
    %c0_45 = arith.constant 0 : index
    %145 = vector.load %arg5[%c0_43, %c0_44, %c0_45] : memref<2x8x262xf32, #tpu.memory_space<vmem>>, vector<1x8x256xf32>
    %146 = vector.shape_cast %145 : vector<1x8x256xf32> to vector<8x256xf32>
    %147 = vector.broadcast %9 : vector<1x256xf32> to vector<8x256xf32>
    %148 = arith.mulf %146, %147 : vector<8x256xf32>
    %c0_46 = arith.constant 0 : index
    %c0_47 = arith.constant 0 : index
    %c1_48 = arith.constant 1 : index
    %149 = vector.load %arg5[%c0_46, %c0_47, %c1_48] : memref<2x8x262xf32, #tpu.memory_space<vmem>>, vector<1x8x256xf32>
    %150 = vector.shape_cast %149 : vector<1x8x256xf32> to vector<8x256xf32>
    %151 = vector.broadcast %11 : vector<1x256xf32> to vector<8x256xf32>
    %152 = arith.mulf %150, %151 : vector<8x256xf32>
    %c0_49 = arith.constant 0 : index
    %c0_50 = arith.constant 0 : index
    %c2_51 = arith.constant 2 : index
    %153 = vector.load %arg5[%c0_49, %c0_50, %c2_51] : memref<2x8x262xf32, #tpu.memory_space<vmem>>, vector<1x8x256xf32>
    %154 = vector.shape_cast %153 : vector<1x8x256xf32> to vector<8x256xf32>
    %155 = vector.broadcast %13 : vector<1x256xf32> to vector<8x256xf32>
    %156 = arith.mulf %154, %155 : vector<8x256xf32>
    %c0_52 = arith.constant 0 : index
    %c0_53 = arith.constant 0 : index
    %c3_54 = arith.constant 3 : index
    %157 = vector.load %arg5[%c0_52, %c0_53, %c3_54] : memref<2x8x262xf32, #tpu.memory_space<vmem>>, vector<1x8x256xf32>
    %158 = vector.shape_cast %157 : vector<1x8x256xf32> to vector<8x256xf32>
    %159 = vector.broadcast %15 : vector<1x256xf32> to vector<8x256xf32>
    %160 = arith.mulf %158, %159 : vector<8x256xf32>
    %c0_55 = arith.constant 0 : index
    %c0_56 = arith.constant 0 : index
    %c4_57 = arith.constant 4 : index
    %161 = vector.load %arg5[%c0_55, %c0_56, %c4_57] : memref<2x8x262xf32, #tpu.memory_space<vmem>>, vector<1x8x256xf32>
    %162 = vector.shape_cast %161 : vector<1x8x256xf32> to vector<8x256xf32>
    %163 = vector.broadcast %17 : vector<1x256xf32> to vector<8x256xf32>
    %164 = arith.mulf %162, %163 : vector<8x256xf32>
    %c0_58 = arith.constant 0 : index
    %c0_59 = arith.constant 0 : index
    %c5_60 = arith.constant 5 : index
    %165 = vector.load %arg5[%c0_58, %c0_59, %c5_60] : memref<2x8x262xf32, #tpu.memory_space<vmem>>, vector<1x8x256xf32>
    %166 = vector.shape_cast %165 : vector<1x8x256xf32> to vector<8x256xf32>
    %167 = vector.broadcast %19 : vector<1x256xf32> to vector<8x256xf32>
    %168 = arith.mulf %166, %167 : vector<8x256xf32>
    %c0_61 = arith.constant 0 : index
    %c0_62 = arith.constant 0 : index
    %c6_63 = arith.constant 6 : index
    %169 = vector.load %arg5[%c0_61, %c0_62, %c6_63] : memref<2x8x262xf32, #tpu.memory_space<vmem>>, vector<1x8x256xf32>
    %170 = vector.shape_cast %169 : vector<1x8x256xf32> to vector<8x256xf32>
    %171 = vector.broadcast %21 : vector<1x256xf32> to vector<8x256xf32>
    %172 = arith.mulf %170, %171 : vector<8x256xf32>
    %173 = vector.broadcast %22 : f32 to vector<8x256xf32>
    %174 = arith.mulf %148, %173 : vector<8x256xf32>
    %175 = vector.broadcast %23 : f32 to vector<8x256xf32>
    %176 = arith.mulf %152, %175 : vector<8x256xf32>
    %177 = arith.addf %174, %176 : vector<8x256xf32>
    %178 = vector.broadcast %24 : f32 to vector<8x256xf32>
    %179 = arith.mulf %156, %178 : vector<8x256xf32>
    %180 = arith.addf %177, %179 : vector<8x256xf32>
    %181 = vector.broadcast %25 : f32 to vector<8x256xf32>
    %182 = arith.mulf %160, %181 : vector<8x256xf32>
    %183 = arith.addf %180, %182 : vector<8x256xf32>
    %184 = vector.broadcast %26 : f32 to vector<8x256xf32>
    %185 = arith.mulf %164, %184 : vector<8x256xf32>
    %186 = arith.addf %183, %185 : vector<8x256xf32>
    %187 = vector.broadcast %27 : f32 to vector<8x256xf32>
    %188 = arith.mulf %168, %187 : vector<8x256xf32>
    %189 = arith.addf %186, %188 : vector<8x256xf32>
    %190 = vector.broadcast %28 : f32 to vector<8x256xf32>
    %191 = arith.mulf %172, %190 : vector<8x256xf32>
    %192 = arith.addf %189, %191 : vector<8x256xf32>
    %c0_64 = arith.constant 0 : index
    %c0_65 = arith.constant 0 : index
    %c48_66 = arith.constant 48 : index
    %193 = vector.load %arg6[%c0_64, %c0_65, %c48_66] : memref<7x8x352xf32, #tpu.memory_space<vmem>>, vector<1x8x256xf32>
    %194 = vector.shape_cast %193 : vector<1x8x256xf32> to vector<8x256xf32>
    %195 = vector.shape_cast %192 : vector<8x256xf32> to vector<1x8x256xf32>
    tpu.vector_store %arg6[%c0_64, %c0_65, %c48_66], %195 {strides = array<i32>} : memref<7x8x352xf32, #tpu.memory_space<vmem>>, vector<1x8x256xf32>,
    %196 = vector.broadcast %29 : f32 to vector<8x256xf32>
    %197 = arith.mulf %148, %196 : vector<8x256xf32>
    %198 = vector.broadcast %30 : f32 to vector<8x256xf32>
    %199 = arith.mulf %152, %198 : vector<8x256xf32>
    %200 = arith.addf %197, %199 : vector<8x256xf32>
    %201 = vector.broadcast %31 : f32 to vector<8x256xf32>
    %202 = arith.mulf %156, %201 : vector<8x256xf32>
    %203 = arith.addf %200, %202 : vector<8x256xf32>
    %204 = vector.broadcast %32 : f32 to vector<8x256xf32>
    %205 = arith.mulf %160, %204 : vector<8x256xf32>
    %206 = arith.addf %203, %205 : vector<8x256xf32>
    %207 = vector.broadcast %33 : f32 to vector<8x256xf32>
    %208 = arith.mulf %164, %207 : vector<8x256xf32>
    %209 = arith.addf %206, %208 : vector<8x256xf32>
    %210 = vector.broadcast %34 : f32 to vector<8x256xf32>
    %211 = arith.mulf %168, %210 : vector<8x256xf32>
    %212 = arith.addf %209, %211 : vector<8x256xf32>
    %213 = vector.broadcast %35 : f32 to vector<8x256xf32>
    %214 = arith.mulf %172, %213 : vector<8x256xf32>
    %215 = arith.addf %212, %214 : vector<8x256xf32>
    %c1_67 = arith.constant 1 : index
    %c0_68 = arith.constant 0 : index
    %c48_69 = arith.constant 48 : index
    %216 = vector.load %arg6[%c1_67, %c0_68, %c48_69] : memref<7x8x352xf32, #tpu.memory_space<vmem>>, vector<1x8x256xf32>
    %217 = vector.shape_cast %216 : vector<1x8x256xf32> to vector<8x256xf32>
    %218 = vector.shape_cast %215 : vector<8x256xf32> to vector<1x8x256xf32>
    tpu.vector_store %arg6[%c1_67, %c0_68, %c48_69], %218 {strides = array<i32>} : memref<7x8x352xf32, #tpu.memory_space<vmem>>, vector<1x8x256xf32>,
    %219 = vector.broadcast %36 : f32 to vector<8x256xf32>
    %220 = arith.mulf %148, %219 : vector<8x256xf32>
    %221 = vector.broadcast %37 : f32 to vector<8x256xf32>
    %222 = arith.mulf %152, %221 : vector<8x256xf32>
    %223 = arith.addf %220, %222 : vector<8x256xf32>
    %224 = vector.broadcast %38 : f32 to vector<8x256xf32>
    %225 = arith.mulf %156, %224 : vector<8x256xf32>
    %226 = arith.addf %223, %225 : vector<8x256xf32>
    %227 = vector.broadcast %39 : f32 to vector<8x256xf32>
    %228 = arith.mulf %160, %227 : vector<8x256xf32>
    %229 = arith.addf %226, %228 : vector<8x256xf32>
    %230 = vector.broadcast %40 : f32 to vector<8x256xf32>
    %231 = arith.mulf %164, %230 : vector<8x256xf32>
    %232 = arith.addf %229, %231 : vector<8x256xf32>
    %233 = vector.broadcast %41 : f32 to vector<8x256xf32>
    %234 = arith.mulf %168, %233 : vector<8x256xf32>
    %235 = arith.addf %232, %234 : vector<8x256xf32>
    %236 = vector.broadcast %42 : f32 to vector<8x256xf32>
    %237 = arith.mulf %172, %236 : vector<8x256xf32>
    %238 = arith.addf %235, %237 : vector<8x256xf32>
    %c2_70 = arith.constant 2 : index
    %c0_71 = arith.constant 0 : index
    %c48_72 = arith.constant 48 : index
    %239 = vector.load %arg6[%c2_70, %c0_71, %c48_72] : memref<7x8x352xf32, #tpu.memory_space<vmem>>, vector<1x8x256xf32>
    %240 = vector.shape_cast %239 : vector<1x8x256xf32> to vector<8x256xf32>
    %241 = vector.shape_cast %238 : vector<8x256xf32> to vector<1x8x256xf32>
    tpu.vector_store %arg6[%c2_70, %c0_71, %c48_72], %241 {strides = array<i32>} : memref<7x8x352xf32, #tpu.memory_space<vmem>>, vector<1x8x256xf32>,
    %242 = vector.broadcast %43 : f32 to vector<8x256xf32>
    %243 = arith.mulf %148, %242 : vector<8x256xf32>
    %244 = vector.broadcast %44 : f32 to vector<8x256xf32>
    %245 = arith.mulf %152, %244 : vector<8x256xf32>
    %246 = arith.addf %243, %245 : vector<8x256xf32>
    %247 = vector.broadcast %45 : f32 to vector<8x256xf32>
    %248 = arith.mulf %156, %247 : vector<8x256xf32>
    %249 = arith.addf %246, %248 : vector<8x256xf32>
    %250 = vector.broadcast %46 : f32 to vector<8x256xf32>
    %251 = arith.mulf %160, %250 : vector<8x256xf32>
    %252 = arith.addf %249, %251 : vector<8x256xf32>
    %253 = vector.broadcast %47 : f32 to vector<8x256xf32>
    %254 = arith.mulf %164, %253 : vector<8x256xf32>
    %255 = arith.addf %252, %254 : vector<8x256xf32>
    %256 = vector.broadcast %48 : f32 to vector<8x256xf32>
    %257 = arith.mulf %168, %256 : vector<8x256xf32>
    %258 = arith.addf %255, %257 : vector<8x256xf32>
    %259 = vector.broadcast %49 : f32 to vector<8x256xf32>
    %260 = arith.mulf %172, %259 : vector<8x256xf32>
    %261 = arith.addf %258, %260 : vector<8x256xf32>
    %c3_73 = arith.constant 3 : index
    %c0_74 = arith.constant 0 : index
    %c48_75 = arith.constant 48 : index
    %262 = vector.load %arg6[%c3_73, %c0_74, %c48_75] : memref<7x8x352xf32, #tpu.memory_space<vmem>>, vector<1x8x256xf32>
    %263 = vector.shape_cast %262 : vector<1x8x256xf32> to vector<8x256xf32>
    %264 = vector.shape_cast %261 : vector<8x256xf32> to vector<1x8x256xf32>
    tpu.vector_store %arg6[%c3_73, %c0_74, %c48_75], %264 {strides = array<i32>} : memref<7x8x352xf32, #tpu.memory_space<vmem>>, vector<1x8x256xf32>,
    %265 = vector.broadcast %50 : f32 to vector<8x256xf32>
    %266 = arith.mulf %148, %265 : vector<8x256xf32>
    %267 = vector.broadcast %51 : f32 to vector<8x256xf32>
    %268 = arith.mulf %152, %267 : vector<8x256xf32>
    %269 = arith.addf %266, %268 : vector<8x256xf32>
    %270 = vector.broadcast %52 : f32 to vector<8x256xf32>
    %271 = arith.mulf %156, %270 : vector<8x256xf32>
    %272 = arith.addf %269, %271 : vector<8x256xf32>
    %273 = vector.broadcast %53 : f32 to vector<8x256xf32>
    %274 = arith.mulf %160, %273 : vector<8x256xf32>
    %275 = arith.addf %272, %274 : vector<8x256xf32>
    %276 = vector.broadcast %54 : f32 to vector<8x256xf32>
    %277 = arith.mulf %164, %276 : vector<8x256xf32>
    %278 = arith.addf %275, %277 : vector<8x256xf32>
    %279 = vector.broadcast %55 : f32 to vector<8x256xf32>
    %280 = arith.mulf %168, %279 : vector<8x256xf32>
    %281 = arith.addf %278, %280 : vector<8x256xf32>
    %282 = vector.broadcast %56 : f32 to vector<8x256xf32>
    %283 = arith.mulf %172, %282 : vector<8x256xf32>
    %284 = arith.addf %281, %283 : vector<8x256xf32>
    %c4_76 = arith.constant 4 : index
    %c0_77 = arith.constant 0 : index
    %c48_78 = arith.constant 48 : index
    %285 = vector.load %arg6[%c4_76, %c0_77, %c48_78] : memref<7x8x352xf32, #tpu.memory_space<vmem>>, vector<1x8x256xf32>
    %286 = vector.shape_cast %285 : vector<1x8x256xf32> to vector<8x256xf32>
    %287 = vector.shape_cast %284 : vector<8x256xf32> to vector<1x8x256xf32>
    tpu.vector_store %arg6[%c4_76, %c0_77, %c48_78], %287 {strides = array<i32>} : memref<7x8x352xf32, #tpu.memory_space<vmem>>, vector<1x8x256xf32>,
    %288 = vector.broadcast %57 : f32 to vector<8x256xf32>
    %289 = arith.mulf %148, %288 : vector<8x256xf32>
    %290 = vector.broadcast %58 : f32 to vector<8x256xf32>
    %291 = arith.mulf %152, %290 : vector<8x256xf32>
    %292 = arith.addf %289, %291 : vector<8x256xf32>
    %293 = vector.broadcast %59 : f32 to vector<8x256xf32>
    %294 = arith.mulf %156, %293 : vector<8x256xf32>
    %295 = arith.addf %292, %294 : vector<8x256xf32>
    %296 = vector.broadcast %60 : f32 to vector<8x256xf32>
    %297 = arith.mulf %160, %296 : vector<8x256xf32>
    %298 = arith.addf %295, %297 : vector<8x256xf32>
    %299 = vector.broadcast %61 : f32 to vector<8x256xf32>
    %300 = arith.mulf %164, %299 : vector<8x256xf32>
    %301 = arith.addf %298, %300 : vector<8x256xf32>
    %302 = vector.broadcast %62 : f32 to vector<8x256xf32>
    %303 = arith.mulf %168, %302 : vector<8x256xf32>
    %304 = arith.addf %301, %303 : vector<8x256xf32>
    %305 = vector.broadcast %63 : f32 to vector<8x256xf32>
    %306 = arith.mulf %172, %305 : vector<8x256xf32>
    %307 = arith.addf %304, %306 : vector<8x256xf32>
    %c5_79 = arith.constant 5 : index
    %c0_80 = arith.constant 0 : index
    %c48_81 = arith.constant 48 : index
    %308 = vector.load %arg6[%c5_79, %c0_80, %c48_81] : memref<7x8x352xf32, #tpu.memory_space<vmem>>, vector<1x8x256xf32>
    %309 = vector.shape_cast %308 : vector<1x8x256xf32> to vector<8x256xf32>
    %310 = vector.shape_cast %307 : vector<8x256xf32> to vector<1x8x256xf32>
    tpu.vector_store %arg6[%c5_79, %c0_80, %c48_81], %310 {strides = array<i32>} : memref<7x8x352xf32, #tpu.memory_space<vmem>>, vector<1x8x256xf32>,
    %311 = vector.broadcast %64 : f32 to vector<8x256xf32>
    %312 = arith.mulf %148, %311 : vector<8x256xf32>
    %313 = vector.broadcast %65 : f32 to vector<8x256xf32>
    %314 = arith.mulf %152, %313 : vector<8x256xf32>
    %315 = arith.addf %312, %314 : vector<8x256xf32>
    %316 = vector.broadcast %66 : f32 to vector<8x256xf32>
    %317 = arith.mulf %156, %316 : vector<8x256xf32>
    %318 = arith.addf %315, %317 : vector<8x256xf32>
    %319 = vector.broadcast %67 : f32 to vector<8x256xf32>
    %320 = arith.mulf %160, %319 : vector<8x256xf32>
    %321 = arith.addf %318, %320 : vector<8x256xf32>
    %322 = vector.broadcast %68 : f32 to vector<8x256xf32>
    %323 = arith.mulf %164, %322 : vector<8x256xf32>
    %324 = arith.addf %321, %323 : vector<8x256xf32>
    %325 = vector.broadcast %69 : f32 to vector<8x256xf32>
    %326 = arith.mulf %168, %325 : vector<8x256xf32>
    %327 = arith.addf %324, %326 : vector<8x256xf32>
    %328 = vector.broadcast %70 : f32 to vector<8x256xf32>
    %329 = arith.mulf %172, %328 : vector<8x256xf32>
    %330 = arith.addf %327, %329 : vector<8x256xf32>
    %c6_82 = arith.constant 6 : index
    %c0_83 = arith.constant 0 : index
    %c48_84 = arith.constant 48 : index
    %331 = vector.load %arg6[%c6_82, %c0_83, %c48_84] : memref<7x8x352xf32, #tpu.memory_space<vmem>>, vector<1x8x256xf32>
    %332 = vector.shape_cast %331 : vector<1x8x256xf32> to vector<8x256xf32>
    %333 = vector.shape_cast %330 : vector<8x256xf32> to vector<1x8x256xf32>
    tpu.vector_store %arg6[%c6_82, %c0_83, %c48_84], %333 {strides = array<i32>} : memref<7x8x352xf32, #tpu.memory_space<vmem>>, vector<1x8x256xf32>,
    %c0_85 = arith.constant 0 : index
    %c0_86 = arith.constant 0 : index
    %c0_87 = arith.constant 0 : index
    %334 = vector.load %arg6[%c0_85, %c0_86, %c0_87] : memref<7x8x352xf32, #tpu.memory_space<vmem>>, vector<1x8x256xf32>
    %335 = vector.shape_cast %334 : vector<1x8x256xf32> to vector<8x256xf32>
    %336 = arith.addf %144, %335 : vector<8x256xf32>
    %c1_88 = arith.constant 1 : index
    %c0_89 = arith.constant 0 : index
    %c16_90 = arith.constant 16 : index
    %337 = vector.load %arg6[%c1_88, %c0_89, %c16_90] : memref<7x8x352xf32, #tpu.memory_space<vmem>>, vector<1x8x256xf32>
    %338 = vector.shape_cast %337 : vector<1x8x256xf32> to vector<8x256xf32>
    %339 = arith.addf %336, %338 : vector<8x256xf32>
    %c2_91 = arith.constant 2 : index
    %c0_92 = arith.constant 0 : index
    %c32_93 = arith.constant 32 : index
    %340 = vector.load %arg6[%c2_91, %c0_92, %c32_93] : memref<7x8x352xf32, #tpu.memory_space<vmem>>, vector<1x8x256xf32>
    %341 = vector.shape_cast %340 : vector<1x8x256xf32> to vector<8x256xf32>
    %342 = arith.addf %339, %341 : vector<8x256xf32>
    %c3_94 = arith.constant 3 : index
    %c0_95 = arith.constant 0 : index
    %c48_96 = arith.constant 48 : index
    %343 = vector.load %arg6[%c3_94, %c0_95, %c48_96] : memref<7x8x352xf32, #tpu.memory_space<vmem>>, vector<1x8x256xf32>
    %344 = vector.shape_cast %343 : vector<1x8x256xf32> to vector<8x256xf32>
    %345 = arith.addf %342, %344 : vector<8x256xf32>
    %c4_97 = arith.constant 4 : index
    %c0_98 = arith.constant 0 : index
    %c64_99 = arith.constant 64 : index
    %346 = vector.load %arg6[%c4_97, %c0_98, %c64_99] : memref<7x8x352xf32, #tpu.memory_space<vmem>>, vector<1x8x256xf32>
    %347 = vector.shape_cast %346 : vector<1x8x256xf32> to vector<8x256xf32>
    %348 = arith.addf %345, %347 : vector<8x256xf32>
    %c5_100 = arith.constant 5 : index
    %c0_101 = arith.constant 0 : index
    %c80_102 = arith.constant 80 : index
    %349 = vector.load %arg6[%c5_100, %c0_101, %c80_102] : memref<7x8x352xf32, #tpu.memory_space<vmem>>, vector<1x8x256xf32>
    %350 = vector.shape_cast %349 : vector<1x8x256xf32> to vector<8x256xf32>
    %351 = arith.addf %348, %350 : vector<8x256xf32>
    %c6_103 = arith.constant 6 : index
    %c0_104 = arith.constant 0 : index
    %c96_105 = arith.constant 96 : index
    %352 = vector.load %arg6[%c6_103, %c0_104, %c96_105] : memref<7x8x352xf32, #tpu.memory_space<vmem>>, vector<1x8x256xf32>
    %353 = vector.shape_cast %352 : vector<1x8x256xf32> to vector<8x256xf32>
    %354 = arith.addf %351, %353 : vector<8x256xf32>
    %c1_106 = arith.constant 1 : index
    %c0_107 = arith.constant 0 : index
    %c0_108 = arith.constant 0 : index
    %355 = vector.load %arg5[%c1_106, %c0_107, %c0_108] : memref<2x8x262xf32, #tpu.memory_space<vmem>>, vector<1x8x256xf32>
    %356 = vector.shape_cast %355 : vector<1x8x256xf32> to vector<8x256xf32>
    %357 = vector.broadcast %9 : vector<1x256xf32> to vector<8x256xf32>
    %358 = arith.mulf %356, %357 : vector<8x256xf32>
    %c1_109 = arith.constant 1 : index
    %c0_110 = arith.constant 0 : index
    %c1_111 = arith.constant 1 : index
    %359 = vector.load %arg5[%c1_109, %c0_110, %c1_111] : memref<2x8x262xf32, #tpu.memory_space<vmem>>, vector<1x8x256xf32>
    %360 = vector.shape_cast %359 : vector<1x8x256xf32> to vector<8x256xf32>
    %361 = vector.broadcast %11 : vector<1x256xf32> to vector<8x256xf32>
    %362 = arith.mulf %360, %361 : vector<8x256xf32>
    %c1_112 = arith.constant 1 : index
    %c0_113 = arith.constant 0 : index
    %c2_114 = arith.constant 2 : index
    %363 = vector.load %arg5[%c1_112, %c0_113, %c2_114] : memref<2x8x262xf32, #tpu.memory_space<vmem>>, vector<1x8x256xf32>
    %364 = vector.shape_cast %363 : vector<1x8x256xf32> to vector<8x256xf32>
    %365 = vector.broadcast %13 : vector<1x256xf32> to vector<8x256xf32>
    %366 = arith.mulf %364, %365 : vector<8x256xf32>
    %c1_115 = arith.constant 1 : index
    %c0_116 = arith.constant 0 : index
    %c3_117 = arith.constant 3 : index
    %367 = vector.load %arg5[%c1_115, %c0_116, %c3_117] : memref<2x8x262xf32, #tpu.memory_space<vmem>>, vector<1x8x256xf32>
    %368 = vector.shape_cast %367 : vector<1x8x256xf32> to vector<8x256xf32>
    %369 = vector.broadcast %15 : vector<1x256xf32> to vector<8x256xf32>
    %370 = arith.mulf %368, %369 : vector<8x256xf32>
    %c1_118 = arith.constant 1 : index
    %c0_119 = arith.constant 0 : index
    %c4_120 = arith.constant 4 : index
    %371 = vector.load %arg5[%c1_118, %c0_119, %c4_120] : memref<2x8x262xf32, #tpu.memory_space<vmem>>, vector<1x8x256xf32>
    %372 = vector.shape_cast %371 : vector<1x8x256xf32> to vector<8x256xf32>
    %373 = vector.broadcast %17 : vector<1x256xf32> to vector<8x256xf32>
    %374 = arith.mulf %372, %373 : vector<8x256xf32>
    %c1_121 = arith.constant 1 : index
    %c0_122 = arith.constant 0 : index
    %c5_123 = arith.constant 5 : index
    %375 = vector.load %arg5[%c1_121, %c0_122, %c5_123] : memref<2x8x262xf32, #tpu.memory_space<vmem>>, vector<1x8x256xf32>
    %376 = vector.shape_cast %375 : vector<1x8x256xf32> to vector<8x256xf32>
    %377 = vector.broadcast %19 : vector<1x256xf32> to vector<8x256xf32>
    %378 = arith.mulf %376, %377 : vector<8x256xf32>
    %c1_124 = arith.constant 1 : index
    %c0_125 = arith.constant 0 : index
    %c6_126 = arith.constant 6 : index
    %379 = vector.load %arg5[%c1_124, %c0_125, %c6_126] : memref<2x8x262xf32, #tpu.memory_space<vmem>>, vector<1x8x256xf32>
    %380 = vector.shape_cast %379 : vector<1x8x256xf32> to vector<8x256xf32>
    %381 = vector.broadcast %21 : vector<1x256xf32> to vector<8x256xf32>
    %382 = arith.mulf %380, %381 : vector<8x256xf32>
    %383 = vector.broadcast %71 : f32 to vector<8x256xf32>
    %384 = arith.mulf %358, %383 : vector<8x256xf32>
    %385 = vector.broadcast %72 : f32 to vector<8x256xf32>
    %386 = arith.mulf %362, %385 : vector<8x256xf32>
    %387 = arith.addf %384, %386 : vector<8x256xf32>
    %388 = vector.broadcast %73 : f32 to vector<8x256xf32>
    %389 = arith.mulf %366, %388 : vector<8x256xf32>
    %390 = arith.addf %387, %389 : vector<8x256xf32>
    %391 = vector.broadcast %74 : f32 to vector<8x256xf32>
    %392 = arith.mulf %370, %391 : vector<8x256xf32>
    %393 = arith.addf %390, %392 : vector<8x256xf32>
    %394 = vector.broadcast %75 : f32 to vector<8x256xf32>
    %395 = arith.mulf %374, %394 : vector<8x256xf32>
    %396 = arith.addf %393, %395 : vector<8x256xf32>
    %397 = vector.broadcast %76 : f32 to vector<8x256xf32>
    %398 = arith.mulf %378, %397 : vector<8x256xf32>
    %399 = arith.addf %396, %398 : vector<8x256xf32>
    %400 = vector.broadcast %77 : f32 to vector<8x256xf32>
    %401 = arith.mulf %382, %400 : vector<8x256xf32>
    %402 = arith.addf %399, %401 : vector<8x256xf32>
    %c0_127 = arith.constant 0 : index
    %c0_128 = arith.constant 0 : index
    %c48_129 = arith.constant 48 : index
    %403 = vector.load %arg6[%c0_127, %c0_128, %c48_129] : memref<7x8x352xf32, #tpu.memory_space<vmem>>, vector<1x8x256xf32>
    %404 = vector.shape_cast %403 : vector<1x8x256xf32> to vector<8x256xf32>
    %405 = vector.shape_cast %402 : vector<8x256xf32> to vector<1x8x256xf32>
    tpu.vector_store %arg6[%c0_127, %c0_128, %c48_129], %405 {strides = array<i32>} : memref<7x8x352xf32, #tpu.memory_space<vmem>>, vector<1x8x256xf32>,
    %406 = vector.broadcast %78 : f32 to vector<8x256xf32>
    %407 = arith.mulf %358, %406 : vector<8x256xf32>
    %408 = vector.broadcast %79 : f32 to vector<8x256xf32>
    %409 = arith.mulf %362, %408 : vector<8x256xf32>
    %410 = arith.addf %407, %409 : vector<8x256xf32>
    %411 = vector.broadcast %80 : f32 to vector<8x256xf32>
    %412 = arith.mulf %366, %411 : vector<8x256xf32>
    %413 = arith.addf %410, %412 : vector<8x256xf32>
    %414 = vector.broadcast %81 : f32 to vector<8x256xf32>
    %415 = arith.mulf %370, %414 : vector<8x256xf32>
    %416 = arith.addf %413, %415 : vector<8x256xf32>
    %417 = vector.broadcast %82 : f32 to vector<8x256xf32>
    %418 = arith.mulf %374, %417 : vector<8x256xf32>
    %419 = arith.addf %416, %418 : vector<8x256xf32>
    %420 = vector.broadcast %83 : f32 to vector<8x256xf32>
    %421 = arith.mulf %378, %420 : vector<8x256xf32>
    %422 = arith.addf %419, %421 : vector<8x256xf32>
    %423 = vector.broadcast %84 : f32 to vector<8x256xf32>
    %424 = arith.mulf %382, %423 : vector<8x256xf32>
    %425 = arith.addf %422, %424 : vector<8x256xf32>
    %c1_130 = arith.constant 1 : index
    %c0_131 = arith.constant 0 : index
    %c48_132 = arith.constant 48 : index
    %426 = vector.load %arg6[%c1_130, %c0_131, %c48_132] : memref<7x8x352xf32, #tpu.memory_space<vmem>>, vector<1x8x256xf32>
    %427 = vector.shape_cast %426 : vector<1x8x256xf32> to vector<8x256xf32>
    %428 = vector.shape_cast %425 : vector<8x256xf32> to vector<1x8x256xf32>
    tpu.vector_store %arg6[%c1_130, %c0_131, %c48_132], %428 {strides = array<i32>} : memref<7x8x352xf32, #tpu.memory_space<vmem>>, vector<1x8x256xf32>,
    %429 = vector.broadcast %85 : f32 to vector<8x256xf32>
    %430 = arith.mulf %358, %429 : vector<8x256xf32>
    %431 = vector.broadcast %86 : f32 to vector<8x256xf32>
    %432 = arith.mulf %362, %431 : vector<8x256xf32>
    %433 = arith.addf %430, %432 : vector<8x256xf32>
    %434 = vector.broadcast %87 : f32 to vector<8x256xf32>
    %435 = arith.mulf %366, %434 : vector<8x256xf32>
    %436 = arith.addf %433, %435 : vector<8x256xf32>
    %437 = vector.broadcast %88 : f32 to vector<8x256xf32>
    %438 = arith.mulf %370, %437 : vector<8x256xf32>
    %439 = arith.addf %436, %438 : vector<8x256xf32>
    %440 = vector.broadcast %89 : f32 to vector<8x256xf32>
    %441 = arith.mulf %374, %440 : vector<8x256xf32>
    %442 = arith.addf %439, %441 : vector<8x256xf32>
    %443 = vector.broadcast %90 : f32 to vector<8x256xf32>
    %444 = arith.mulf %378, %443 : vector<8x256xf32>
    %445 = arith.addf %442, %444 : vector<8x256xf32>
    %446 = vector.broadcast %91 : f32 to vector<8x256xf32>
    %447 = arith.mulf %382, %446 : vector<8x256xf32>
    %448 = arith.addf %445, %447 : vector<8x256xf32>
    %c2_133 = arith.constant 2 : index
    %c0_134 = arith.constant 0 : index
    %c48_135 = arith.constant 48 : index
    %449 = vector.load %arg6[%c2_133, %c0_134, %c48_135] : memref<7x8x352xf32, #tpu.memory_space<vmem>>, vector<1x8x256xf32>
    %450 = vector.shape_cast %449 : vector<1x8x256xf32> to vector<8x256xf32>
    %451 = vector.shape_cast %448 : vector<8x256xf32> to vector<1x8x256xf32>
    tpu.vector_store %arg6[%c2_133, %c0_134, %c48_135], %451 {strides = array<i32>} : memref<7x8x352xf32, #tpu.memory_space<vmem>>, vector<1x8x256xf32>,
    %452 = vector.broadcast %92 : f32 to vector<8x256xf32>
    %453 = arith.mulf %358, %452 : vector<8x256xf32>
    %454 = vector.broadcast %93 : f32 to vector<8x256xf32>
    %455 = arith.mulf %362, %454 : vector<8x256xf32>
    %456 = arith.addf %453, %455 : vector<8x256xf32>
    %457 = vector.broadcast %94 : f32 to vector<8x256xf32>
    %458 = arith.mulf %366, %457 : vector<8x256xf32>
    %459 = arith.addf %456, %458 : vector<8x256xf32>
    %460 = vector.broadcast %95 : f32 to vector<8x256xf32>
    %461 = arith.mulf %370, %460 : vector<8x256xf32>
    %462 = arith.addf %459, %461 : vector<8x256xf32>
    %463 = vector.broadcast %96 : f32 to vector<8x256xf32>
    %464 = arith.mulf %374, %463 : vector<8x256xf32>
    %465 = arith.addf %462, %464 : vector<8x256xf32>
    %466 = vector.broadcast %97 : f32 to vector<8x256xf32>
    %467 = arith.mulf %378, %466 : vector<8x256xf32>
    %468 = arith.addf %465, %467 : vector<8x256xf32>
    %469 = vector.broadcast %98 : f32 to vector<8x256xf32>
    %470 = arith.mulf %382, %469 : vector<8x256xf32>
    %471 = arith.addf %468, %470 : vector<8x256xf32>
    %c3_136 = arith.constant 3 : index
    %c0_137 = arith.constant 0 : index
    %c48_138 = arith.constant 48 : index
    %472 = vector.load %arg6[%c3_136, %c0_137, %c48_138] : memref<7x8x352xf32, #tpu.memory_space<vmem>>, vector<1x8x256xf32>
    %473 = vector.shape_cast %472 : vector<1x8x256xf32> to vector<8x256xf32>
    %474 = vector.shape_cast %471 : vector<8x256xf32> to vector<1x8x256xf32>
    tpu.vector_store %arg6[%c3_136, %c0_137, %c48_138], %474 {strides = array<i32>} : memref<7x8x352xf32, #tpu.memory_space<vmem>>, vector<1x8x256xf32>,
    %475 = vector.broadcast %99 : f32 to vector<8x256xf32>
    %476 = arith.mulf %358, %475 : vector<8x256xf32>
    %477 = vector.broadcast %100 : f32 to vector<8x256xf32>
    %478 = arith.mulf %362, %477 : vector<8x256xf32>
    %479 = arith.addf %476, %478 : vector<8x256xf32>
    %480 = vector.broadcast %101 : f32 to vector<8x256xf32>
    %481 = arith.mulf %366, %480 : vector<8x256xf32>
    %482 = arith.addf %479, %481 : vector<8x256xf32>
    %483 = vector.broadcast %102 : f32 to vector<8x256xf32>
    %484 = arith.mulf %370, %483 : vector<8x256xf32>
    %485 = arith.addf %482, %484 : vector<8x256xf32>
    %486 = vector.broadcast %103 : f32 to vector<8x256xf32>
    %487 = arith.mulf %374, %486 : vector<8x256xf32>
    %488 = arith.addf %485, %487 : vector<8x256xf32>
    %489 = vector.broadcast %104 : f32 to vector<8x256xf32>
    %490 = arith.mulf %378, %489 : vector<8x256xf32>
    %491 = arith.addf %488, %490 : vector<8x256xf32>
    %492 = vector.broadcast %105 : f32 to vector<8x256xf32>
    %493 = arith.mulf %382, %492 : vector<8x256xf32>
    %494 = arith.addf %491, %493 : vector<8x256xf32>
    %c4_139 = arith.constant 4 : index
    %c0_140 = arith.constant 0 : index
    %c48_141 = arith.constant 48 : index
    %495 = vector.load %arg6[%c4_139, %c0_140, %c48_141] : memref<7x8x352xf32, #tpu.memory_space<vmem>>, vector<1x8x256xf32>
    %496 = vector.shape_cast %495 : vector<1x8x256xf32> to vector<8x256xf32>
    %497 = vector.shape_cast %494 : vector<8x256xf32> to vector<1x8x256xf32>
    tpu.vector_store %arg6[%c4_139, %c0_140, %c48_141], %497 {strides = array<i32>} : memref<7x8x352xf32, #tpu.memory_space<vmem>>, vector<1x8x256xf32>,
    %498 = vector.broadcast %106 : f32 to vector<8x256xf32>
    %499 = arith.mulf %358, %498 : vector<8x256xf32>
    %500 = vector.broadcast %107 : f32 to vector<8x256xf32>
    %501 = arith.mulf %362, %500 : vector<8x256xf32>
    %502 = arith.addf %499, %501 : vector<8x256xf32>
    %503 = vector.broadcast %108 : f32 to vector<8x256xf32>
    %504 = arith.mulf %366, %503 : vector<8x256xf32>
    %505 = arith.addf %502, %504 : vector<8x256xf32>
    %506 = vector.broadcast %109 : f32 to vector<8x256xf32>
    %507 = arith.mulf %370, %506 : vector<8x256xf32>
    %508 = arith.addf %505, %507 : vector<8x256xf32>
    %509 = vector.broadcast %110 : f32 to vector<8x256xf32>
    %510 = arith.mulf %374, %509 : vector<8x256xf32>
    %511 = arith.addf %508, %510 : vector<8x256xf32>
    %512 = vector.broadcast %111 : f32 to vector<8x256xf32>
    %513 = arith.mulf %378, %512 : vector<8x256xf32>
    %514 = arith.addf %511, %513 : vector<8x256xf32>
    %515 = vector.broadcast %112 : f32 to vector<8x256xf32>
    %516 = arith.mulf %382, %515 : vector<8x256xf32>
    %517 = arith.addf %514, %516 : vector<8x256xf32>
    %c5_142 = arith.constant 5 : index
    %c0_143 = arith.constant 0 : index
    %c48_144 = arith.constant 48 : index
    %518 = vector.load %arg6[%c5_142, %c0_143, %c48_144] : memref<7x8x352xf32, #tpu.memory_space<vmem>>, vector<1x8x256xf32>
    %519 = vector.shape_cast %518 : vector<1x8x256xf32> to vector<8x256xf32>
    %520 = vector.shape_cast %517 : vector<8x256xf32> to vector<1x8x256xf32>
    tpu.vector_store %arg6[%c5_142, %c0_143, %c48_144], %520 {strides = array<i32>} : memref<7x8x352xf32, #tpu.memory_space<vmem>>, vector<1x8x256xf32>,
    %521 = vector.broadcast %113 : f32 to vector<8x256xf32>
    %522 = arith.mulf %358, %521 : vector<8x256xf32>
    %523 = vector.broadcast %114 : f32 to vector<8x256xf32>
    %524 = arith.mulf %362, %523 : vector<8x256xf32>
    %525 = arith.addf %522, %524 : vector<8x256xf32>
    %526 = vector.broadcast %115 : f32 to vector<8x256xf32>
    %527 = arith.mulf %366, %526 : vector<8x256xf32>
    %528 = arith.addf %525, %527 : vector<8x256xf32>
    %529 = vector.broadcast %116 : f32 to vector<8x256xf32>
    %530 = arith.mulf %370, %529 : vector<8x256xf32>
    %531 = arith.addf %528, %530 : vector<8x256xf32>
    %532 = vector.broadcast %117 : f32 to vector<8x256xf32>
    %533 = arith.mulf %374, %532 : vector<8x256xf32>
    %534 = arith.addf %531, %533 : vector<8x256xf32>
    %535 = vector.broadcast %118 : f32 to vector<8x256xf32>
    %536 = arith.mulf %378, %535 : vector<8x256xf32>
    %537 = arith.addf %534, %536 : vector<8x256xf32>
    %538 = vector.broadcast %119 : f32 to vector<8x256xf32>
    %539 = arith.mulf %382, %538 : vector<8x256xf32>
    %540 = arith.addf %537, %539 : vector<8x256xf32>
    %c6_145 = arith.constant 6 : index
    %c0_146 = arith.constant 0 : index
    %c48_147 = arith.constant 48 : index
    %541 = vector.load %arg6[%c6_145, %c0_146, %c48_147] : memref<7x8x352xf32, #tpu.memory_space<vmem>>, vector<1x8x256xf32>
    %542 = vector.shape_cast %541 : vector<1x8x256xf32> to vector<8x256xf32>
    %543 = vector.shape_cast %540 : vector<8x256xf32> to vector<1x8x256xf32>
    tpu.vector_store %arg6[%c6_145, %c0_146, %c48_147], %543 {strides = array<i32>} : memref<7x8x352xf32, #tpu.memory_space<vmem>>, vector<1x8x256xf32>,
    %c0_148 = arith.constant 0 : index
    %c0_149 = arith.constant 0 : index
    %c0_150 = arith.constant 0 : index
    %544 = vector.load %arg6[%c0_148, %c0_149, %c0_150] : memref<7x8x352xf32, #tpu.memory_space<vmem>>, vector<1x8x256xf32>
    %545 = vector.shape_cast %544 : vector<1x8x256xf32> to vector<8x256xf32>
    %546 = arith.addf %354, %545 : vector<8x256xf32>
    %c1_151 = arith.constant 1 : index
    %c0_152 = arith.constant 0 : index
    %c16_153 = arith.constant 16 : index
    %547 = vector.load %arg6[%c1_151, %c0_152, %c16_153] : memref<7x8x352xf32, #tpu.memory_space<vmem>>, vector<1x8x256xf32>
    %548 = vector.shape_cast %547 : vector<1x8x256xf32> to vector<8x256xf32>
    %549 = arith.addf %546, %548 : vector<8x256xf32>
    %c2_154 = arith.constant 2 : index
    %c0_155 = arith.constant 0 : index
    %c32_156 = arith.constant 32 : index
    %550 = vector.load %arg6[%c2_154, %c0_155, %c32_156] : memref<7x8x352xf32, #tpu.memory_space<vmem>>, vector<1x8x256xf32>
    %551 = vector.shape_cast %550 : vector<1x8x256xf32> to vector<8x256xf32>
    %552 = arith.addf %549, %551 : vector<8x256xf32>
    %c3_157 = arith.constant 3 : index
    %c0_158 = arith.constant 0 : index
    %c48_159 = arith.constant 48 : index
    %553 = vector.load %arg6[%c3_157, %c0_158, %c48_159] : memref<7x8x352xf32, #tpu.memory_space<vmem>>, vector<1x8x256xf32>
    %554 = vector.shape_cast %553 : vector<1x8x256xf32> to vector<8x256xf32>
    %555 = arith.addf %552, %554 : vector<8x256xf32>
    %c4_160 = arith.constant 4 : index
    %c0_161 = arith.constant 0 : index
    %c64_162 = arith.constant 64 : index
    %556 = vector.load %arg6[%c4_160, %c0_161, %c64_162] : memref<7x8x352xf32, #tpu.memory_space<vmem>>, vector<1x8x256xf32>
    %557 = vector.shape_cast %556 : vector<1x8x256xf32> to vector<8x256xf32>
    %558 = arith.addf %555, %557 : vector<8x256xf32>
    %c5_163 = arith.constant 5 : index
    %c0_164 = arith.constant 0 : index
    %c80_165 = arith.constant 80 : index
    %559 = vector.load %arg6[%c5_163, %c0_164, %c80_165] : memref<7x8x352xf32, #tpu.memory_space<vmem>>, vector<1x8x256xf32>
    %560 = vector.shape_cast %559 : vector<1x8x256xf32> to vector<8x256xf32>
    %561 = arith.addf %558, %560 : vector<8x256xf32>
    %c6_166 = arith.constant 6 : index
    %c0_167 = arith.constant 0 : index
    %c96_168 = arith.constant 96 : index
    %562 = vector.load %arg6[%c6_166, %c0_167, %c96_168] : memref<7x8x352xf32, #tpu.memory_space<vmem>>, vector<1x8x256xf32>
    %563 = vector.shape_cast %562 : vector<1x8x256xf32> to vector<8x256xf32>
    %564 = arith.addf %561, %563 : vector<8x256xf32>
    %565 = arith.negf %564 : vector<8x256xf32>
    %566 = math.exp %565 : vector<8x256xf32>
    %cst_169 = arith.constant 1.000000e+00 : f32
    %567 = vector.broadcast %cst_169 : f32 to vector<8x256xf32>
    %568 = arith.addf %567, %566 : vector<8x256xf32>
    %569 = arith.divf %567, %568 : vector<8x256xf32>
    %570 = arith.index_cast %121 : i32 to index
    %c0_170 = arith.constant 0 : index
    %571 = vector.load %arg4[%570, %c0_170] : memref<8x256xf32, #tpu.memory_space<vmem>>, vector<8x256xf32>
    tpu.vector_store %arg4[%570, %c0_170], %569 {strides = array<i32>} : memref<8x256xf32, #tpu.memory_space<vmem>>, vector<8x256xf32>,
    %c1_i32 = arith.constant 1 : i32
    return
  }
  func.func @transform_0(%arg0: i32) -> (i32, i32) {
    %c0_i32 = arith.constant 0 : i32
    %c0_i32_0 = arith.constant 0 : i32
    return %arg0, %c0_i32 : i32, i32
  }
  func.func @transform_1(%arg0: i32) -> i32 {
    %c0_i32 = arith.constant 0 : i32
    %c0_i32_0 = arith.constant 0 : i32
    return %c0_i32 : i32
  }
  func.func @transform_2(%arg0: i32) -> (i32, i32, i32) {
    %c0_i32 = arith.constant 0 : i32
    %c0_i32_0 = arith.constant 0 : i32
    %c0_i32_1 = arith.constant 0 : i32
    %c0_i32_2 = arith.constant 0 : i32
    return %c0_i32, %c0_i32_0, %c0_i32_1 : i32, i32, i32
  }
  func.func @transform_3(%arg0: i32) -> (i32, i32) {
    %c0_i32 = arith.constant 0 : i32
    %c0_i32_0 = arith.constant 0 : i32
    return %arg0, %c0_i32 : i32, i32
  }
}

</mosaic_0001>

<bundles_post_ra>
// kernel: tpu_custom_call.1
= control target key start
LH: loop header
LB: loop body
LE: loop exit
PB: predicated region body
PF: predicated region fallthrough
CT: control target
= control target key end

     0   :  { %8 = vsyncpa [#allocation5], 0  ;;  %s4861_s0 = inlined_call_operand.hbm [shape: f32[16,1024], index: 0, kind: input, shape index: {}]   ;;  %s4862_s1 = inlined_call_operand.vmem [shape: f32[98], index: 1, kind: input, shape index: {}]   ;;  %s4863_s2 = inlined_call_operand.hbm [shape: f32[7,1,256], index: 2, kind: input, shape index: {}]   ;;  %s4864_s3 = inlined_call_operand.hbm [shape: f32[16,256], index: 3, kind: output, shape index: {}]  }
   0x1   :  { %10 = vsyncpa [#allocation5 + $0x1], 0 }
   0x2   :  { %11 = vsyncpa [#allocation7], 0 }
   0x3   :  { %12 = vsyncpa [#allocation10], 0 }
   0x4   :  { %13 = vsyncpa [#allocation6], 0 }
   0x5   :  { %15 = vsyncpa [#allocation6 + $0x1], 0  ;;  %s3162_s12 = smov 0   ;;  %s3164_s13 = smov 0  }
   0x6   :  { %s3166_s14 = smov 0   ;;  %s3168_s15 = smov 0  }
   0x7 LB: > { %s3183_s16 = sadd.s32 4294967295, %s3115_s15   ;;  %s2752_s17 = sadd.s32 4294967294, %s3115_s15   ;;  %s3115_s15 = sphi %s3168_s15, %s4989_s15   ;;  %s3111_s14 = sphi %s3166_s14, %s4988_s14   ;;  %s3107_s13 = sphi %s3164_s13, %s4987_s13   ;;  %s3103_s12 = sphi %s3162_s12, %s4986_s12  }
   0x8   : > { %p41_p0 = scmp.ne.s32.totalorder %s3107_s13, %s3103_s12  ;;  %p4865_p1 = scmp.eq.s32.totalorder %s3183_s16, 0 }
   0x9   : > { %p113_p3 = scmp.eq.s32.totalorder %s2752_s17, 1  ;;  %p2753_p5 = scmp.ge.s32.totalorder %s3115_s15, 1 }
   0xa   : > { %p3192_p4 = por %p4865_p1, %p41_p0  ;;  %p120_p7 = scmp.lt.s32.totalorder %s3115_s15, 3 }
   0xb   : > { %p3197_p6 = por %p113_p3, %p41_p0  ;;  %s133_s22 = sshll.u32 %s4862_s1, 4  ;;  %s134_s22 = int_to_ptr.vmem [resolvable:$true] %s133_s22 }
   0xc   : > { %s4900_s18 = scalar_select %p3192_p4, 1, 0 }
   0xd   : > { %s4901_s19 = scalar_select %p3197_p6, 1, 0 }
   0xe   : > { %p3205_p8 = pnand %p2753_p5, %p120_p7  ;;  %s3117_s24 = smov [#allocation9]  }
   0xf   : > { %s143_s25 = sshll.u32 %s3117_s24, 4  ;;  %s2968_s27 = scalar_lea.vmem %s134_s22, 16  ;;  %s3218_s25 = int_to_ptr.vmem [resolvable:$true] %s143_s25 }
  0x10   : > { %p2883_p10 = pneg %p3205_p8  ;;  %p2969_p12 = scmp.ne.s32.totalorder %s134_s22, %s2968_s27 }
  0x11   : > { %p2976_p5 = scmp.lt.s32.totalorder %s134_s22, %s134_s22  ;;  %p2977_p7 = scmp.lt.s32.totalorder %s2968_s27, %s2968_s27 }
  0x12   : > { %p3214_p11 = pnand %p2883_p10, %p4865_p1 }
  0x13   : > { %p2978_p9 = por %p2977_p7, %p2976_p5 }
  0x14   : > { %p2970_p13 = pneg %p3214_p11 }
  0x16   : > { %p2971_p0 = pnand %p2970_p13, %p2969_p12 }
  0x18   : > { %p2972_p3 = pneg %p2971_p0 }
  0x1a   : > { %p2979_p2 = pnand %p2978_p9, %p2972_p3 }
  0x1c   : > { %2982 = shalt.err (!%p2979_p2)
}
  0x1d   : > { %s3118_s28 = smov [#allocation8]   ;;  %s2983_s4 = scalar_lea.hbm %s4863_s2, 224 }
  0x1e   : > { %2886 = dma.vmem_to_smem (!%p3214_p11), %s134_s22, 16, %s3118_s28, [#allocation7]  }
  0x1f   : > { %p2984_p10 = scmp.ne.s32.totalorder %s4863_s2, %s2983_s4  ;;  %p2990_p2 = scmp.lt.u32.totalorder %s2983_s4, %s4863_s2 }
  0x21   : > { %p2986_p12 = pnand %p2984_p10, %p2970_p13 }
  0x23   : > { %p2987_p0 = pneg %p2986_p12 }
  0x25   : > { %p2992_p9 = pnand %p2990_p2, %p2987_p0 }
  0x27   : > { %2995 = shalt.err (!%p2992_p9)
}
  0x28   : > { %s2996_s9 = scalar_lea.vmem %s3218_s25, 224  ;;  %p3004_p1 = scmp.lt.s32.totalorder %s3218_s25, %s3218_s25 }
  0x29   : > { %p2997_p3 = scmp.ne.s32.totalorder %s3218_s25, %s2996_s9  ;;  %p3005_p10 = scmp.lt.s32.totalorder %s2996_s9, %s2996_s9 }
  0x2b   : > { %p2999_p5 = pnand %p2997_p3, %p2970_p13  ;;  %p3006_p12 = por %p3005_p10, %p3004_p1 }
  0x2d   : > { %p3000_p7 = pneg %p2999_p5 }
  0x2f   : > { %p3007_p6 = pnand %p3006_p12, %p3000_p7 }
  0x31   : > { %3010 = shalt.err (!%p3007_p6)
}
  0x32   : > { %s3119_s10 = smov 32   ;;  %s3120_s11 = smov 2  }
  0x33   : > { %2889 = dma.hbm_to_vmem [thread:$0]  (!%p3214_p11), %s4863_s2, 224, %s3218_s25, [#allocation10], %s3119_s10, %s3119_s10, %s3120_s11  }
  0x34   : > { %s3253_s21 = sadd.s32 1, %s3115_s15   ;;  %s28_s22 = sadd.s32 1, %s3111_s14 }
  0x35   : > { %s25_s24 = ssub.s32 %s3115_s15, %s3253_s21  ;;  %p35_p1 = scmp.ne.s32.totalorder %s3111_s14, %s3107_s13 }
  0x36   : > { %p26_p6 = scmp.eq.s32.totalorder %s25_s24, 0  ;;  %p36_p13 = scmp.eq.s32.totalorder %s3115_s15, 0 }
  0x37   : > { %p4904_p0 = scmp.eq.s32.totalorder %s3183_s16, 1  ;;  %p2900_p9 = scmp.lt.s32.totalorder %s3115_s15, 2 }
  0x38   : > { %s3269_s28 = scalar_select %p26_p6, %s3111_s14, %s28_s22  }
  0x39   : > { %p3263_p2 = por %p4904_p0, %p35_p1  ;;  %p37_p3 = por %p36_p13, %p35_p1 }
  0x3a   : > { %s157_s26 = sand.u32 1, %s3111_s14   ;;  %s2869_s25 = sshll.u32 %s3115_s15, 10 }
  0x3b   : > { %s4905_s27 = scalar_select %p3263_p2, 1, 0 }
  0x3c   : > { %s2757_s29 = sshll.u32 %s157_s26, 6  ;;  %s3276_s5 = scalar_lea.hbm %s4861_s0, %s2869_s25 }
  0x3d   : > { %s161_s6 = scalar_lea.vmem [#allocation4], %s2757_s29  ;;  %p3280_p11 = pnand %p2900_p9, %p37_p3 }
  0x3e   : > { %s169_s7 = sshll.u32 %s161_s6, 4  ;;  %s158_s9 = scalar_lea.sflag [#allocation5], %s157_s26  ;;  %s3278_s7 = int_to_ptr.vmem [resolvable:$true] %s169_s7 }
  0x3f   : > { %s3011_s10 = scalar_lea.hbm %s3276_s5, 1024  ;;  %p3013_p7 = pneg %p3280_p11 }
  0x40   : > { %p3012_p5 = scmp.ne.s32.totalorder %s3276_s5, %s3011_s10  ;;  %s3016_s20 = scalar_lea.hbm %s4861_s0, 2048 }
  0x41   : > { %p3017_p1 = scmp.lt.u32.totalorder %s3276_s5, %s4861_s0  ;;  %p3018_p6 = scmp.lt.u32.totalorder %s3016_s20, %s3011_s10 }
  0x42   : > { %p3014_p10 = pnand %p3013_p7, %p3012_p5  ;;  %p3020_p0 = scmp.lt.u32.totalorder %s3011_s10, %s3276_s5 }
  0x43   : > { %p3019_p13 = por %p3018_p6, %p3017_p1 }
  0x44   : > { %p3015_p12 = pneg %p3014_p10 }
  0x45   : > { %p3021_p9 = por %p3020_p0, %p3019_p13 }
  0x47   : > { %p3022_p3 = pnand %p3021_p9, %p3015_p12 }
  0x49   : > { %3025 = shalt.err (!%p3022_p3)
}
  0x4a   : > { %s3026_s26 = scalar_lea.vmem %s3278_s7, 1024  ;;  %s3121_s29 = smov [#allocation4]  }
  0x4b   : > { %p3027_p5 = scmp.ne.s32.totalorder %s3278_s7, %s3026_s26  ;;  %s3031_s25 = sshll.u32 %s3121_s29, 4  ;;  %s3032_s25 = int_to_ptr.vmem [resolvable:$false] %s3031_s25 }
  0x4c   : > { %s3033_s30 = scalar_lea.vmem %s3032_s25, 2048  ;;  %p3034_p4 = scmp.lt.s32.totalorder %s3278_s7, %s3032_s25 }
  0x4d   : > { %p3029_p10 = pnand %p3027_p5, %p3013_p7  ;;  %p3035_p1 = scmp.lt.s32.totalorder %s3033_s30, %s3026_s26 }
  0x4f   : > { %p3030_p2 = pneg %p3029_p10  ;;  %p3036_p6 = por %p3035_p1, %p3034_p4 }
  0x51   : > { %p3037_p13 = pnand %p3036_p6, %p3030_p2 }
  0x53   : > { %3040 = shalt.err (!%p3037_p13)
}
  0x54   : > { %2893 = dma.hbm_to_vmem [thread:$0]  (!%p3280_p11), %s3276_s5, 1024, %s3278_s7, %s158_s9  }
  0x55   : > { %178 = sbr.rel (%p3205_p8) target bundleno = 1657 (0x679), region = 32 }
  0x5c   : > { %s3312_s4 = sand.u32 1, %s3107_s13   ;;  %p4907_p4 = scmp.ne.s32.totalorder %s4900_s18, 0 }
  0x5d   : > { %s2761_s6 = sshll.u32 %s3312_s4, 6  ;;  %s181_s10 = scalar_lea.sflag [#allocation5], %s3312_s4 }
  0x5e   : > { %s184_s11 = scalar_lea.vmem [#allocation4], %s2761_s6 }
  0x5f   : > { %3086 = dma.done.wait (%p4907_p4), %s181_s10, 1024  }
  0x60   : > { %3088 = vsyncadd (%p4907_p4), %s181_s10, 4294966272  ;;  %p4908_p2 = scmp.eq.s32.totalorder %s3183_s16, 0 }
  0x62   : > { %3090 = dma.done.wait (%p4908_p2), [#allocation7], 16   ;;  %p4909_p11 = pmov %p4908_p2 }
  0x63   : > { %p4910_p8 = pmov %p4908_p2 }
  0x64   : > { %3092 = vsyncadd (%p4909_p11), [#allocation7], 4294967280 }
  0x65   : > { %3094 = dma.done.wait (%p4910_p8), [#allocation10], 224   ;;  %p4911_p7 = pmov %p4908_p2 }
  0x67   : > { %3096 = vsyncadd (%p4911_p7), [#allocation10], 4294967072 }
  0x68   : > { %197 = sfence }
  0x69   : > { %v352_v0 = vld [vmem:[%s184_s11] sm:$0xff]  ;;  %v354_v1 = vld [vmem:[%s184_s11 + $0x10] sm:$0xff]  ;;  %v405_v3 = vlaneseq  ;;  %v353_v6 = vld [vmem:[%s184_s11 + $0x8] sm:$0xff]  ;;  %s3122_s18 = smov 3   ;;  %s3123_s23 = smov 1   ;;  %vm216_vm0 = vcmask 23552  }
  0x6a   : > { %v360_v2 = vld [vmem:[%s184_s11 + $0x20] sm:$0xff]  ;;  %v358_v4 = vmax.f32 %v352_v0, %v354_v1  ;;  %v356_v5 = vadd.f32 %v354_v1, %v352_v0  ;;  %v366_v7 = vld [vmem:[%s184_s11 + $0x30] sm:$0xff]  ;;  %v355_v9 = vld [vmem:[%s184_s11 + $0x18] sm:$0xff]  ;;  %vm219_vm1 = vcmask 48152   ;;  %v4868_v28 = vmov 0.0   ;;  %s3125_s5 = smov 2  }
  0x6b   : > { %v406_v8 = vshrl.u32 %v405_v3, 7  ;;  %v361_v10 = vld [vmem:[%s184_s11 + $0x28] sm:$0xff]  ;;  %v240_v13 = vld [vmem:[#allocation9 + $0x2] sm:$0x3]  ;;  %v359_v14 = vmax.f32 %v353_v6, %v355_v9  ;;  %v357_v15 = vadd.f32 %v355_v9, %v353_v6  ;;  %v367_v17 = vld [vmem:[%s184_s11 + $0x38] sm:$0xff]  ;;  %218 = vst.msk [vmem:[#allocation2 + $0x18] sm:$0xff] %vm216_vm0, %v4868_v28 }
  0x6c   : > { %v364_v11 = vmax.f32 %v358_v4, %v360_v2  ;;  %v362_v12 = vadd.f32 %v360_v2, %v356_v5  ;;  %217 = vst.msk [vmem:[#allocation2] sm:$0xff] %vm216_vm0, %v4868_v28  ;;  %v242_v30 = vld [vmem:[#allocation9 + $0x4] sm:$0x3]  ;;  %v244_v33 = vld [vmem:[#allocation9 + $0x6] sm:$0x3]  ;;  %s3126_s7 = smov 4  }
  0x6d   : > { %v3328_v16 = vsub.s32 0, %v406_v8  ;;  %v365_v20 = vmax.f32 %v359_v14, %v361_v10  ;;  %v363_v21 = vadd.f32 %v361_v10, %v357_v15  ;;  %v411_v23 = vsub.s32 1, %v406_v8  ;;  %221 = vst.msk [vmem:[#allocation2 + $0x28] sm:$0xff] %vm219_vm1, %v4868_v28  ;;  %220 = vst.msk [vmem:[#allocation2 + $0x10] sm:$0xff] %vm219_vm1, %v4868_v28  ;;  %v246_v36 = vld [vmem:[#allocation9 + $0x8] sm:$0x3] }
  0x6e   : > { %v370_v18 = vmax.f32 %v364_v11, %v366_v7  ;;  %v368_v19 = vadd.f32 %v366_v7, %v362_v12  ;;  %v248_v39 = vld [vmem:[#allocation9 + $0xa] sm:$0x3]  ;;  %v250_v42 = vld [vmem:[#allocation9 + $0xc] sm:$0x3]  ;;  %s3127_s8 = smov 5   ;;  %s3128_s9 = smov 6  }
  0x6f   : > { %v422_v22 = vrot.slane %v240_v13, %v3328_v16  ;;  %v371_v24 = vmax.f32 %v365_v20, %v367_v17  ;;  %v369_v26 = vadd.f32 %v367_v17, %v363_v21  ;;  %v426_v27 = vrot.slane %v240_v13, %v411_v23  ;;  %v238_v45 = vld [vmem:[#allocation9] sm:$0x3]  ;;  %s2765_s17 = sld [smem:[#allocation8 + $0x1]]  ;;  %s2766_s20 = sld [smem:[#allocation8 + $0x2]] }
  0x70   : > { %390 = vrot.lane.b32.xlu1 %v370_v18, %s3122_s18  ;;  %v372_v25 = vmul.f32 0.25, %v368_v19  ;;  %v447_v31 = vrot.slane %v242_v30, %v411_v23  ;;  %v443_v32 = vrot.slane %v242_v30, %v3328_v16  ;;  %v468_v34 = vrot.slane %v244_v33, %v411_v23  ;;  %s2768_s22 = sld [smem:[#allocation8 + $0x4]]  ;;  %s2767_s24 = sld [smem:[#allocation8 + $0x3]] }
  0x71   : > { %427 = vrot.lane.b32.xlu0 %v422_v22, %s3123_s23  ;;  %v373_v29 = vmul.f32 0.25, %v369_v26  ;;  %v464_v35 = vrot.slane %v244_v33, %v3328_v16  ;;  %v488_v37 = vrot.slane %v246_v36, %v411_v23  ;;  %v484_v38 = vrot.slane %v246_v36, %v3328_v16  ;;  %s3129_s26 = smov 126   ;;  %s3130_s29 = smov 127  }
  0x72   : > { %v509_v40 = vrot.slane %v248_v39, %v411_v23  ;;  %v505_v41 = vrot.slane %v248_v39, %v3328_v16  ;;  %v530_v43 = vrot.slane %v250_v42, %v411_v23  ;;  %v526_v44 = vrot.slane %v250_v42, %v3328_v16  ;;  %s2770_s25 = sld [smem:[#allocation8 + $0x6]]  ;;  %s3443_s30 = sld [smem:[#allocation8 + $0x5]] }
  0x73   : > { %vm384_vm2 = vcmask 1047576   ;;  %v412_v48 = vrot.slane %v238_v45, %v411_v23  ;;  %vm431_vm3 = vcmask 7168   ;;  %v408_v53 = vrot.slane %v238_v45, %v3328_v16  ;;  %s3131_s6 = smov 124   ;;  %s3132_s10 = smov 125  }
  0x74   : > { %392 = vrot.lane.b32.xlu1 %v371_v24, %s3122_s18  ;;  %vm452_vm4 = vcmask 15360   ;;  %vm493_vm5 = vcmask 31744   ;;  %vm514_vm6 = vcmask 39936   ;;  %vm535_vm7 = vcmask 48128   ;;  %s2773_s11 = sld [smem:[#allocation8 + $0x9]]  ;;  %p4983_p0 = scmp.ne.s32.totalorder %s4905_s27, 0 }
  0x75   : > { %376 = vrot.lane.b32.xlu0 %v372_v25, %s3122_s18  ;;  %v546_v61 = vstv %s2765_s17  ;;  %v3383_v3 = vstv %s2766_s20  ;;  %s2776_s17 = sld [smem:[#allocation8 + $0xc]]  ;;  %s2780_s20 = sld [smem:[#allocation8 + $0x10]]  ;;  %vm559_vm8 = vcmask 1039360   ;;  %vm579_vm9 = vcmask 1031168  }
  0x76   : > { %v606_v24 = vstv %s2768_s22  ;;  %s2779_s22 = sld [smem:[#allocation8 + $0xf]]  ;;  %vm599_vm10 = vcmask 1022976   ;;  %vm619_vm11 = vcmask 1014784   ;;  %vm222_vm12 = vcmask 392192  }
  0x77   : > { %vm230_vm13 = vcmask 785792   ;;  %vm639_vm14 = vcmask 1006592   ;;  %vm659_vm15 = vcmask 998400   ;;  %vm1482_vm1 = vcmask 916480  }
  0x78   : > { %429 = vrot.lane.b32.xlu1 %v426_v27, %s3123_s23  ;;  %v586_v27 = vstv %s2767_s24  ;;  %s3133_s23 = smov 122   ;;  %s2782_s24 = sld [smem:[#allocation8 + $0x12]] }
  0x79   : > { %378 = vrot.lane.b32.xlu0 %v373_v29, %s3122_s18 }
  0x7c   : > { %450 = vrot.lane.b32.xlu1 %v447_v31, %s3125_s5 }
  0x7d   : > { %448 = vrot.lane.b32.xlu0 %v443_v32, %s3125_s5  ;;  %s3134_s5 = smov 123  }
  0x80   : > { %471 = vrot.lane.b32.xlu1 %v468_v34, %s3122_s18 }
  0x81   : > { %469 = vrot.lane.b32.xlu0 %v464_v35, %s3122_s18  ;;  %s2772_s18 = sld [smem:[#allocation8 + $0x8]] }
  0x84   : > { %491 = vrot.lane.b32.xlu1 %v488_v37, %s3126_s7 }
  0x85   : > { %489 = vrot.lane.b32.xlu0 %v484_v38, %s3126_s7  ;;  %s2775_s7 = sld [smem:[#allocation8 + $0xb]] }
  0x88   : > { %512 = vrot.lane.b32.xlu1 %v509_v40, %s3127_s8 }
  0x89   : > { %510 = vrot.lane.b32.xlu0 %v505_v41, %s3127_s8  ;;  %v646_v41 = vstv %s2770_s25  ;;  %s2774_s8 = sld [smem:[#allocation8 + $0xa]]  ;;  %s2781_s25 = sld [smem:[#allocation8 + $0x11]] }
  0x8c   : > { %533 = vrot.lane.b32.xlu1 %v530_v43, %s3128_s9 }
  0x8d   : > { %531 = vrot.lane.b32.xlu0 %v526_v44, %s3128_s9  ;;  %s2777_s9 = sld [smem:[#allocation8 + $0xd]] }
  0xe2   : > { %v391_v46 = vpop.permute.xlu1 %390 }
  0xe3   : > { %399 = vst.msk [vmem:[#allocation2 + $0x18] sm:$0xff] %vm384_vm2, %v391_v46  ;;  %v3348_v47 = vpop.permute.xlu0 %427 }
  0xe4   : > { %4912 = vst [vmem:[#allocation16_spill] sm:$0xff] %v3348_v47 }
  0xe6   : > { %v393_v49 = vpop.permute.xlu1 %392 }
  0xe7   : > { %v3351_v50 = vsel %vm216_vm0, %v391_v46, %v393_v49  ;;  %401 = vst.msk [vmem:[#allocation2 + $0x28] sm:$0xff] %vm216_vm0, %v393_v49  ;;  %v377_v51 = vpop.permute.xlu0 %376 }
  0xe8   : > { %385 = vst.msk [vmem:[#allocation2] sm:$0xff] %vm384_vm2, %v377_v51  ;;  %v3355_v52 = vmul.f32 %v412_v48, %v3351_v50  ;;  %vm1501_vm2 = vcmask 785408  }
  0xea   : > { %4913 = vst [vmem:[#allocation17_spill] sm:$0xff] %v3355_v52  ;;  %v1583_v54 = vld [vmem:[#allocation2 + $0x18] sm:$0xff]  ;;  %v3358_v55 = vpop.permute.xlu1 %429 }
  0xeb   : > { %4914 = vst [vmem:[#allocation18_spill] sm:$0xff] %v3358_v55  ;;  %v432_v56 = vsel %vm431_vm3, %v3348_v47, %v3358_v55  ;;  %v379_v57 = vpop.permute.xlu0 %378  ;;  %v3362_v58 = vmul.f32 %v1583_v54, %v408_v53  ;;  %vm1520_vm3 = vcmask 654336  }
  0xec   : > { %v3365_v59 = vmul.f32 %v432_v56, %v3351_v50  ;;  %v3368_v60 = vsel %vm216_vm0, %v377_v51, %v379_v57  ;;  %387 = vst.msk [vmem:[#allocation2 + $0x10] sm:$0xff] %vm216_vm0, %v379_v57  ;;  %v3498_v51 = vstv %s3443_s30  ;;  %s2784_s30 = sld [smem:[#allocation8 + $0x14]] }
  0xed   : > { %4915 = vst [vmem:[#allocation19_spill] sm:$0xff] %v3362_v58  ;;  %v3372_v62 = vmul.f32 %v432_v56, %v3368_v60  ;;  %v3375_v63 = vmul.f32 %v412_v48, %v3368_v60 }
  0xee   : > { %4916 = vst [vmem:[#allocation20_spill] sm:$0xff] %v3365_v59  ;;  %v3377_v0 = vpop.permute.xlu1 %450 }
  0xef   : > { %4917 = vst [vmem:[#allocation21_spill] sm:$0xff] %v3372_v62  ;;  %4918 = vst [vmem:[#allocation22_spill] sm:$0xff] %v3377_v0  ;;  %v3379_v1 = vpop.permute.xlu0 %448  ;;  %v3381_v2 = vld [vmem:[#allocation2] sm:$0xff]  ;;  %v3386_v4 = vmul.f32 %v546_v61, %v3372_v62 }
  0xf0   : > { %4919 = vst [vmem:[#allocation23_spill] sm:$0xff] %v3379_v1  ;;  %v3389_v5 = vmul.f32 %v408_v53, %v3381_v2  ;;  %v453_v6 = vsel %vm452_vm4, %v3379_v1, %v3377_v0  ;;  %v3395_v7 = vmul.f32 %v3379_v1, %v3381_v2  ;;  %v3402_v9 = vmul.f32 %v3348_v47, %v3381_v2 }
  0xf1   : > { %v3398_v8 = vmul.f32 %v453_v6, %v3351_v50  ;;  %v3462_v36 = vmul.f32 %v453_v6, %v3368_v60  ;;  %vm1539_vm4 = vcmask 523264  }
  0xf2   : > { %4920 = vst [vmem:[#allocation24_spill] sm:$0xff] %v3395_v7  ;;  %4922 = vst [vmem:[#allocation26_spill] sm:$0xff] %v3402_v9  ;;  %v3404_v10 = vpop.permute.xlu1 %471  ;;  %v567_v11 = vmul.f32 %v3383_v3, %v3395_v7  ;;  %v547_v14 = vmul.f32 %v546_v61, %v3402_v9  ;;  %v909_v28 = vstv %s2784_s30  ;;  %s2796_s30 = sld [smem:[#allocation8 + $0x20]] }
  0xf3   : > { %4921 = vst [vmem:[#allocation25_spill] sm:$0xff] %v3398_v8  ;;  %4923 = vst [vmem:[#allocation27_spill] sm:$0xff] %v3404_v10  ;;  %v417_v12 = vld [vmem:[#allocation2 + $0x10] sm:$0xff]  ;;  %v3408_v13 = vpop.permute.xlu0 %469  ;;  %v3502_v53 = vmul.f32 %v3383_v3, %v3462_v36 }
  0xf4   : > { %4924 = vst [vmem:[#allocation28_spill] sm:$0xff] %v3408_v13  ;;  %v3412_v15 = vmul.f32 %v3358_v55, %v417_v12  ;;  %v3415_v16 = vmul.f32 %v3377_v0, %v417_v12  ;;  %v473_v17 = vsel %vm216_vm0, %v3408_v13, %v3404_v10  ;;  %573 = vrot.lane.b32.xlu1 %v567_v11, %s3129_s26  ;;  %4935 = vst [vmem:[#allocation39_spill] sm:$0xff] %v3462_v36  ;;  %vm676_vm0 = vcmask 1047936  }
  0xf5   : > { %v3422_v18 = vmul.f32 %v473_v17, %v3351_v50  ;;  %553 = vrot.lane.b32.xlu0 %v547_v14, %s3130_s29  ;;  %v3432_v22 = vmul.f32 %v3408_v13, %v3381_v2  ;;  %v3456_v33 = vmul.f32 %v3404_v10, %v417_v12  ;;  %v3478_v42 = vmul.f32 %v473_v17, %v3368_v60 }
  0xf6   : > { %4925 = vst [vmem:[#allocation29_spill] sm:$0xff] %v3412_v15  ;;  %4926 = vst [vmem:[#allocation30_spill] sm:$0xff] %v3415_v16  ;;  %v3425_v19 = vpop.permute.xlu1 %491  ;;  %v569_v20 = vmul.f32 %v3383_v3, %v3415_v16  ;;  %v549_v21 = vmul.f32 %v546_v61, %v3412_v15  ;;  %v3534_v17 = vstv %s2773_s11  ;;  %s2783_s11 = sld [smem:[#allocation8 + $0x13]] }
  0xf7   : > { %4927 = vst [vmem:[#allocation31_spill] sm:$0xff] %v3422_v18  ;;  %4928 = vst [vmem:[#allocation32_spill] sm:$0xff] %v3425_v19  ;;  %v3434_v23 = vpop.permute.xlu0 %489  ;;  %v3450_v30 = vmul.f32 %v3425_v19, %v417_v12  ;;  %v587_v35 = vmul.f32 %v586_v27, %v3432_v22  ;;  %v589_v46 = vmul.f32 %v586_v27, %v3456_v33 }
  0xf8   : > { %4929 = vst [vmem:[#allocation33_spill] sm:$0xff] %v3432_v22  ;;  %4930 = vst [vmem:[#allocation34_spill] sm:$0xff] %v3434_v23  ;;  %v494_v25 = vsel %vm493_vm5, %v3434_v23, %v3425_v19  ;;  %v3440_v26 = vmul.f32 %v3434_v23, %v3381_v2  ;;  %577 = vrot.lane.b32.xlu1 %v569_v20, %s3129_s26  ;;  %v3521_v6 = vmul.f32 %v586_v27, %v3478_v42  ;;  %vm1576_vm5 = vcmask 261120  }
  0xf9   : > { %v3446_v29 = vmul.f32 %v494_v25, %v3351_v50  ;;  %557 = vrot.lane.b32.xlu0 %v549_v21, %s3130_s29  ;;  %4933 = vst [vmem:[#allocation37_spill] sm:$0xff] %v3456_v33  ;;  %v609_v40 = vmul.f32 %v606_v24, %v3450_v30  ;;  %4938 = vst [vmem:[#allocation42_spill] sm:$0xff] %v3478_v42  ;;  %v3481_v43 = vmul.f32 %v494_v25, %v3368_v60 }
  0xfa   : > { %v3452_v31 = vpop.permute.xlu1 %512  ;;  %v607_v32 = vmul.f32 %v606_v24, %v3440_v26  ;;  %v703_v20 = vmul.f32 %v3534_v17, %v3395_v7  ;;  %v3540_v21 = vstv %s2772_s18  ;;  %v705_v25 = vmul.f32 %v3534_v17, %v3415_v16  ;;  %s2786_s18 = sld [smem:[#allocation8 + $0x16]] }
  0xfb   : > { %4931 = vst [vmem:[#allocation35_spill] sm:$0xff] %v3446_v29  ;;  %4932 = vst [vmem:[#allocation36_spill] sm:$0xff] %v3452_v31  ;;  %v3458_v34 = vpop.permute.xlu0 %510  ;;  %v3512_v57 = vmul.f32 %v3452_v31, %v417_v12  ;;  %v686_v27 = vmul.f32 %v3540_v21, %v3412_v15 }
  0xfc   : > { %4934 = vst [vmem:[#allocation38_spill] sm:$0xff] %v3458_v34  ;;  %v3466_v37 = vsel %vm514_vm6, %v3458_v34, %v3452_v31  ;;  %613 = vrot.lane.b32.xlu1 %v607_v32, %s3131_s6  ;;  %v3485_v44 = vmul.f32 %v3458_v34, %v3381_v2  ;;  %v3550_v32 = vstv %s2775_s7  ;;  %s2787_s7 = sld [smem:[#allocation8 + $0x17]] }
  0xfd   : > { %v3471_v38 = vmul.f32 %v3466_v37, %v3351_v50  ;;  %593 = vrot.lane.b32.xlu0 %v587_v35, %s3132_s10  ;;  %v629_v14 = vmul.f32 %v3498_v51, %v3512_v57  ;;  %v3553_v35 = vstv %s2774_s8  ;;  %s2788_s8 = sld [smem:[#allocation8 + $0x18]] }
  0xfe   : > { %v3474_v39 = vpop.permute.xlu1 %533  ;;  %v627_v3 = vmul.f32 %v3498_v51, %v3485_v44 }
  0xff   : > { %4936 = vst [vmem:[#allocation40_spill] sm:$0xff] %v3471_v38  ;;  %4937 = vst [vmem:[#allocation41_spill] sm:$0xff] %v3474_v39  ;;  %v3487_v45 = vpop.permute.xlu0 %531  ;;  %v3515_v61 = vmul.f32 %v3474_v39, %v417_v12  ;;  %v1133_v38 = vstv %s2796_s30  ;;  %s3839_s30 = sld [smem:[#allocation8 + $0xe]] }
 0x100   : > { %4939 = vst [vmem:[#allocation43_spill] sm:$0xff] %v3487_v45  ;;  %v536_v48 = vsel %vm535_vm7, %v3487_v45, %v3474_v39  ;;  %v3494_v49 = vmul.f32 %v3487_v45, %v3381_v2  ;;  %617 = vrot.lane.b32.xlu1 %v609_v40, %s3131_s6  ;;  %v741_v40 = vmul.f32 %v3550_v32, %v3440_v26 }
 0x101   : > { %v3505_v54 = vmul.f32 %v536_v48, %v3368_v60  ;;  %v3508_v56 = vmul.f32 %v536_v48, %v3351_v50  ;;  %597 = vrot.lane.b32.xlu0 %v589_v46, %s3132_s10  ;;  %v3524_v50 = vmul.f32 %v606_v24, %v3481_v43  ;;  %v649_v12 = vmul.f32 %v646_v41, %v3515_v61 }
 0x102   : > { %v647_v2 = vmul.f32 %v646_v41, %v3494_v49  ;;  %v684_v24 = vmul.f32 %v3540_v21, %v3402_v9  ;;  %v743_v46 = vmul.f32 %v3550_v32, %v3450_v30  ;;  %v724_v48 = vmul.f32 %v3553_v35, %v3456_v33 }
 0x103   : > { %4940 = vst [vmem:[#allocation44_spill] sm:$0xff] %v3508_v56  ;;  %v3527_v11 = vmul.f32 %v646_v41, %v3505_v54  ;;  %v722_v41 = vmul.f32 %v3553_v35, %v3432_v22 }
 0x104   : > { %653 = vrot.lane.b32.xlu1 %v647_v2, %s3133_s23  ;;  %v3566_v2 = vstv %s2777_s9  ;;  %s2789_s9 = sld [smem:[#allocation8 + $0x19]] }
 0x105   : > { %633 = vrot.lane.b32.xlu0 %v627_v3, %s3134_s5  ;;  %v759_v3 = vstv %s2776_s17  ;;  %s2790_s17 = sld [smem:[#allocation8 + $0x1a]] }
 0x108   : > { %657 = vrot.lane.b32.xlu1 %v649_v12, %s3133_s23  ;;  %v779_v12 = vmul.f32 %v3566_v2, %v3494_v49 }
 0x109   : > { %637 = vrot.lane.b32.xlu0 %v629_v14, %s3134_s5  ;;  %v760_v14 = vmul.f32 %v759_v3, %v3485_v44 }
 0x10c   : > { %709 = vrot.lane.b32.xlu1 %v703_v20, %s3129_s26  ;;  %v781_v20 = vmul.f32 %v3566_v2, %v3515_v61 }
 0x10d   : > { %690 = vrot.lane.b32.xlu0 %v684_v24, %s3130_s29  ;;  %v762_v24 = vmul.f32 %v759_v3, %v3512_v57 }
 0x110   : > { %713 = vrot.lane.b32.xlu1 %v705_v25, %s3129_s26  ;;  %v833_v25 = vstv %s2780_s20  ;;  %s2791_s20 = sld [smem:[#allocation8 + $0x1b]] }
 0x111   : > { %694 = vrot.lane.b32.xlu0 %v686_v27, %s3130_s29  ;;  %v834_v27 = vmul.f32 %v833_v25, %v3395_v7 }
 0x114   : > { %747 = vrot.lane.b32.xlu1 %v741_v40, %s3131_s6  ;;  %v814_v40 = vstv %s2779_s22  ;;  %s2793_s22 = sld [smem:[#allocation8 + $0x1d]] }
 0x115   : > { %728 = vrot.lane.b32.xlu0 %v722_v41, %s3132_s10  ;;  %v815_v41 = vmul.f32 %v814_v40, %v3402_v9 }
 0x118   : > { %751 = vrot.lane.b32.xlu1 %v743_v46, %s3131_s6  ;;  %v836_v46 = vmul.f32 %v833_v25, %v3415_v16 }
 0x119   : > { %732 = vrot.lane.b32.xlu0 %v724_v48, %s3132_s10  ;;  %v817_v48 = vmul.f32 %v814_v40, %v3412_v15 }
 0x11c   : > { %785 = vrot.lane.b32.xlu1 %v779_v12, %s3133_s23  ;;  %v871_v12 = vstv %s2782_s24  ;;  %s2794_s24 = sld [smem:[#allocation8 + $0x1e]] }
 0x11d   : > { %766 = vrot.lane.b32.xlu0 %v760_v14, %s3134_s5  ;;  %v852_v14 = vstv %s2781_s25  ;;  %s2795_s25 = sld [smem:[#allocation8 + $0x1f]] }
 0x120   : > { %789 = vrot.lane.b32.xlu1 %v781_v20, %s3133_s23  ;;  %v872_v20 = vmul.f32 %v871_v12, %v3440_v26 }
 0x121   : > { %770 = vrot.lane.b32.xlu0 %v762_v24, %s3134_s5  ;;  %v853_v24 = vmul.f32 %v852_v14, %v3432_v22 }
 0x123   : > { %v1114_v56 = vstv %s2795_s25  ;;  %s3827_s25 = sld [smem:[#allocation8 + $0x29]] }
 0x124   : > { %840 = vrot.lane.b32.xlu1 %v834_v27, %s3129_s26  ;;  %v874_v27 = vmul.f32 %v871_v12, %v3450_v30 }
 0x125   : > { %821 = vrot.lane.b32.xlu0 %v815_v41, %s3130_s29  ;;  %v855_v41 = vmul.f32 %v852_v14, %v3456_v33 }
 0x128   : > { %844 = vrot.lane.b32.xlu1 %v836_v46, %s3129_s26  ;;  %v890_v46 = vstv %s2783_s11  ;;  %s2797_s11 = sld [smem:[#allocation8 + $0x21]] }
 0x129   : > { %825 = vrot.lane.b32.xlu0 %v817_v48, %s3130_s29  ;;  %v910_v48 = vmul.f32 %v909_v28, %v3494_v49  ;;  %v891_v52 = vmul.f32 %v890_v46, %v3485_v44 }
 0x12c   : > { %878 = vrot.lane.b32.xlu1 %v872_v20, %s3131_s6  ;;  %v912_v20 = vmul.f32 %v909_v28, %v3515_v61 }
 0x12d   : > { %859 = vrot.lane.b32.xlu0 %v853_v24, %s3132_s10  ;;  %v893_v24 = vmul.f32 %v890_v46, %v3512_v57 }
 0x12e   : > { %v1152_v34 = vstv %s2797_s11  ;;  %s3135_s11 = smov 48  }
 0x130   : > { %882 = vrot.lane.b32.xlu1 %v874_v27, %s3131_s6  ;;  %v3610_v27 = vmul.f32 %v3466_v37, %v3368_v60  ;;  %v704_v60 = vmul.f32 %v3534_v17, %v3462_v36  ;;  %v723_v37 = vmul.f32 %v3553_v35, %v3478_v42  ;;  %v854_v17 = vmul.f32 %v852_v14, %v3478_v42 }
 0x131   : > { %863 = vrot.lane.b32.xlu0 %v855_v41, %s3132_s10  ;;  %v911_v35 = vmul.f32 %v909_v28, %v3505_v54 }
 0x134   : > { %916 = vrot.lane.b32.xlu1 %v910_v48, %s3133_s23 }
 0x135   : > { %897 = vrot.lane.b32.xlu0 %v891_v52, %s3134_s5  ;;  %v628_v52 = vmul.f32 %v3498_v51, %v3610_v27  ;;  %v742_v51 = vmul.f32 %v3550_v32, %v3481_v43  ;;  %v892_v32 = vmul.f32 %v890_v46, %v3610_v27 }
 0x138   : > { %920 = vrot.lane.b32.xlu1 %v912_v20, %s3133_s23  ;;  %v983_v20 = vstv %s2788_s8  ;;  %s2801_s8 = sld [smem:[#allocation8 + $0x25]] }
 0x139   : > { %901 = vrot.lane.b32.xlu0 %v893_v24, %s3134_s5 }
 0x13c   : > { %555 = vrot.lane.b32.xlu1 %v3386_v4, %s3130_s29  ;;  %v685_v4 = vmul.f32 %v3540_v21, %v3372_v62  ;;  %v873_v21 = vmul.f32 %v871_v12, %v3481_v43 }
 0x13d   : > { %575 = vrot.lane.b32.xlu0 %v3502_v53, %s3129_s26  ;;  %v761_v53 = vmul.f32 %v759_v3, %v3610_v27 }
 0x13e   : > { %v1226_v59 = vstv %s2801_s8  ;;  %s2799_s8 = sld [smem:[#allocation8 + $0x23]] }
 0x13f   : > { %v1228_v47 = vmul.f32 %v1226_v59, %v3462_v36 }
 0x140   : > { %595 = vrot.lane.b32.xlu1 %v3521_v6, %s3132_s10  ;;  %v780_v6 = vmul.f32 %v3566_v2, %v3505_v54  ;;  %v945_v2 = vstv %s2786_s18  ;;  %s2798_s18 = sld [smem:[#allocation8 + $0x22]] }
 0x141   : > { %615 = vrot.lane.b32.xlu0 %v3524_v50, %s3131_s6  ;;  %v816_v50 = vmul.f32 %v814_v40, %v3372_v62  ;;  %v947_v3 = vmul.f32 %v945_v2, %v3372_v62  ;;  %v964_v40 = vstv %s2787_s7  ;;  %v948_v14 = vmul.f32 %v945_v2, %v3412_v15  ;;  %s2800_s7 = sld [smem:[#allocation8 + $0x24]] }
 0x142   : > { %v965_v12 = vmul.f32 %v964_v40, %v3395_v7  ;;  %v967_v41 = vmul.f32 %v964_v40, %v3415_v16  ;;  %v966_v48 = vmul.f32 %v964_v40, %v3462_v36 }
 0x144   : > { %635 = vrot.lane.b32.xlu1 %v628_v52, %s3134_s5  ;;  %v985_v52 = vmul.f32 %v983_v20, %v3478_v42 }
 0x145   : > { %655 = vrot.lane.b32.xlu0 %v3527_v11, %s3133_s23  ;;  %v835_v11 = vmul.f32 %v833_v25, %v3462_v36  ;;  %v946_v25 = vmul.f32 %v945_v2, %v3402_v9 }
 0x146   : > { %v1171_v18 = vstv %s2798_s18  ;;  %s2785_s18 = sld [smem:[#allocation8 + $0x15]] }
 0x147   : > { %v1174_v8 = vmul.f32 %v1171_v18, %v3515_v61  ;;  %v1207_v13 = vstv %s2800_s7  ;;  %s2792_s7 = sld [smem:[#allocation8 + $0x1c]] }
 0x148   : > { %692 = vrot.lane.b32.xlu1 %v685_v4, %s3130_s29  ;;  %v1210_v1 = vmul.f32 %v1207_v13, %v3412_v15 }
 0x149   : > { %711 = vrot.lane.b32.xlu0 %v704_v60, %s3129_s26  ;;  %v984_v60 = vmul.f32 %v983_v20, %v3432_v22 }
 0x14c   : > { %730 = vrot.lane.b32.xlu1 %v723_v37, %s3132_s10  ;;  %v1002_v37 = vstv %s2789_s9  ;;  %s2802_s9 = sld [smem:[#allocation8 + $0x26]] }
 0x14d   : > { %749 = vrot.lane.b32.xlu0 %v742_v51, %s3131_s6 }
 0x150   : > { %768 = vrot.lane.b32.xlu1 %v761_v53, %s3134_s5  ;;  %v1003_v53 = vmul.f32 %v1002_v37, %v3440_v26 }
 0x151   : > { %787 = vrot.lane.b32.xlu0 %v780_v6, %s3133_s23 }
 0x154   : > { %823 = vrot.lane.b32.xlu1 %v816_v50, %s3130_s29  ;;  %v986_v50 = vmul.f32 %v983_v20, %v3456_v33 }
 0x155   : > { %842 = vrot.lane.b32.xlu0 %v835_v11, %s3129_s26 }
 0x158   : > { %861 = vrot.lane.b32.xlu1 %v854_v17, %s3132_s10  ;;  %v1005_v17 = vmul.f32 %v1002_v37, %v3450_v30 }
 0x159   : > { %880 = vrot.lane.b32.xlu0 %v873_v21, %s3131_s6 }
 0x15c   : > { %899 = vrot.lane.b32.xlu1 %v892_v32, %s3134_s5  ;;  %v1004_v32 = vmul.f32 %v1002_v37, %v3481_v43 }
 0x15d   : > { %918 = vrot.lane.b32.xlu0 %v911_v35, %s3133_s23  ;;  %v1021_v35 = vstv %s2790_s17  ;;  %s251_s17 = sld [smem:[#allocation8]] }
 0x15e   : > { %v1022_v40 = vmul.f32 %v1021_v35, %v3485_v44  ;;  %v1024_v20 = vmul.f32 %v1021_v35, %v3512_v57 }
 0x160   : > { %954 = vrot.lane.b32.xlu1 %v947_v3, %s3130_s29  ;;  %v1023_v3 = vmul.f32 %v1021_v35, %v3610_v27 }
 0x161   : > { %952 = vrot.lane.b32.xlu0 %v946_v25, %s3130_s29 }
 0x164   : > { %971 = vrot.lane.b32.xlu1 %v965_v12, %s3129_s26  ;;  %v1040_v12 = vstv %s2791_s20  ;;  %s2803_s20 = sld [smem:[#allocation8 + $0x27]] }
 0x165   : > { %956 = vrot.lane.b32.xlu0 %v948_v14, %s3130_s29 }
 0x166   : > { %v3658_v28 = vpop.permute.xlu1 %573 }
 0x167   : > { %v3661_v46 = vpop.permute.xlu0 %553 }
 0x168   : > { %975 = vrot.lane.b32.xlu1 %v967_v41, %s3129_s26  ;;  %v1041_v41 = vmul.f32 %v1040_v12, %v3494_v49 }
 0x169   : > { %973 = vrot.lane.b32.xlu0 %v966_v48, %s3129_s26 }
 0x16a   : > { %v3666_v24 = vpop.permute.xlu1 %577 }
 0x16b   : > { %v3669_v4 = vpop.permute.xlu0 %557 }
 0x16c   : > { %992 = vrot.lane.b32.xlu1 %v985_v52, %s3132_s10 }
 0x16d   : > { %990 = vrot.lane.b32.xlu0 %v984_v60, %s3132_s10  ;;  %v1043_v60 = vmul.f32 %v1040_v12, %v3515_v61 }
 0x16e   : > { %v3674_v51 = vpop.permute.xlu1 %613 }
 0x16f   : > { %v3677_v6 = vpop.permute.xlu0 %593 }
 0x170   : > { %1009 = vrot.lane.b32.xlu1 %v1003_v53, %s3131_s6  ;;  %v1042_v53 = vmul.f32 %v1040_v12, %v3505_v54 }
 0x171   : > { %994 = vrot.lane.b32.xlu0 %v986_v50, %s3132_s10  ;;  %v1076_v50 = vstv %s2793_s22  ;;  %s3802_s22 = sld [smem:[#allocation8 + $0x7]] }
 0x172   : > { %v3682_v11 = vpop.permute.xlu1 %617 }
 0x173   : > { %v3685_v21 = vpop.permute.xlu0 %597 }
 0x174   : > { %1013 = vrot.lane.b32.xlu1 %v1005_v17, %s3131_s6 }
 0x175   : > { %1011 = vrot.lane.b32.xlu0 %v1004_v32, %s3131_s6  ;;  %v1078_v32 = vmul.f32 %v1076_v50, %v3372_v62 }
 0x176   : > { %v3690_v2 = vpop.permute.xlu1 %653 }
 0x177   : > { %v3693_v25 = vpop.permute.xlu0 %633 }
 0x178   : > { %1030 = vrot.lane.b32.xlu1 %v1023_v3, %s3134_s5  ;;  %v1077_v3 = vmul.f32 %v1076_v50, %v3402_v9 }
 0x179   : > { %1028 = vrot.lane.b32.xlu0 %v1022_v40, %s3134_s5  ;;  %v1095_v40 = vstv %s2794_s24  ;;  %s2804_s24 = sld [smem:[#allocation8 + $0x28]] }
 0x17a   : > { %v3698_v14 = vpop.permute.xlu1 %657  ;;  %v1098_v58 = vmul.f32 %v1095_v40, %v3415_v16 }
 0x17b   : > { %v3701_v48 = vpop.permute.xlu0 %637 }
 0x17c   : > { %1047 = vrot.lane.b32.xlu1 %v1041_v41, %s3133_s23  ;;  %v1096_v41 = vmul.f32 %v1095_v40, %v3395_v7 }
 0x17d   : > { %1032 = vrot.lane.b32.xlu0 %v1024_v20, %s3134_s5 }
 0x17e   : > { %v3706_v52 = vpop.permute.xlu1 %709 }
 0x17f   : > { %v3709_v37 = vpop.permute.xlu0 %690 }
 0x180   : > { %1051 = vrot.lane.b32.xlu1 %v1043_v60, %s3133_s23  ;;  %v1079_v60 = vmul.f32 %v1076_v50, %v3412_v15  ;;  %v1116_v50 = vmul.f32 %v1114_v56, %v3478_v42 }
 0x181   : > { %1049 = vrot.lane.b32.xlu0 %v1042_v53, %s3133_s23 }
 0x182   : > { %v3714_v17 = vpop.permute.xlu1 %713 }
 0x183   : > { %v3717_v35 = vpop.permute.xlu0 %694 }
 0x184   : > { %1085 = vrot.lane.b32.xlu1 %v1078_v32, %s3130_s29 }
 0x185   : > { %1083 = vrot.lane.b32.xlu0 %v1077_v3, %s3130_s29  ;;  %v1097_v3 = vmul.f32 %v1095_v40, %v3462_v36  ;;  %v1264_v36 = vstv %s2803_s20  ;;  %s2809_s20 = sld [smem:[#allocation8 + $0x2d]] }
 0x186   : > { %v3722_v12 = vpop.permute.xlu1 %747 }
 0x187   : > { %v3725_v20 = vpop.permute.xlu0 %728 }
 0x188   : > { %1102 = vrot.lane.b32.xlu1 %v1096_v41, %s3129_s26 }
 0x189   : > { %1087 = vrot.lane.b32.xlu0 %v1079_v60, %s3130_s29  ;;  %v1115_v60 = vmul.f32 %v1114_v56, %v3432_v22 }
 0x18a   : > { %v3730_v53 = vpop.permute.xlu1 %751 }
 0x18b   : > { %v3733_v32 = vpop.permute.xlu0 %732 }
 0x18c   : > { %1106 = vrot.lane.b32.xlu1 %v1098_v58, %s3129_s26  ;;  %v1134_v58 = vmul.f32 %v1133_v38, %v3440_v26 }
 0x18d   : > { %1104 = vrot.lane.b32.xlu0 %v1097_v3, %s3129_s26  ;;  %v1117_v3 = vmul.f32 %v1114_v56, %v3456_v33  ;;  %v1154_v56 = vmul.f32 %v1152_v34, %v3610_v27 }
 0x18e   : > { %v3738_v39 = vpop.permute.xlu1 %785 }
 0x18f   : > { %v3741_v41 = vpop.permute.xlu0 %766 }
 0x190   : > { %1123 = vrot.lane.b32.xlu1 %v1116_v50, %s3132_s10  ;;  %v1136_v50 = vmul.f32 %v1133_v38, %v3450_v30 }
 0x191   : > { %1121 = vrot.lane.b32.xlu0 %v1115_v60, %s3132_s10  ;;  %v1135_v60 = vmul.f32 %v1133_v38, %v3481_v43 }
 0x192   : > { %v3746_v40 = vpop.permute.xlu1 %789 }
 0x193   : > { %v3749_v45 = vpop.permute.xlu0 %770 }
 0x194   : > { %1140 = vrot.lane.b32.xlu1 %v1134_v58, %s3131_s6 }
 0x195   : > { %1125 = vrot.lane.b32.xlu0 %v1117_v3, %s3132_s10  ;;  %v1153_v3 = vmul.f32 %v1152_v34, %v3485_v44 }
 0x196   : > { %v3754_v31 = vpop.permute.xlu1 %840 }
 0x197   : > { %v3757_v29 = vpop.permute.xlu0 %821 }
 0x198   : > { %1144 = vrot.lane.b32.xlu1 %v1136_v50, %s3131_s6  ;;  %v1172_v50 = vmul.f32 %v1171_v18, %v3494_v49 }
 0x199   : > { %1142 = vrot.lane.b32.xlu0 %v1135_v60, %s3131_s6  ;;  %v1155_v60 = vmul.f32 %v1152_v34, %v3512_v57  ;;  %v1209_v34 = vmul.f32 %v1207_v13, %v3372_v62 }
 0x19a   : > { %v3762_v19 = vpop.permute.xlu1 %844 }
 0x19b   : > { %v3765_v58 = vpop.permute.xlu0 %825 }
 0x19c   : > { %1161 = vrot.lane.b32.xlu1 %v1154_v56, %s3134_s5 }
 0x19d   : > { %1159 = vrot.lane.b32.xlu0 %v1153_v3, %s3134_s5  ;;  %v1173_v3 = vmul.f32 %v1171_v18, %v3505_v54 }
 0x19e   : > { %v3770_v38 = vpop.permute.xlu1 %878 }
 0x19f   : > { %v3773_v23 = vpop.permute.xlu0 %859 }
 0x1a0   : > { %1178 = vrot.lane.b32.xlu1 %v1172_v50, %s3133_s23 }
 0x1a1   : > { %1163 = vrot.lane.b32.xlu0 %v1155_v60, %s3134_s5  ;;  %v1208_v60 = vmul.f32 %v1207_v13, %v3402_v9  ;;  %v1245_v9 = vstv %s2802_s9  ;;  %v543_v13 = vstv %s251_s17  ;;  %s2807_s9 = sld [smem:[#allocation8 + $0x2b]]  ;;  %s2808_s17 = sld [smem:[#allocation8 + $0x2c]] }
 0x1a2   : > { %v3778_v10 = vpop.permute.xlu1 %882  ;;  %v544_v62 = vmul.f32 %v543_v13, %v3389_v5 }
 0x1a3   : > { %v3781_v56 = vpop.permute.xlu0 %863 }
 0x1a4   : > { %1182 = vrot.lane.b32.xlu1 %v1174_v8, %s3133_s23  ;;  %v1227_v8 = vmul.f32 %v1226_v59, %v3395_v7 }
 0x1a5   : > { %1180 = vrot.lane.b32.xlu0 %v1173_v3, %s3133_s23 }
 0x1a6   : > { %v3786_v0 = vpop.permute.xlu1 %916 }
 0x1a7   : > { %v3789_v50 = vpop.permute.xlu0 %897 }
 0x1a8   : > { %1216 = vrot.lane.b32.xlu1 %v1209_v34, %s3130_s29  ;;  %v1229_v34 = vmul.f32 %v1226_v59, %v3415_v16  ;;  %v1246_v59 = vmul.f32 %v1245_v9, %v3432_v22  ;;  %v1248_v22 = vmul.f32 %v1245_v9, %v3456_v33  ;;  %v1266_v33 = vmul.f32 %v1264_v36, %v3481_v43 }
 0x1a9   : > { %1214 = vrot.lane.b32.xlu0 %v1208_v60, %s3130_s29 }
 0x1aa   : > { %v3794_v18 = vpop.permute.xlu1 %920 }
 0x1ab   : > { %4941 = vst [vmem:[#allocation45_spill] sm:$0xff] %v3794_v18  ;;  %v3797_v3 = vpop.permute.xlu0 %901 }
 0x1ac   : > { %1233 = vrot.lane.b32.xlu1 %v1227_v8, %s3129_s26 }
 0x1ad   : > { %1218 = vrot.lane.b32.xlu0 %v1210_v1, %s3130_s29  ;;  %v1247_v1 = vmul.f32 %v1245_v9, %v3478_v42 }
 0x1ae   : > { %v556_v55 = vpop.permute.xlu1 %555 }
 0x1af   : > { %v576_v60 = vpop.permute.xlu0 %575  ;;  %v560_v15 = vsel %vm559_vm8, %v3661_v46, %v556_v55  ;;  %v561_v16 = vsel %vm559_vm8, %v556_v55, %v3669_v4  ;;  %v1265_v55 = vmul.f32 %v1264_v36, %v3440_v26 }
 0x1b0   : > { %1237 = vrot.lane.b32.xlu1 %v1229_v34, %s3129_s26  ;;  %v545_v34 = vmul.f32 %v543_v13, %v3375_v63  ;;  %v564_v42 = vadd.f32 %v560_v15, %v544_v62  ;;  %v3830_v13 = vstv %s2804_s24  ;;  %v580_v62 = vsel %vm579_vm9, %v3658_v28, %v576_v60  ;;  %s2811_s24 = sld [smem:[#allocation8 + $0x2f]] }
 0x1b1   : > { %1235 = vrot.lane.b32.xlu0 %v1228_v47, %s3129_s26  ;;  %v680_v47 = vstv %s3802_s22  ;;  %v581_v15 = vsel %vm579_vm9, %v576_v60, %v3666_v24  ;;  %s2810_s22 = sld [smem:[#allocation8 + $0x2e]] }
 0x1b2   : > { %v596_v8 = vpop.permute.xlu1 %595  ;;  %v565_v18 = vadd.f32 %v561_v16, %v545_v34  ;;  %v682_v16 = vmul.f32 %v680_v47, %v3375_v63  ;;  %v584_v9 = vadd.f32 %v580_v62, %v564_v42 }
 0x1b3   : > { %v3813_v7 = vpop.permute.xlu0 %615  ;;  %v600_v28 = vsel %vm599_vm10, %v3677_v6, %v596_v8  ;;  %v601_v24 = vsel %vm599_vm10, %v596_v8, %v3685_v21 }
 0x1b4   : > { %1254 = vrot.lane.b32.xlu1 %v1247_v1, %s3132_s10  ;;  %v681_v1 = vmul.f32 %v680_v47, %v3389_v5  ;;  %v604_v21 = vadd.f32 %v600_v28, %v584_v9 }
 0x1b5   : > { %1252 = vrot.lane.b32.xlu0 %v1246_v59, %s3132_s10  ;;  %v585_v59 = vadd.f32 %v581_v15, %v565_v18  ;;  %v4942_v15 = vmov 0.0  }
 0x1b6   : > { %v3821_v46 = vpop.permute.xlu1 %635  ;;  %223 = vst.msk [vmem:[#allocation3] sm:$0xff] %vm222_vm12, %v4942_v15  ;;  %224 = vst.msk [vmem:[#allocation3 + $0x18] sm:$0xff] %vm222_vm12, %v4942_v15 }
 0x1b7   : > { %v3824_v4 = vpop.permute.xlu0 %655  ;;  %225 = vst.msk [vmem:[#allocation3 + $0x30] sm:$0xff] %vm222_vm12, %v4942_v15  ;;  %226 = vst.msk [vmem:[#allocation3 + $0x48] sm:$0xff] %vm222_vm12, %v4942_v15 }
 0x1b8   : > { %1271 = vrot.lane.b32.xlu1 %v1265_v55, %s3131_s6  ;;  %v1267_v55 = vmul.f32 %v1264_v36, %v3450_v30  ;;  %v1285_v36 = vmul.f32 %v3830_v13, %v3610_v27  ;;  %227 = vst.msk [vmem:[#allocation3 + $0x60] sm:$0xff] %vm222_vm12, %v4942_v15  ;;  %228 = vst.msk [vmem:[#allocation3 + $0x78] sm:$0xff] %vm222_vm12, %v4942_v15 }
 0x1b9   : > { %1256 = vrot.lane.b32.xlu0 %v1248_v22, %s3132_s10  ;;  %229 = vst.msk [vmem:[#allocation3 + $0x90] sm:$0xff] %vm222_vm12, %v4942_v15 }
 0x1ba   : > { %v693_v34 = vpop.permute.xlu1 %692  ;;  %232 = vst.msk [vmem:[#allocation3 + $0x28] sm:$0xff] %vm230_vm13, %v4942_v15  ;;  %233 = vst.msk [vmem:[#allocation3 + $0x40] sm:$0xff] %vm230_vm13, %v4942_v15 }
 0x1bb   : > { %v696_v22 = vsel %vm559_vm8, %v3709_v37, %v693_v34  ;;  %v697_v60 = vsel %vm559_vm8, %v693_v34, %v3717_v35  ;;  %v712_v47 = vpop.permute.xlu0 %711  ;;  %v605_v37 = vadd.f32 %v601_v24, %v585_v59  ;;  %234 = vst.msk [vmem:[#allocation3 + $0x58] sm:$0xff] %vm230_vm13, %v4942_v15  ;;  %235 = vst.msk [vmem:[#allocation3 + $0x70] sm:$0xff] %vm230_vm13, %v4942_v15 }
 0x1bc   : > { %v700_v42 = vadd.f32 %v696_v22, %v681_v1  ;;  %v701_v18 = vadd.f32 %v697_v60, %v682_v16  ;;  %1275 = vrot.lane.b32.xlu1 %v1267_v55, %s3131_s6  ;;  %v716_v6 = vsel %vm579_vm9, %v712_v47, %v3714_v17  ;;  %v715_v35 = vsel %vm579_vm9, %v3706_v52, %v712_v47 }
 0x1bd   : > { %1273 = vrot.lane.b32.xlu0 %v1266_v33, %s3131_s6  ;;  %236 = vst.msk [vmem:[#allocation3 + $0x88] sm:$0xff] %vm230_vm13, %v4942_v15  ;;  %237 = vst.msk [vmem:[#allocation3 + $0xa0] sm:$0xff] %vm230_vm13, %v4942_v15  ;;  %v1284_v16 = vmul.f32 %v3830_v13, %v3485_v44  ;;  %v1302_v1 = vstv %s3827_s25  ;;  %v620_v59 = vsel %vm619_vm11, %v3674_v51, %v3813_v7  ;;  %s2812_s25 = sld [smem:[#allocation8 + $0x30]] }
 0x1be   : > { %v720_v8 = vadd.f32 %v716_v6, %v701_v18  ;;  %v731_v62 = vpop.permute.xlu1 %730  ;;  %v719_v33 = vadd.f32 %v715_v35, %v700_v42  ;;  %v621_v34 = vsel %vm619_vm11, %v3813_v7, %v3682_v11  ;;  %v624_v55 = vadd.f32 %v620_v59, %v604_v21 }
 0x1bf   : > { %v735_v52 = vsel %vm599_vm10, %v731_v62, %v3733_v32  ;;  %v750_v17 = vpop.permute.xlu0 %749  ;;  %v734_v9 = vsel %vm599_vm10, %v3725_v20, %v731_v62  ;;  %v811_v32 = vstv %s3839_s30  ;;  %v625_v28 = vadd.f32 %v621_v34, %v605_v37  ;;  %s2806_s30 = sld [smem:[#allocation8 + $0x2a]] }
 0x1c0   : > { %1292 = vrot.lane.b32.xlu1 %v1285_v36, %s3134_s5  ;;  %v739_v24 = vadd.f32 %v735_v52, %v720_v8  ;;  %v1303_v60 = vmul.f32 %v1302_v1, %v3494_v49  ;;  %v640_v20 = vsel %vm639_vm14, %v3693_v25, %v3821_v46  ;;  %v641_v51 = vsel %vm639_vm14, %v3821_v46, %v3701_v48 }
 0x1c1   : > { %1290 = vrot.lane.b32.xlu0 %v1284_v16, %s3134_s5  ;;  %v738_v47 = vadd.f32 %v734_v9, %v719_v33  ;;  %v1286_v7 = vmul.f32 %v3830_v13, %v3512_v57  ;;  %v813_v11 = vmul.f32 %v811_v32, %v3375_v63  ;;  %v812_v18 = vmul.f32 %v811_v32, %v3389_v5 }
 0x1c2   : > { %v769_v22 = vpop.permute.xlu1 %768  ;;  %v754_v36 = vsel %vm619_vm11, %v750_v17, %v3730_v53  ;;  %v1305_v25 = vmul.f32 %v1302_v1, %v3515_v61  ;;  %v1304_v48 = vmul.f32 %v1302_v1, %v3505_v54  ;;  %v644_v46 = vadd.f32 %v640_v20, %v624_v55 }
 0x1c3   : > { %v788_v42 = vpop.permute.xlu0 %787  ;;  %v645_v6 = vadd.f32 %v641_v51, %v625_v28  ;;  %v753_v13 = vsel %vm619_vm11, %v3722_v12, %v750_v17  ;;  %v758_v21 = vadd.f32 %v754_v36, %v739_v24  ;;  %v773_v8 = vsel %vm639_vm14, %v769_v22, %v3749_v45 }
 0x1c4   : > { %1309 = vrot.lane.b32.xlu1 %v1303_v60, %s3133_s23  ;;  %v757_v35 = vadd.f32 %v753_v13, %v738_v47  ;;  %v772_v33 = vsel %vm639_vm14, %v3741_v41, %v769_v22  ;;  %v660_v12 = vsel %vm659_vm15, %v3690_v2, %v3824_v4  ;;  %v661_v45 = vsel %vm659_vm15, %v3824_v4, %v3698_v14 }
 0x1c5   : > { %1294 = vrot.lane.b32.xlu0 %v1286_v7, %s3134_s5  ;;  %v665_v41 = vadd.f32 %v661_v45, %v645_v6  ;;  %v777_v17 = vadd.f32 %v773_v8, %v758_v21  ;;  %v664_v34 = vadd.f32 %v660_v12, %v644_v46 }
 0x1c6   : > { %v824_v37 = vpop.permute.xlu1 %823  ;;  %v776_v32 = vadd.f32 %v772_v33, %v757_v35  ;;  %v942_v35 = vstv %s2785_s18  ;;  %s2814_s18 = sld [smem:[#allocation8 + $0x32]] }
 0x1c7   : > { %v827_v53 = vsel %vm559_vm8, %v3757_v29, %v824_v37  ;;  %v828_v62 = vsel %vm559_vm8, %v824_v37, %v3765_v58  ;;  %v843_v15 = vpop.permute.xlu0 %842  ;;  %v943_v33 = vmul.f32 %v942_v35, %v3389_v5 }
 0x1c8   : > { %v831_v52 = vadd.f32 %v827_v53, %v812_v18  ;;  %v832_v16 = vadd.f32 %v828_v62, %v813_v11  ;;  %1313 = vrot.lane.b32.xlu1 %v1305_v25, %s3133_s23  ;;  %v846_v29 = vsel %vm579_vm9, %v3754_v31, %v843_v15  ;;  %v847_v58 = vsel %vm579_vm9, %v843_v15, %v3762_v19 }
 0x1c9   : > { %1311 = vrot.lane.b32.xlu0 %v1304_v48, %s3133_s23  ;;  %v792_v19 = vsel %vm659_vm15, %v788_v42, %v3746_v40 }
 0x1ca   : > { %v850_v1 = vadd.f32 %v846_v29, %v831_v52  ;;  %v851_v9 = vadd.f32 %v847_v58, %v832_v16  ;;  %v862_v59 = vpop.permute.xlu1 %861  ;;  %v944_v52 = vmul.f32 %v942_v35, %v3375_v63 }
 0x1cb   : > { %v865_v2 = vsel %vm599_vm10, %v3773_v23, %v862_v59  ;;  %v866_v14 = vsel %vm599_vm10, %v862_v59, %v3781_v56  ;;  %v881_v4 = vpop.permute.xlu0 %880  ;;  %v791_v23 = vsel %vm659_vm15, %v3738_v39, %v788_v42  ;;  %v796_v56 = vadd.f32 %v792_v19, %v777_v17  ;;  %v4943_v39 = vld [vmem:[#allocation45_spill] sm:$0xff] }
 0x1cc   : > { %v869_v31 = vadd.f32 %v865_v2, %v850_v1  ;;  %v870_v55 = vadd.f32 %v866_v14, %v851_v9  ;;  %670 = vrot.lane.b32.xlu1 %v665_v41, %s3135_s11  ;;  %v884_v28 = vsel %vm619_vm11, %v3770_v38, %v881_v4  ;;  %v885_v24 = vsel %vm619_vm11, %v881_v4, %v3778_v10 }
 0x1cd   : > { %668 = vrot.lane.b32.xlu0 %v664_v34, %s3135_s11  ;;  %v795_v51 = vadd.f32 %v791_v23, %v776_v32 }
 0x1ce   : > { %v888_v22 = vadd.f32 %v884_v28, %v869_v31  ;;  %v889_v60 = vadd.f32 %v885_v24, %v870_v55  ;;  %v900_v20 = vpop.permute.xlu1 %899 }
 0x1cf   : > { %v903_v47 = vsel %vm639_vm14, %v3789_v50, %v900_v20  ;;  %v904_v40 = vsel %vm639_vm14, %v900_v20, %v3797_v3  ;;  %v919_v38 = vpop.permute.xlu0 %918 }
 0x1d0   : > { %v907_v7 = vadd.f32 %v903_v47, %v888_v22  ;;  %v908_v11 = vadd.f32 %v904_v40, %v889_v60  ;;  %801 = vrot.lane.b32.xlu1 %v796_v56, %s3135_s11  ;;  %v922_v10 = vsel %vm659_vm15, %v3786_v0, %v919_v38  ;;  %v923_v42 = vsel %vm659_vm15, %v919_v38, %v4943_v39 }
 0x1d1   : > { %799 = vrot.lane.b32.xlu0 %v795_v51, %s3135_s11 }
 0x1d2   : > { %v926_v18 = vadd.f32 %v922_v10, %v907_v7  ;;  %v927_v36 = vadd.f32 %v923_v42, %v908_v11  ;;  %v955_v25 = vpop.permute.xlu1 %954 }
 0x1d3   : > { %v953_v50 = vpop.permute.xlu0 %952 }
 0x1d4   : > { %932 = vrot.lane.b32.xlu1 %v927_v36, %s3135_s11  ;;  %v958_v62 = vsel %vm559_vm8, %v953_v50, %v955_v25 }
 0x1d5   : > { %930 = vrot.lane.b32.xlu0 %v926_v18, %s3135_s11  ;;  %v962_v29 = vadd.f32 %v958_v62, %v943_v33 }
 0x1d6   : > { %v972_v3 = vpop.permute.xlu1 %971 }
 0x1d7   : > { %v957_v48 = vpop.permute.xlu0 %956 }
 0x1d8   : > { %v959_v15 = vsel %vm559_vm8, %v955_v25, %v957_v48 }
 0x1d9   : > { %v963_v58 = vadd.f32 %v959_v15, %v944_v52 }
 0x1da   : > { %v976_v46 = vpop.permute.xlu1 %975 }
 0x1db   : > { %v974_v6 = vpop.permute.xlu0 %973 }
 0x1dc   : > { %v977_v16 = vsel %vm579_vm9, %v972_v3, %v974_v6  ;;  %v978_v12 = vsel %vm579_vm9, %v974_v6, %v976_v46  ;;  %v1073_v3 = vstv %s2792_s7  ;;  %s2815_s7 = sld [smem:[#allocation8 + $0x33]] }
 0x1dd   : > { %v981_v9 = vadd.f32 %v977_v16, %v962_v29  ;;  %v982_v59 = vadd.f32 %v978_v12, %v963_v58 }
 0x1de   : > { %v993_v13 = vpop.permute.xlu1 %992 }
 0x1df   : > { %v991_v0 = vpop.permute.xlu0 %990 }
 0x1e0   : > { %v996_v17 = vsel %vm599_vm10, %v991_v0, %v993_v13  ;;  %v1074_v0 = vmul.f32 %v1073_v3, %v3389_v5 }
 0x1e1   : > { %v1000_v14 = vadd.f32 %v996_v17, %v981_v9 }
 0x1e2   : > { %v1010_v21 = vpop.permute.xlu1 %1009 }
 0x1e3   : > { %v995_v37 = vpop.permute.xlu0 %994 }
 0x1e4   : > { %v997_v1 = vsel %vm599_vm10, %v993_v13, %v995_v37 }
 0x1e5   : > { %v1001_v4 = vadd.f32 %v997_v1, %v982_v59 }
 0x1e6   : > { %v1014_v8 = vpop.permute.xlu1 %1013 }
 0x1e7   : > { %v1012_v53 = vpop.permute.xlu0 %1011 }
 0x1e8   : > { %v1015_v34 = vsel %vm619_vm11, %v1010_v21, %v1012_v53  ;;  %v1016_v32 = vsel %vm619_vm11, %v1012_v53, %v1014_v8  ;;  %v1075_v21 = vmul.f32 %v1073_v3, %v3375_v63 }
 0x1e9   : > { %v1019_v28 = vadd.f32 %v1015_v34, %v1000_v14  ;;  %v1020_v24 = vadd.f32 %v1016_v32, %v1001_v4 }
 0x1ea   : > { %v1031_v45 = vpop.permute.xlu1 %1030 }
 0x1eb   : > { %v1029_v41 = vpop.permute.xlu0 %1028 }
 0x1ec   : > { %v1034_v55 = vsel %vm639_vm14, %v1029_v41, %v1031_v45 }
 0x1ed   : > { %v1038_v56 = vadd.f32 %v1034_v55, %v1019_v28 }
 0x1ee   : > { %v1048_v2 = vpop.permute.xlu1 %1047 }
 0x1ef   : > { %v1033_v31 = vpop.permute.xlu0 %1032 }
 0x1f0   : > { %v1035_v19 = vsel %vm639_vm14, %v1031_v45, %v1033_v31 }
 0x1f1   : > { %v1039_v22 = vadd.f32 %v1035_v19, %v1020_v24 }
 0x1f2   : > { %v1052_v23 = vpop.permute.xlu1 %1051 }
 0x1f3   : > { %v1050_v60 = vpop.permute.xlu0 %1049 }
 0x1f4   : > { %v1053_v20 = vsel %vm659_vm15, %v1048_v2, %v1050_v60  ;;  %v1054_v51 = vsel %vm659_vm15, %v1050_v60, %v1052_v23 }
 0x1f5   : > { %v1057_v47 = vadd.f32 %v1053_v20, %v1038_v56  ;;  %v1058_v40 = vadd.f32 %v1054_v51, %v1039_v22 }
 0x1f6   : > { %v1086_v38 = vpop.permute.xlu1 %1085 }
 0x1f7   : > { %1063 = vrot.lane.b32.xlu1 %v1058_v40, %s3135_s11  ;;  %v1084_v7 = vpop.permute.xlu0 %1083  ;;  %1061 = vrot.lane.b32.xlu0 %v1057_v47, %s3135_s11 }
 0x1f8   : > { %v1089_v6 = vsel %vm559_vm8, %v1084_v7, %v1086_v38 }
 0x1f9   : > { %v1093_v53 = vadd.f32 %v1089_v6, %v1074_v0 }
 0x1fa   : > { %v1103_v11 = vpop.permute.xlu1 %1102 }
 0x1fb   : > { %v1088_v10 = vpop.permute.xlu0 %1087 }
 0x1fc   : > { %v1090_v13 = vsel %vm559_vm8, %v1086_v38, %v1088_v10 }
 0x1fd   : > { %v1094_v62 = vadd.f32 %v1090_v13, %v1075_v21 }
 0x1fe   : > { %v1107_v39 = vpop.permute.xlu1 %1106 }
 0x1ff   : > { %v1105_v42 = vpop.permute.xlu0 %1104 }
 0x200   : > { %v1108_v37 = vsel %vm579_vm9, %v1103_v11, %v1105_v42  ;;  %v1109_v35 = vsel %vm579_vm9, %v1105_v42, %v1107_v39  ;;  %v1204_v11 = vstv %s2799_s8  ;;  %s2816_s8 = sld [smem:[#allocation8 + $0x34]] }
 0x201   : > { %v1112_v16 = vadd.f32 %v1108_v37, %v1093_v53  ;;  %v1113_v12 = vadd.f32 %v1109_v35, %v1094_v62 }
 0x202   : > { %v1124_v18 = vpop.permute.xlu1 %1123 }
 0x203   : > { %v1122_v36 = vpop.permute.xlu0 %1121 }
 0x204   : > { %v1127_v33 = vsel %vm599_vm10, %v1122_v36, %v1124_v18  ;;  %v1205_v36 = vmul.f32 %v1204_v11, %v3389_v5 }
 0x205   : > { %v1131_v41 = vadd.f32 %v1127_v33, %v1112_v16 }
 0x206   : > { %v1141_v25 = vpop.permute.xlu1 %1140 }
 0x207   : > { %v1126_v50 = vpop.permute.xlu0 %1125 }
 0x208   : > { %v1128_v52 = vsel %vm599_vm10, %v1124_v18, %v1126_v50 }
 0x209   : > { %v1132_v17 = vadd.f32 %v1128_v52, %v1113_v12 }
 0x20a   : > { %v1145_v48 = vpop.permute.xlu1 %1144 }
 0x20b   : > { %v1143_v46 = vpop.permute.xlu0 %1142 }
 0x20c   : > { %v1146_v45 = vsel %vm619_vm11, %v1141_v25, %v1143_v46  ;;  %v1147_v29 = vsel %vm619_vm11, %v1143_v46, %v1145_v48  ;;  %v1206_v25 = vmul.f32 %v1204_v11, %v3375_v63  ;;  %v4949_v11 = vld [vmem:[#allocation39_spill] sm:$0xff] }
 0x20d   : > { %v1150_v34 = vadd.f32 %v1146_v45, %v1131_v41  ;;  %v1151_v32 = vadd.f32 %v1147_v29, %v1132_v17 }
 0x20e   : > { %v1162_v8 = vpop.permute.xlu1 %1161 }
 0x20f   : > { %v1160_v15 = vpop.permute.xlu0 %1159 }
 0x210   : > { %v1165_v9 = vsel %vm639_vm14, %v1160_v15, %v1162_v8 }
 0x211   : > { %v1169_v14 = vadd.f32 %v1165_v9, %v1150_v34 }
 0x212   : > { %v1179_v58 = vpop.permute.xlu1 %1178 }
 0x213   : > { %v1164_v1 = vpop.permute.xlu0 %1163 }
 0x214   : > { %v1166_v59 = vsel %vm639_vm14, %v1162_v8, %v1164_v1 }
 0x215   : > { %v1170_v4 = vadd.f32 %v1166_v59, %v1151_v32 }
 0x216   : > { %v1183_v2 = vpop.permute.xlu1 %1182 }
 0x217   : > { %v1181_v31 = vpop.permute.xlu0 %1180 }
 0x218   : > { %v1184_v55 = vsel %vm659_vm15, %v1179_v58, %v1181_v31  ;;  %v1185_v19 = vsel %vm659_vm15, %v1181_v31, %v1183_v2  ;;  %v4944_v31 = vld [vmem:[#allocation21_spill] sm:$0xff] }
 0x219   : > { %v1188_v28 = vadd.f32 %v1184_v55, %v1169_v14  ;;  %v1189_v24 = vadd.f32 %v1185_v19, %v1170_v4  ;;  %v1338_v14 = vstv %s2807_s9  ;;  %v4945_v19 = vld [vmem:[#allocation26_spill] sm:$0xff]  ;;  %s2817_s9 = sld [smem:[#allocation8 + $0x35]] }
 0x21a   : > { %v1217_v23 = vpop.permute.xlu1 %1216  ;;  %v1340_v55 = vmul.f32 %v1338_v14, %v4944_v31 }
 0x21b   : > { %1194 = vrot.lane.b32.xlu1 %v1189_v24, %s3135_s11  ;;  %v1215_v56 = vpop.permute.xlu0 %1214  ;;  %1192 = vrot.lane.b32.xlu0 %v1188_v28, %s3135_s11  ;;  %v1339_v28 = vmul.f32 %v1338_v14, %v4945_v19 }
 0x21c   : > { %v1220_v42 = vsel %vm559_vm8, %v1215_v56, %v1217_v23 }
 0x21d   : > { %v1224_v46 = vadd.f32 %v1220_v42, %v1205_v36  ;;  %v4950_v42 = vld [vmem:[#allocation42_spill] sm:$0xff]  ;;  %v4951_v36 = vld [vmem:[#allocation33_spill] sm:$0xff] }
 0x21e   : > { %v1234_v22 = vpop.permute.xlu1 %1233 }
 0x21f   : > { %v1219_v60 = vpop.permute.xlu0 %1218 }
 0x220   : > { %v1221_v18 = vsel %vm559_vm8, %v1217_v23, %v1219_v60  ;;  %v1357_v23 = vstv %s2808_s17  ;;  %s2818_s17 = sld [smem:[#allocation8 + $0x36]] }
 0x221   : > { %v1225_v6 = vadd.f32 %v1221_v18, %v1206_v25 }
 0x222   : > { %v1238_v20 = vpop.permute.xlu1 %1237 }
 0x223   : > { %v1236_v51 = vpop.permute.xlu0 %1235 }
 0x224   : > { %v1239_v50 = vsel %vm579_vm9, %v1234_v22, %v1236_v51  ;;  %v1240_v3 = vsel %vm579_vm9, %v1236_v51, %v1238_v20  ;;  %v4946_v22 = vld [vmem:[#allocation24_spill] sm:$0xff]  ;;  %v4947_v20 = vld [vmem:[#allocation29_spill] sm:$0xff] }
 0x225   : > { %v1243_v37 = vadd.f32 %v1239_v50, %v1224_v46  ;;  %v1244_v35 = vadd.f32 %v1240_v3, %v1225_v6  ;;  %v1358_v60 = vmul.f32 %v1357_v23, %v4946_v22  ;;  %v1341_v51 = vmul.f32 %v1338_v14, %v4947_v20 }
 0x226   : > { %v1255_v47 = vpop.permute.xlu1 %1254  ;;  %v1395_v50 = vstv %s2810_s22  ;;  %s2813_s22 = sld [smem:[#allocation8 + $0x31]] }
 0x227   : > { %v1253_v40 = vpop.permute.xlu0 %1252  ;;  %v1396_v3 = vmul.f32 %v1395_v50, %v3440_v26  ;;  %v1398_v6 = vmul.f32 %v1395_v50, %v3450_v30 }
 0x228   : > { %v1258_v0 = vsel %vm599_vm10, %v1253_v40, %v1255_v47 }
 0x229   : > { %v1262_v15 = vadd.f32 %v1258_v0, %v1243_v37  ;;  %v1414_v0 = vstv %s2811_s24  ;;  %v1433_v37 = vstv %s2812_s25  ;;  %s2821_s24 = sld [smem:[#allocation8 + $0x39]]  ;;  %s3136_s25 = smov 96  }
 0x22a   : > { %v1272_v38 = vpop.permute.xlu1 %1271  ;;  %v1415_v26 = vmul.f32 %v1414_v0, %v3485_v44  ;;  %v1417_v30 = vmul.f32 %v1414_v0, %v3512_v57 }
 0x22b   : > { %v1257_v7 = vpop.permute.xlu0 %1256 }
 0x22c   : > { %v1259_v21 = vsel %vm599_vm10, %v1255_v47, %v1257_v7 }
 0x22d   : > { %v1263_v33 = vadd.f32 %v1259_v21, %v1244_v35  ;;  %v1416_v21 = vmul.f32 %v1414_v0, %v3610_v27  ;;  %v1434_v35 = vmul.f32 %v1433_v37, %v3494_v49  ;;  %v4953_v0 = vld [vmem:[#allocation16_spill] sm:$0xff] }
 0x22e   : > { %v1276_v10 = vpop.permute.xlu1 %1275 }
 0x22f   : > { %v1274_v39 = vpop.permute.xlu0 %1273 }
 0x230   : > { %v1277_v8 = vsel %vm619_vm11, %v1272_v38, %v1274_v39  ;;  %v1278_v53 = vsel %vm619_vm11, %v1274_v39, %v1276_v10  ;;  %v4948_v38 = vld [vmem:[#allocation30_spill] sm:$0xff]  ;;  %v1359_v10 = vmul.f32 %v1357_v23, %v4949_v11  ;;  %v1376_v39 = vstv %s2809_s20  ;;  %s2819_s20 = sld [smem:[#allocation8 + $0x37]] }
 0x231   : > { %v1281_v45 = vadd.f32 %v1277_v8, %v1262_v15  ;;  %v1282_v29 = vadd.f32 %v1278_v53, %v1263_v33  ;;  %v1360_v7 = vmul.f32 %v1357_v23, %v4948_v38  ;;  %v1378_v18 = vmul.f32 %v1376_v39, %v4950_v42 }
 0x232   : > { %v1293_v48 = vpop.permute.xlu1 %1292  ;;  %v1377_v25 = vmul.f32 %v1376_v39, %v4951_v36  ;;  %v1435_v8 = vmul.f32 %v1433_v37, %v3505_v54 }
 0x233   : > { %v1291_v13 = vpop.permute.xlu0 %1290 }
 0x234   : > { %v1296_v16 = vsel %vm639_vm14, %v1291_v13, %v1293_v48  ;;  %v1397_v13 = vmul.f32 %v1395_v50, %v3481_v43  ;;  %v1436_v43 = vmul.f32 %v1433_v37, %v3515_v61 }
 0x235   : > { %v1300_v41 = vadd.f32 %v1296_v16, %v1281_v45 }
 0x236   : > { %v1310_v62 = vpop.permute.xlu1 %1309 }
 0x237   : > { %v1295_v52 = vpop.permute.xlu0 %1294 }
 0x238   : > { %v1297_v12 = vsel %vm639_vm14, %v1293_v48, %v1295_v52  ;;  %v4952_v48 = vld [vmem:[#allocation37_spill] sm:$0xff] }
 0x239   : > { %v1301_v17 = vadd.f32 %v1297_v12, %v1282_v29  ;;  %v1379_v46 = vmul.f32 %v1376_v39, %v4952_v48 }
 0x23a   : > { %v1314_v58 = vpop.permute.xlu1 %1313 }
 0x23b   : > { %v1312_v1 = vpop.permute.xlu0 %1311 }
 0x23c   : > { %v1315_v9 = vsel %vm659_vm15, %v1310_v62, %v1312_v1  ;;  %v1316_v59 = vsel %vm659_vm15, %v1312_v1, %v1314_v58 }
 0x23d   : > { %v1319_v34 = vadd.f32 %v1315_v9, %v1300_v41  ;;  %v1320_v32 = vadd.f32 %v1316_v59, %v1301_v17  ;;  %v1335_v41 = vstv %s2806_s30  ;;  %s3137_s30 = smov 112  }
 0x23e   : > { %v4012_v2 = vpop.permute.xlu1 %670 }
 0x23f   : > { %1325 = vrot.lane.b32.xlu1 %v1320_v32, %s3135_s11  ;;  %1323 = vrot.lane.b32.xlu0 %v1319_v34, %s3135_s11  ;;  %v4016_v4 = vpop.permute.xlu0 %668  ;;  %v1336_v34 = vmul.f32 %v1335_v41, %v3389_v5  ;;  %v1337_v32 = vmul.f32 %v1335_v41, %v3375_v63  ;;  %v4958_v41 = vld [vmem:[#allocation28_spill] sm:$0xff] }
 0x240   : > { %677 = vst.msk [vmem:[#allocation3] sm:$0xff] %vm676_vm0, %v4016_v4 }
 0x242   : > { %v4022_v24 = vpop.permute.xlu1 %801 }
 0x243   : > { %810 = vst.msk [vmem:[#allocation3 + $0x28] sm:$0xff] %vm222_vm12, %v4022_v24  ;;  %1347 = vrot.lane.b32.xlu1 %v1340_v55, %s3130_s29  ;;  %1345 = vrot.lane.b32.xlu0 %v1339_v28, %s3130_s29  ;;  %v4028_v56 = vpop.permute.xlu0 %799 }
 0x244   : > { %808 = vst.msk [vmem:[#allocation3 + $0x18] sm:$0xff] %vm676_vm0, %v4028_v56 }
 0x246   : > { %v4034_v47 = vpop.permute.xlu1 %932 }
 0x247   : > { %941 = vst.msk [vmem:[#allocation3 + $0x40] sm:$0xff] %vm222_vm12, %v4034_v47  ;;  %1364 = vrot.lane.b32.xlu1 %v1358_v60, %s3129_s26  ;;  %1349 = vrot.lane.b32.xlu0 %v1341_v51, %s3130_s29  ;;  %v4040_v40 = vpop.permute.xlu0 %930 }
 0x248   : > { %939 = vst.msk [vmem:[#allocation3 + $0x30] sm:$0xff] %vm676_vm0, %v4040_v40 }
 0x24b   : > { %1368 = vrot.lane.b32.xlu1 %v1360_v7, %s3129_s26  ;;  %1366 = vrot.lane.b32.xlu0 %v1359_v10, %s3129_s26 }
 0x24f   : > { %1385 = vrot.lane.b32.xlu1 %v1378_v18, %s3132_s10  ;;  %1383 = vrot.lane.b32.xlu0 %v1377_v25, %s3132_s10 }
 0x253   : > { %1402 = vrot.lane.b32.xlu1 %v1396_v3, %s3131_s6  ;;  %1387 = vrot.lane.b32.xlu0 %v1379_v46, %s3132_s10 }
 0x257   : > { %1406 = vrot.lane.b32.xlu1 %v1398_v6, %s3131_s6  ;;  %1404 = vrot.lane.b32.xlu0 %v1397_v13, %s3131_s6  ;;  %v2967_v13 = vld [vmem:[#allocation2 + $0x18] sm:$0xff] }
 0x25b   : > { %1423 = vrot.lane.b32.xlu1 %v1416_v21, %s3134_s5  ;;  %1421 = vrot.lane.b32.xlu0 %v1415_v26, %s3134_s5  ;;  %v4111_v21 = vmul.f32 %v2967_v13, %v4953_v0 }
 0x25f   : > { %1440 = vrot.lane.b32.xlu1 %v1434_v35, %s3133_s23  ;;  %1425 = vrot.lane.b32.xlu0 %v1417_v30, %s3134_s5  ;;  %v1587_v35 = vld [vmem:[#allocation2 + $0x28] sm:$0xff]  ;;  %v1609_v30 = vstv %s2814_s18  ;;  %s3138_s18 = smov 64  }
 0x263   : > { %1444 = vrot.lane.b32.xlu1 %v1436_v43, %s3133_s23  ;;  %1442 = vrot.lane.b32.xlu0 %v1435_v8, %s3133_s23  ;;  %v4954_v43 = vld [vmem:[#allocation18_spill] sm:$0xff] }
 0x264   : > { %v4116_v8 = vmul.f32 %v1587_v35, %v4954_v43 }
 0x269   : > { %v4072_v44 = vpop.permute.xlu1 %1063  ;;  %v4074_v27 = vpop.permute.xlu0 %1061 }
 0x26a   : > { %1072 = vst.msk [vmem:[#allocation3 + $0x58] sm:$0xff] %vm222_vm12, %v4072_v44 }
 0x26b   : > { %1070 = vst.msk [vmem:[#allocation3 + $0x48] sm:$0xff] %vm676_vm0, %v4074_v27 }
 0x28d   : > { %v4080_v49 = vpop.permute.xlu1 %1194  ;;  %v4082_v57 = vpop.permute.xlu0 %1192 }
 0x28e   : > { %1203 = vst.msk [vmem:[#allocation3 + $0x70] sm:$0xff] %vm222_vm12, %v4080_v49 }
 0x28f   : > { %1201 = vst.msk [vmem:[#allocation3 + $0x60] sm:$0xff] %vm676_vm0, %v4082_v57 }
 0x2b1   : > { %v4088_v54 = vpop.permute.xlu1 %1325  ;;  %v4090_v61 = vpop.permute.xlu0 %1323 }
 0x2b2   : > { %1334 = vst.msk [vmem:[#allocation3 + $0x88] sm:$0xff] %vm222_vm12, %v4088_v54 }
 0x2b3   : > { %1332 = vst.msk [vmem:[#allocation3 + $0x78] sm:$0xff] %vm676_vm0, %v4090_v61 }
 0x2b5   : > { %v1348_v53 = vpop.permute.xlu1 %1347  ;;  %v1346_v62 = vpop.permute.xlu0 %1345 }
 0x2b6   : > { %v1351_v9 = vsel %vm559_vm8, %v1346_v62, %v1348_v53 }
 0x2b7   : > { %v1355_v55 = vadd.f32 %v1351_v9, %v1336_v34  ;;  %v4959_v9 = vld [vmem:[#allocation25_spill] sm:$0xff]  ;;  %v1647_v34 = vstv %s2816_s8  ;;  %s3140_s8 = smov 32  }
 0x2b9   : > { %v1365_v15 = vpop.permute.xlu1 %1364  ;;  %v1350_v33 = vpop.permute.xlu0 %1349 }
 0x2ba   : > { %v1352_v59 = vsel %vm559_vm8, %v1348_v53, %v1350_v33  ;;  %v4955_v53 = vld [vmem:[#allocation23_spill] sm:$0xff] }
 0x2bb   : > { %v1356_v19 = vadd.f32 %v1352_v59, %v1337_v32  ;;  %v4119_v62 = vmul.f32 %v2967_v13, %v4955_v53  ;;  %v4960_v32 = vld [vmem:[#allocation27_spill] sm:$0xff] }
 0x2bd   : > { %v1369_v52 = vpop.permute.xlu1 %1368  ;;  %v1367_v16 = vpop.permute.xlu0 %1366 }
 0x2be   : > { %v1370_v14 = vsel %vm579_vm9, %v1365_v15, %v1367_v16  ;;  %v1371_v31 = vsel %vm579_vm9, %v1367_v16, %v1369_v52  ;;  %v4956_v15 = vld [vmem:[#allocation20_spill] sm:$0xff]  ;;  %v1610_v52 = vmul.f32 %v1609_v30, %v4111_v21  ;;  %v1628_v16 = vstv %s2815_s7  ;;  %s3139_s7 = smov 80  }
 0x2bf   : > { %v1374_v20 = vadd.f32 %v1370_v14, %v1355_v55  ;;  %v1375_v51 = vadd.f32 %v1371_v31, %v1356_v19  ;;  %v1611_v33 = vmul.f32 %v1609_v30, %v4956_v15  ;;  %v1630_v59 = vmul.f32 %v1628_v16, %v4959_v9  ;;  %v4961_v31 = vld [vmem:[#allocation34_spill] sm:$0xff]  ;;  %v4962_v19 = vld [vmem:[#allocation31_spill] sm:$0xff] }
 0x2c0   : > { %v4140_v14 = vmul.f32 %v1587_v35, %v4960_v32  ;;  %v4143_v55 = vmul.f32 %v2967_v13, %v4961_v31  ;;  %v1606_v32 = vstv %s2813_s22  ;;  %s2825_s22 = sld [smem:[#allocation8 + $0x3d]] }
 0x2c1   : > { %v1386_v12 = vpop.permute.xlu1 %1385  ;;  %v1384_v45 = vpop.permute.xlu0 %1383 }
 0x2c2   : > { %v1389_v22 = vsel %vm599_vm10, %v1384_v45, %v1386_v12 }
 0x2c3   : > { %v1393_v63 = vadd.f32 %v1389_v22, %v1374_v20  ;;  %v1666_v22 = vstv %s2817_s9  ;;  %s2822_s9 = sld [smem:[#allocation8 + $0x3a]] }
 0x2c5   : > { %v1403_v29 = vpop.permute.xlu1 %1402  ;;  %v1388_v58 = vpop.permute.xlu0 %1387 }
 0x2c6   : > { %v1390_v60 = vsel %vm599_vm10, %v1386_v12, %v1388_v58  ;;  %v4957_v12 = vld [vmem:[#allocation22_spill] sm:$0xff]  ;;  %v1612_v58 = vmul.f32 %v1609_v30, %v4116_v8  ;;  %v4970_v30 = vld [vmem:[#allocation44_spill] sm:$0xff] }
 0x2c7   : > { %v1394_v7 = vadd.f32 %v1390_v60, %v1375_v51  ;;  %v4126_v45 = vmul.f32 %v1587_v35, %v4957_v12  ;;  %v4963_v60 = vld [vmem:[#allocation32_spill] sm:$0xff]  ;;  %v1667_v51 = vmul.f32 %v1666_v22, %v4143_v55 }
 0x2c8   : > { %v4150_v20 = vmul.f32 %v1587_v35, %v4963_v60  ;;  %v4971_v60 = vld [vmem:[#allocation19_spill] sm:$0xff] }
 0x2c9   : > { %v1407_v17 = vpop.permute.xlu1 %1406  ;;  %v1405_v1 = vpop.permute.xlu0 %1404 }
 0x2ca   : > { %v1408_v38 = vsel %vm619_vm11, %v1403_v29, %v1405_v1  ;;  %v1409_v5 = vsel %vm619_vm11, %v1405_v1, %v1407_v17  ;;  %v1629_v29 = vmul.f32 %v1628_v16, %v4119_v62  ;;  %v4133_v17 = vmul.f32 %v2967_v13, %v4958_v41 }
 0x2cb   : > { %v1412_v18 = vadd.f32 %v1408_v38, %v1393_v63  ;;  %v1413_v36 = vadd.f32 %v1409_v5, %v1394_v7  ;;  %v1631_v1 = vmul.f32 %v1628_v16, %v4126_v45  ;;  %v1650_v38 = vmul.f32 %v1647_v34, %v4140_v14  ;;  %v4964_v5 = vld [vmem:[#allocation38_spill] sm:$0xff] }
 0x2cc   : > { %v4157_v63 = vmul.f32 %v2967_v13, %v4964_v5  ;;  %v1669_v7 = vmul.f32 %v1666_v22, %v4150_v20 }
 0x2cd   : > { %v1424_v28 = vpop.permute.xlu1 %1423  ;;  %v1422_v23 = vpop.permute.xlu0 %1421 }
 0x2ce   : > { %v1427_v39 = vsel %vm639_vm14, %v1422_v23, %v1424_v28  ;;  %v1648_v23 = vmul.f32 %v1647_v34, %v4133_v17 }
 0x2cf   : > { %v1431_v25 = vadd.f32 %v1427_v39, %v1412_v18  ;;  %v1685_v39 = vstv %s2818_s17  ;;  %s2823_s17 = sld [smem:[#allocation8 + $0x3b]] }
 0x2d1   : > { %v1441_v11 = vpop.permute.xlu1 %1440  ;;  %v1426_v10 = vpop.permute.xlu0 %1425 }
 0x2d2   : > { %v1428_v42 = vsel %vm639_vm14, %v1424_v28, %v1426_v10  ;;  %v1649_v28 = vmul.f32 %v1647_v34, %v4962_v19 }
 0x2d3   : > { %v1432_v50 = vadd.f32 %v1428_v42, %v1413_v36  ;;  %v4966_v42 = vld [vmem:[#allocation36_spill] sm:$0xff]  ;;  %v4967_v36 = vld [vmem:[#allocation43_spill] sm:$0xff] }
 0x2d4   : > { %v4164_v18 = vmul.f32 %v1587_v35, %v4966_v42 }
 0x2d5   : > { %v1445_v3 = vpop.permute.xlu1 %1444  ;;  %v1443_v48 = vpop.permute.xlu0 %1442 }
 0x2d6   : > { %v1446_v46 = vsel %vm659_vm15, %v1441_v11, %v1443_v48  ;;  %v1447_v6 = vsel %vm659_vm15, %v1443_v48, %v1445_v3  ;;  %v4965_v11 = vld [vmem:[#allocation35_spill] sm:$0xff]  ;;  %v1686_v48 = vmul.f32 %v1685_v39, %v4157_v63 }
 0x2d7   : > { %v1450_v26 = vadd.f32 %v1446_v46, %v1431_v25  ;;  %v1451_v37 = vadd.f32 %v1447_v6, %v1432_v50  ;;  %v1668_v10 = vmul.f32 %v1666_v22, %v4965_v11  ;;  %v4167_v25 = vmul.f32 %v2967_v13, %v4967_v36  ;;  %v4968_v50 = vld [vmem:[#allocation40_spill] sm:$0xff]  ;;  %v4969_v6 = vld [vmem:[#allocation41_spill] sm:$0xff] }
 0x2d8   : > { %v1687_v3 = vmul.f32 %v1685_v39, %v4968_v50  ;;  %v1704_v46 = vstv %s2819_s20  ;;  %v4174_v0 = vmul.f32 %v1587_v35, %v4969_v6  ;;  %s2824_s20 = sld [smem:[#allocation8 + $0x3c]] }
 0x2d9   : > { %1456 = vrot.lane.b32.xlu1 %v1451_v37, %s3135_s11  ;;  %1454 = vrot.lane.b32.xlu0 %v1450_v26, %s3135_s11  ;;  %v1705_v26 = vmul.f32 %v1704_v46, %v4167_v25  ;;  %v1688_v37 = vmul.f32 %v1685_v39, %v4164_v18  ;;  %v1706_v43 = vmul.f32 %v1704_v46, %v4970_v30 }
 0x2da   : > { %v1707_v13 = vmul.f32 %v1704_v46, %v4174_v0 }
 0x2dd   : > { %1618 = vrot.lane.b32.xlu1 %v1611_v33, %s3130_s29  ;;  %1616 = vrot.lane.b32.xlu0 %v1610_v52, %s3130_s29 }
 0x2e1   : > { %1635 = vrot.lane.b32.xlu1 %v1629_v29, %s3129_s26  ;;  %1620 = vrot.lane.b32.xlu0 %v1612_v58, %s3130_s29 }
 0x2e5   : > { %1639 = vrot.lane.b32.xlu1 %v1631_v1, %s3129_s26  ;;  %1637 = vrot.lane.b32.xlu0 %v1630_v59, %s3129_s26 }
 0x2e9   : > { %1656 = vrot.lane.b32.xlu1 %v1649_v28, %s3132_s10  ;;  %1654 = vrot.lane.b32.xlu0 %v1648_v23, %s3132_s10 }
 0x2ed   : > { %1673 = vrot.lane.b32.xlu1 %v1667_v51, %s3131_s6  ;;  %1658 = vrot.lane.b32.xlu0 %v1650_v38, %s3132_s10  ;;  %v1607_v51 = vmul.f32 %v1606_v32, %v4971_v60  ;;  %v4972_v38 = vld [vmem:[#allocation17_spill] sm:$0xff] }
 0x2ee   : > { %v1608_v5 = vmul.f32 %v1606_v32, %v4972_v38 }
 0x2f1   : > { %1677 = vrot.lane.b32.xlu1 %v1669_v7, %s3131_s6  ;;  %1675 = vrot.lane.b32.xlu0 %v1668_v10, %s3131_s6 }
 0x2f5   : > { %1694 = vrot.lane.b32.xlu1 %v1687_v3, %s3134_s5  ;;  %1692 = vrot.lane.b32.xlu0 %v1686_v48, %s3134_s5 }
 0x2f9   : > { %1711 = vrot.lane.b32.xlu1 %v1705_v26, %s3133_s23  ;;  %1696 = vrot.lane.b32.xlu0 %v1688_v37, %s3134_s5 }
 0x2fd   : > { %1715 = vrot.lane.b32.xlu1 %v1707_v13, %s3133_s23  ;;  %1713 = vrot.lane.b32.xlu0 %v1706_v43, %s3133_s23 }
 0x34b   : > { %v4184_v53 = vpop.permute.xlu1 %1456  ;;  %v4186_v35 = vpop.permute.xlu0 %1454 }
 0x34c   : > { %1465 = vst.msk [vmem:[#allocation3 + $0xa0] sm:$0xff] %vm222_vm12, %v4184_v53 }
 0x34d   : > { %1463 = vst.msk [vmem:[#allocation3 + $0x90] sm:$0xff] %vm676_vm0, %v4186_v35 }
 0x34f   : > { %v1619_v33 = vpop.permute.xlu1 %1618  ;;  %v1617_v52 = vpop.permute.xlu0 %1616 }
 0x350   : > { %v1622_v23 = vsel %vm559_vm8, %v1617_v52, %v1619_v33 }
 0x351   : > { %v1626_v39 = vadd.f32 %v1622_v23, %v1607_v51  ;;  %v1739_v51 = vstv %s2821_s24  ;;  %s2826_s24 = sld [smem:[#allocation8 + $0x3e]] }
 0x353   : > { %v1636_v16 = vpop.permute.xlu1 %1635  ;;  %v1621_v12 = vpop.permute.xlu0 %1620 }
 0x354   : > { %v1623_v22 = vsel %vm559_vm8, %v1619_v33, %v1621_v12 }
 0x355   : > { %v1627_v42 = vadd.f32 %v1623_v22, %v1608_v5  ;;  %v1741_v5 = vmul.f32 %v1739_v51, %v4956_v15 }
 0x357   : > { %v1640_v29 = vpop.permute.xlu1 %1639  ;;  %v1638_v58 = vpop.permute.xlu0 %1637 }
 0x358   : > { %v1641_v7 = vsel %vm579_vm9, %v1636_v16, %v1638_v58  ;;  %v1642_v10 = vsel %vm579_vm9, %v1638_v58, %v1640_v29 }
 0x359   : > { %v1645_v6 = vadd.f32 %v1641_v7, %v1626_v39  ;;  %v1646_v26 = vadd.f32 %v1642_v10, %v1627_v42  ;;  %v1740_v7 = vmul.f32 %v1739_v51, %v4111_v21  ;;  %v1489_v10 = vld [vmem:[#allocation3 + $0x30] sm:$0xff]  ;;  %v1470_v39 = vld [vmem:[#allocation3 + $0x18] sm:$0xff]  ;;  %v1491_v42 = vld [vmem:[#allocation3 + $0x40] sm:$0xff] }
 0x35b   : > { %v1657_v41 = vpop.permute.xlu1 %1656  ;;  %v1655_v1 = vpop.permute.xlu0 %1654 }
 0x35c   : > { %v1660_v48 = vsel %vm599_vm10, %v1655_v1, %v1657_v41 }
 0x35d   : > { %v1664_v43 = vadd.f32 %v1660_v48, %v1645_v6  ;;  %v1508_v48 = vld [vmem:[#allocation3 + $0x48] sm:$0xff]  ;;  %v1510_v6 = vld [vmem:[#allocation3 + $0x58] sm:$0xff] }
 0x35f   : > { %v1674_v59 = vpop.permute.xlu1 %1673  ;;  %v1659_v34 = vpop.permute.xlu0 %1658 }
 0x360   : > { %v1661_v46 = vsel %vm599_vm10, %v1657_v41, %v1659_v34 }
 0x361   : > { %v1665_v33 = vadd.f32 %v1661_v46, %v1646_v26  ;;  %v1529_v46 = vld [vmem:[#allocation3 + $0x70] sm:$0xff] }
 0x362   : > { %v1564_v26 = vld [vmem:[#allocation3 + $0x90] sm:$0xff] }
 0x363   : > { %v1678_v31 = vpop.permute.xlu1 %1677  ;;  %v1676_v28 = vpop.permute.xlu0 %1675 }
 0x364   : > { %v1679_v37 = vsel %vm619_vm11, %v1674_v59, %v1676_v28  ;;  %v1680_v13 = vsel %vm619_vm11, %v1676_v28, %v1678_v31 }
 0x365   : > { %v1683_v58 = vadd.f32 %v1679_v37, %v1664_v43  ;;  %v1684_v32 = vadd.f32 %v1680_v13, %v1665_v33  ;;  %v1546_v37 = vld [vmem:[#allocation3 + $0x78] sm:$0xff]  ;;  %v1566_v13 = vld [vmem:[#allocation3 + $0xa0] sm:$0xff]  ;;  %v1548_v43 = vld [vmem:[#allocation3 + $0x88] sm:$0xff]  ;;  %v803_v33 = vsel %vm222_vm12, %v4028_v56, %v4022_v24  ;;  %v1327_v24 = vsel %vm222_vm12, %v4090_v61, %v4088_v54 }
 0x366   : > { %v1458_v56 = vsel %vm222_vm12, %v4186_v35, %v4184_v53  ;;  %v1796_v53 = vstv %s2824_s20  ;;  %s2829_s20 = sld [smem:[#allocation8 + $0x41]] }
 0x367   : > { %v1695_v36 = vpop.permute.xlu1 %1694  ;;  %v1693_v3 = vpop.permute.xlu0 %1692  ;;  %v1797_v35 = vmul.f32 %v1796_v53, %v4143_v55 }
 0x368   : > { %v1698_v12 = vsel %vm639_vm14, %v1693_v3, %v1695_v36  ;;  %v1527_v3 = vld [vmem:[#allocation3 + $0x60] sm:$0xff] }
 0x369   : > { %v1702_v1 = vadd.f32 %v1698_v12, %v1683_v58  ;;  %v1196_v12 = vsel %vm222_vm12, %v4082_v57, %v4080_v49  ;;  %v1777_v57 = vstv %s2823_s17  ;;  %v1799_v58 = vmul.f32 %v1796_v53, %v4150_v20  ;;  %s2828_s17 = sld [smem:[#allocation8 + $0x40]] }
 0x36a   : > { %v1779_v54 = vmul.f32 %v1777_v57, %v4962_v19  ;;  %v1778_v61 = vmul.f32 %v1777_v57, %v4133_v17 }
 0x36b   : > { %v1712_v52 = vpop.permute.xlu1 %1711  ;;  %v1697_v16 = vpop.permute.xlu0 %1696 }
 0x36c   : > { %v1699_v29 = vsel %vm639_vm14, %v1695_v36, %v1697_v16  ;;  %v1472_v36 = vld [vmem:[#allocation3 + $0x28] sm:$0xff]  ;;  %v1065_v16 = vsel %vm222_vm12, %v4074_v27, %v4072_v44  ;;  %v1742_v44 = vmul.f32 %v1739_v51, %v4116_v8 }
 0x36d   : > { %v1703_v23 = vadd.f32 %v1699_v29, %v1684_v32  ;;  %v1780_v29 = vmul.f32 %v1777_v57, %v4140_v14  ;;  %v1798_v32 = vmul.f32 %v1796_v53, %v4965_v11 }
 0x36f   : > { %v1716_v41 = vpop.permute.xlu1 %1715  ;;  %v1714_v34 = vpop.permute.xlu0 %1713 }
 0x370   : > { %v1717_v22 = vsel %vm659_vm15, %v1712_v52, %v1714_v34  ;;  %v1718_v59 = vsel %vm659_vm15, %v1714_v34, %v1716_v41  ;;  %v934_v52 = vsel %vm222_vm12, %v4040_v40, %v4034_v47  ;;  %v1758_v47 = vstv %s2822_s9  ;;  %s2820_s9 = sld [smem:[#allocation8 + $0x38]] }
 0x371   : > { %v1721_v31 = vadd.f32 %v1717_v22, %v1702_v1  ;;  %v1722_v28 = vadd.f32 %v1718_v59, %v1703_v23  ;;  %v1759_v40 = vmul.f32 %v1758_v47, %v4119_v62  ;;  %v1761_v27 = vmul.f32 %v1758_v47, %v4126_v45 }
 0x372   : > { %v1760_v49 = vmul.f32 %v1758_v47, %v4959_v9  ;;  %v1815_v1 = vstv %s2825_s22  ;;  %v1834_v34 = vstv %s2826_s24  ;;  %s2835_s22 = sld [smem:[#allocation8 + $0x47]]  ;;  %s2830_s24 = sld [smem:[#allocation8 + $0x42]] }
 0x373   : > { %1727 = vrot.lane.b32.xlu1 %v1722_v28, %s3135_s11  ;;  %1725 = vrot.lane.b32.xlu0 %v1721_v31, %s3135_s11  ;;  %v1817_v23 = vmul.f32 %v1815_v1, %v4968_v50  ;;  %v1816_v41 = vmul.f32 %v1815_v1, %v4157_v63  ;;  %v1835_v22 = vmul.f32 %v1834_v34, %v4167_v25 }
 0x374   : > { %v1818_v59 = vmul.f32 %v1815_v1, %v4164_v18  ;;  %v1837_v31 = vmul.f32 %v1834_v34, %v4174_v0  ;;  %v1836_v28 = vmul.f32 %v1834_v34, %v4970_v30 }
 0x377   : > { %1748 = vrot.lane.b32.xlu1 %v1741_v5, %s3130_s29  ;;  %1746 = vrot.lane.b32.xlu0 %v1740_v7, %s3130_s29  ;;  %v4280_v5 = vld [vmem:[#allocation3] sm:$0xff] }
 0x37b   : > { %1495 = vrot.lane.b32.xlu1 %v1489_v10, %s3136_s25  ;;  %1476 = vrot.lane.b32.xlu0 %v1470_v39, %s3137_s30 }
 0x37f   : > { %1499 = vrot.lane.b32.xlu1 %v1491_v42, %s3136_s25  ;;  %1480 = vrot.lane.b32.xlu0 %v1472_v36, %s3137_s30 }
 0x383   : > { %1533 = vrot.lane.b32.xlu1 %v1527_v3, %s3138_s18  ;;  %1514 = vrot.lane.b32.xlu0 %v1508_v48, %s3139_s7 }
 0x387   : > { %1537 = vrot.lane.b32.xlu1 %v1529_v46, %s3138_s18  ;;  %1518 = vrot.lane.b32.xlu0 %v1510_v6, %s3139_s7 }
 0x38b   : > { %1570 = vrot.lane.b32.xlu1 %v1564_v26, %s3140_s8  ;;  %1552 = vrot.lane.b32.xlu0 %v1546_v37, %s3135_s11 }
 0x38f   : > { %1574 = vrot.lane.b32.xlu1 %v1566_v13, %s3140_s8  ;;  %1556 = vrot.lane.b32.xlu0 %v1548_v43, %s3135_s11 }
 0x393   : > { %1478 = vrot.lane.b32.xlu1 %v803_v33, %s3137_s30  ;;  %1497 = vrot.lane.b32.xlu0 %v934_v52, %s3136_s25 }
 0x397   : > { %1516 = vrot.lane.b32.xlu1 %v1065_v16, %s3139_s7  ;;  %1535 = vrot.lane.b32.xlu0 %v1196_v12, %s3138_s18 }
 0x39b   : > { %1554 = vrot.lane.b32.xlu1 %v1327_v24, %s3135_s11  ;;  %1572 = vrot.lane.b32.xlu0 %v1458_v56, %s3140_s8 }
 0x39f   : > { %1765 = vrot.lane.b32.xlu1 %v1759_v40, %s3129_s26  ;;  %1750 = vrot.lane.b32.xlu0 %v1742_v44, %s3130_s29 }
 0x3a3   : > { %1769 = vrot.lane.b32.xlu1 %v1761_v27, %s3129_s26  ;;  %1767 = vrot.lane.b32.xlu0 %v1760_v49, %s3129_s26 }
 0x3a7   : > { %1786 = vrot.lane.b32.xlu1 %v1779_v54, %s3132_s10  ;;  %1784 = vrot.lane.b32.xlu0 %v1778_v61, %s3132_s10 }
 0x3ab   : > { %1803 = vrot.lane.b32.xlu1 %v1797_v35, %s3131_s6  ;;  %1788 = vrot.lane.b32.xlu0 %v1780_v29, %s3132_s10 }
 0x3af   : > { %1807 = vrot.lane.b32.xlu1 %v1799_v58, %s3131_s6  ;;  %1805 = vrot.lane.b32.xlu0 %v1798_v32, %s3131_s6  ;;  %v1736_v58 = vstv %s2820_s9  ;;  %s2836_s9 = sld [smem:[#allocation8 + $0x48]] }
 0x3b0   : > { %v1737_v34 = vmul.f32 %v1736_v58, %v4971_v60 }
 0x3b3   : > { %1824 = vrot.lane.b32.xlu1 %v1817_v23, %s3134_s5  ;;  %1822 = vrot.lane.b32.xlu0 %v1816_v41, %s3134_s5 }
 0x3b7   : > { %1841 = vrot.lane.b32.xlu1 %v1835_v22, %s3133_s23  ;;  %1826 = vrot.lane.b32.xlu0 %v1818_v59, %s3134_s5  ;;  %v1738_v22 = vmul.f32 %v1736_v58, %v4972_v38 }
 0x3bb   : > { %1845 = vrot.lane.b32.xlu1 %v1837_v31, %s3133_s23  ;;  %1843 = vrot.lane.b32.xlu0 %v1836_v28, %s3133_s23 }
 0x3e5   : > { %v1728_v51 = vpop.permute.xlu1 %1727  ;;  %v1726_v7 = vpop.permute.xlu0 %1725 }
 0x3e6   : > { %v1729_v10 = vsel %vm222_vm12, %v1726_v7, %v1728_v51  ;;  %1733 = vst.msk [vmem:[#allocation3] sm:$0xff] %vm676_vm0, %v1726_v7 }
 0x3e7   : > { %1734 = vst [vmem:[#allocation3 + $0x8] sm:$0xff] %v1729_v10 }
 0x3e9   : > { %v1749_v39 = vpop.permute.xlu1 %1748  ;;  %v1747_v42 = vpop.permute.xlu0 %1746 }
 0x3ea   : > { %v1752_v23 = vsel %vm559_vm8, %v1747_v42, %v1749_v39 }
 0x3eb   : > { %v1756_v28 = vadd.f32 %v1752_v23, %v1737_v34 }
 0x3ed   : > { %v4284_v36 = vpop.permute.xlu1 %1495  ;;  %v4286_v3 = vpop.permute.xlu0 %1476 }
 0x3f1   : > { %v4288_v48 = vpop.permute.xlu1 %1499  ;;  %v4290_v46 = vpop.permute.xlu0 %1480 }
 0x3f5   : > { %v4292_v6 = vpop.permute.xlu1 %1533  ;;  %v4294_v26 = vpop.permute.xlu0 %1514 }
 0x3f9   : > { %v4296_v37 = vpop.permute.xlu1 %1537  ;;  %v4298_v13 = vpop.permute.xlu0 %1518 }
 0x3fa   : > { %4973 = vst [vmem:[#allocation45_spill] sm:$0xff] %v4296_v37 }
 0x3fd   : > { %v4300_v43 = vpop.permute.xlu1 %1570  ;;  %v4302_v33 = vpop.permute.xlu0 %1552 }
 0x3fe   : > { %4974 = vst [vmem:[#allocation21_spill] sm:$0xff] %v4300_v43 }
 0x401   : > { %v4304_v52 = vpop.permute.xlu1 %1574  ;;  %v4306_v16 = vpop.permute.xlu0 %1556 }
 0x402   : > { %4975 = vst [vmem:[#allocation26_spill] sm:$0xff] %v4304_v52  ;;  %4976 = vst [vmem:[#allocation24_spill] sm:$0xff] %v4306_v16 }
 0x405   : > { %v4308_v12 = vpop.permute.xlu1 %1478  ;;  %v4310_v24 = vpop.permute.xlu0 %1497 }
 0x409   : > { %v4312_v56 = vpop.permute.xlu1 %1516  ;;  %v4314_v47 = vpop.permute.xlu0 %1535 }
 0x40d   : > { %v4316_v40 = vpop.permute.xlu1 %1554  ;;  %v4318_v44 = vpop.permute.xlu0 %1572 }
 0x40e   : > { %4977 = vst [vmem:[#allocation29_spill] sm:$0xff] %v4318_v44 }
 0x411   : > { %v1766_v27 = vpop.permute.xlu1 %1765  ;;  %v1751_v49 = vpop.permute.xlu0 %1750 }
 0x412   : > { %v1753_v41 = vsel %vm559_vm8, %v1749_v39, %v1751_v49 }
 0x413   : > { %v1757_v51 = vadd.f32 %v1753_v41, %v1738_v22 }
 0x415   : > { %v1770_v57 = vpop.permute.xlu1 %1769  ;;  %v1768_v54 = vpop.permute.xlu0 %1767 }
 0x416   : > { %v1771_v59 = vsel %vm579_vm9, %v1766_v27, %v1768_v54  ;;  %v1772_v31 = vsel %vm579_vm9, %v1768_v54, %v1770_v57 }
 0x417   : > { %v1775_v44 = vadd.f32 %v1771_v59, %v1756_v28  ;;  %v1776_v42 = vadd.f32 %v1772_v31, %v1757_v51  ;;  %v1999_v51 = vstv %s2835_s22  ;;  %s2837_s22 = sld [smem:[#allocation8 + $0x49]] }
 0x419   : > { %v1787_v61 = vpop.permute.xlu1 %1786  ;;  %v1785_v53 = vpop.permute.xlu0 %1784 }
 0x41a   : > { %v1790_v52 = vsel %vm599_vm10, %v1785_v53, %v1787_v61 }
 0x41b   : > { %v1794_v58 = vadd.f32 %v1790_v52, %v1775_v44  ;;  %v1888_v44 = vstv %s2829_s20  ;;  %s2831_s20 = sld [smem:[#allocation8 + $0x43]] }
 0x41c   : > { %v1891_v31 = vmul.f32 %v1888_v44, %v4126_v45  ;;  %v1890_v28 = vmul.f32 %v1888_v44, %v4959_v9 }
 0x41d   : > { %v1804_v35 = vpop.permute.xlu1 %1803  ;;  %v1789_v29 = vpop.permute.xlu0 %1788 }
 0x41e   : > { %v1791_v43 = vsel %vm599_vm10, %v1787_v61, %v1789_v29 }
 0x41f   : > { %v1795_v16 = vadd.f32 %v1791_v43, %v1776_v42  ;;  %v1869_v43 = vstv %s2828_s17  ;;  %v1907_v42 = vstv %s2830_s24  ;;  %s2842_s17 = sld [smem:[#allocation8 + $0x4e]]  ;;  %s2843_s24 = sld [smem:[#allocation8 + $0x4f]] }
 0x420   : > { %v1872_v59 = vmul.f32 %v1869_v43, %v4116_v8 }
 0x421   : > { %v1808_v32 = vpop.permute.xlu1 %1807  ;;  %v1806_v1 = vpop.permute.xlu0 %1805 }
 0x422   : > { %v1809_v39 = vsel %vm619_vm11, %v1804_v35, %v1806_v1  ;;  %v1810_v49 = vsel %vm619_vm11, %v1806_v1, %v1808_v32  ;;  %v1889_v1 = vmul.f32 %v1888_v44, %v4119_v62 }
 0x423   : > { %v1813_v23 = vadd.f32 %v1809_v39, %v1794_v58  ;;  %v1814_v41 = vadd.f32 %v1810_v49, %v1795_v16  ;;  %v1870_v16 = vmul.f32 %v1869_v43, %v4111_v21  ;;  %v1908_v39 = vmul.f32 %v1907_v42, %v4133_v17 }
 0x424   : > { %v2002_v49 = vmul.f32 %v1999_v51, %v4116_v8  ;;  %v1910_v58 = vmul.f32 %v1907_v42, %v4140_v14 }
 0x425   : > { %v1825_v7 = vpop.permute.xlu1 %1824  ;;  %v1823_v10 = vpop.permute.xlu0 %1822 }
 0x426   : > { %v1828_v57 = vsel %vm639_vm14, %v1823_v10, %v1825_v7  ;;  %v2000_v10 = vmul.f32 %v1999_v51, %v4111_v21 }
 0x427   : > { %v1832_v53 = vadd.f32 %v1828_v57, %v1813_v23  ;;  %v2018_v57 = vstv %s2836_s9  ;;  %s2849_s9 = sld [smem:[#allocation8 + $0x55]] }
 0x428   : > { %v2019_v23 = vmul.f32 %v2018_v57, %v4119_v62 }
 0x429   : > { %v1842_v27 = vpop.permute.xlu1 %1841  ;;  %v1827_v37 = vpop.permute.xlu0 %1826 }
 0x42a   : > { %v1829_v54 = vsel %vm639_vm14, %v1825_v7, %v1827_v37  ;;  %v1871_v37 = vmul.f32 %v1869_v43, %v4956_v15  ;;  %v2001_v7 = vmul.f32 %v1999_v51, %v4956_v15 }
 0x42b   : > { %v1833_v34 = vadd.f32 %v1829_v54, %v1814_v41  ;;  %v2020_v54 = vmul.f32 %v2018_v57, %v4959_v9  ;;  %v2129_v41 = vstv %s2842_s17  ;;  %s2832_s17 = sld [smem:[#allocation8 + $0x44]] }
 0x42d   : > { %v1846_v61 = vpop.permute.xlu1 %1845  ;;  %v1844_v29 = vpop.permute.xlu0 %1843 }
 0x42e   : > { %v1847_v22 = vsel %vm659_vm15, %v1842_v27, %v1844_v29  ;;  %v1848_v35 = vsel %vm659_vm15, %v1844_v29, %v1846_v61  ;;  %v1909_v27 = vmul.f32 %v1907_v42, %v4962_v19  ;;  %v2132_v61 = vmul.f32 %v2129_v41, %v4116_v8 }
 0x42f   : > { %v1851_v32 = vadd.f32 %v1847_v22, %v1832_v53  ;;  %v1852_v52 = vadd.f32 %v1848_v35, %v1833_v34  ;;  %v2130_v53 = vmul.f32 %v2129_v41, %v4111_v21  ;;  %v2021_v34 = vmul.f32 %v2018_v57, %v4126_v45 }
 0x430   : > { %v2131_v29 = vmul.f32 %v2129_v41, %v4956_v15  ;;  %v1926_v22 = vstv %s2831_s20  ;;  %s2838_s20 = sld [smem:[#allocation8 + $0x4a]] }
 0x431   : > { %1857 = vrot.lane.b32.xlu1 %v1852_v52, %s3135_s11  ;;  %1855 = vrot.lane.b32.xlu0 %v1851_v32, %s3135_s11  ;;  %v1928_v35 = vmul.f32 %v1926_v22, %v4965_v11  ;;  %v1927_v32 = vmul.f32 %v1926_v22, %v4143_v55  ;;  %v2037_v52 = vstv %s2837_s22  ;;  %s2844_s22 = sld [smem:[#allocation8 + $0x50]] }
 0x432   : > { %v2038_v43 = vmul.f32 %v2037_v52, %v4133_v17  ;;  %v2039_v44 = vmul.f32 %v2037_v52, %v4962_v19 }
 0x435   : > { %1878 = vrot.lane.b32.xlu1 %v1871_v37, %s3130_s29  ;;  %1876 = vrot.lane.b32.xlu0 %v1870_v16, %s3130_s29  ;;  %v1929_v37 = vmul.f32 %v1926_v22, %v4150_v20  ;;  %v2040_v16 = vmul.f32 %v2037_v52, %v4140_v14 }
 0x439   : > { %1895 = vrot.lane.b32.xlu1 %v1889_v1, %s3129_s26  ;;  %1880 = vrot.lane.b32.xlu0 %v1872_v59, %s3130_s29  ;;  %v2148_v1 = vstv %s2843_s24  ;;  %s2850_s24 = sld [smem:[#allocation8 + $0x56]] }
 0x43a   : > { %v2150_v59 = vmul.f32 %v2148_v1, %v4959_v9 }
 0x43d   : > { %1899 = vrot.lane.b32.xlu1 %v1891_v31, %s3129_s26  ;;  %1897 = vrot.lane.b32.xlu0 %v1890_v28, %s3129_s26  ;;  %v2149_v31 = vmul.f32 %v2148_v1, %v4119_v62  ;;  %v2259_v28 = vstv %s2849_s9  ;;  %s2856_s9 = sld [smem:[#allocation8 + $0x5c]] }
 0x43e   : > { %v2260_v51 = vmul.f32 %v2259_v28, %v4111_v21  ;;  %v2261_v42 = vmul.f32 %v2259_v28, %v4956_v15 }
 0x441   : > { %2008 = vrot.lane.b32.xlu1 %v2001_v7, %s3130_s29  ;;  %2006 = vrot.lane.b32.xlu0 %v2000_v10, %s3130_s29  ;;  %v2151_v7 = vmul.f32 %v2148_v1, %v4126_v45  ;;  %v2262_v10 = vmul.f32 %v2259_v28, %v4116_v8 }
 0x445   : > { %1914 = vrot.lane.b32.xlu1 %v1908_v39, %s3132_s10  ;;  %2010 = vrot.lane.b32.xlu0 %v2002_v49, %s3130_s29  ;;  %v1945_v39 = vstv %s2832_s17  ;;  %s2833_s17 = sld [smem:[#allocation8 + $0x45]] }
 0x446   : > { %v1947_v49 = vmul.f32 %v1945_v39, %v4968_v50 }
 0x449   : > { %1918 = vrot.lane.b32.xlu1 %v1910_v58, %s3132_s10  ;;  %1916 = vrot.lane.b32.xlu0 %v1909_v27, %s3132_s10  ;;  %v1946_v58 = vmul.f32 %v1945_v39, %v4157_v63  ;;  %v2056_v27 = vstv %s2838_s20  ;;  %s2839_s20 = sld [smem:[#allocation8 + $0x4b]] }
 0x44a   : > { %v2057_v57 = vmul.f32 %v2056_v27, %v4143_v55  ;;  %v2058_v41 = vmul.f32 %v2056_v27, %v4965_v11 }
 0x44d   : > { %2027 = vrot.lane.b32.xlu1 %v2020_v54, %s3129_s26  ;;  %2025 = vrot.lane.b32.xlu0 %v2019_v23, %s3129_s26  ;;  %v1948_v54 = vmul.f32 %v1945_v39, %v4164_v18  ;;  %v2059_v23 = vmul.f32 %v2056_v27, %v4150_v20 }
 0x451   : > { %2136 = vrot.lane.b32.xlu1 %v2130_v53, %s3130_s29  ;;  %2029 = vrot.lane.b32.xlu0 %v2021_v34, %s3129_s26  ;;  %v2167_v53 = vstv %s2844_s22  ;;  %s2845_s22 = sld [smem:[#allocation8 + $0x51]] }
 0x452   : > { %v2169_v34 = vmul.f32 %v2167_v53, %v4962_v19 }
 0x455   : > { %2140 = vrot.lane.b32.xlu1 %v2132_v61, %s3130_s29  ;;  %2138 = vrot.lane.b32.xlu0 %v2131_v29, %s3130_s29  ;;  %v2168_v61 = vmul.f32 %v2167_v53, %v4133_v17  ;;  %v2278_v29 = vstv %s2850_s24  ;;  %s2851_s24 = sld [smem:[#allocation8 + $0x57]] }
 0x456   : > { %v2279_v22 = vmul.f32 %v2278_v29, %v4119_v62  ;;  %v2280_v52 = vmul.f32 %v2278_v29, %v4959_v9 }
 0x459   : > { %1935 = vrot.lane.b32.xlu1 %v1928_v35, %s3131_s6  ;;  %1933 = vrot.lane.b32.xlu0 %v1927_v32, %s3131_s6  ;;  %v2170_v35 = vmul.f32 %v2167_v53, %v4140_v14  ;;  %v2281_v32 = vmul.f32 %v2278_v29, %v4126_v45 }
 0x45d   : > { %2044 = vrot.lane.b32.xlu1 %v2038_v43, %s3132_s10  ;;  %1937 = vrot.lane.b32.xlu0 %v1929_v37, %s3131_s6  ;;  %v2389_v43 = vstv %s2856_s9  ;;  %s2840_s9 = sld [smem:[#allocation8 + $0x4c]] }
 0x45e   : > { %v2391_v37 = vmul.f32 %v2389_v43, %v4956_v15 }
 0x461   : > { %2048 = vrot.lane.b32.xlu1 %v2040_v16, %s3132_s10  ;;  %2046 = vrot.lane.b32.xlu0 %v2039_v44, %s3132_s10  ;;  %v2390_v16 = vmul.f32 %v2389_v43, %v4111_v21  ;;  %v1964_v44 = vstv %s2833_s17  ;;  %v2075_v21 = vstv %s2839_s20  ;;  %s2846_s17 = sld [smem:[#allocation8 + $0x52]]  ;;  %s2852_s20 = sld [smem:[#allocation8 + $0x58]] }
 0x462   : > { %v1965_v1 = vmul.f32 %v1964_v44, %v4167_v25  ;;  %v1966_v15 = vmul.f32 %v1964_v44, %v4970_v30  ;;  %v2077_v28 = vmul.f32 %v2075_v21, %v4968_v50 }
 0x465   : > { %2157 = vrot.lane.b32.xlu1 %v2150_v59, %s3129_s26  ;;  %2155 = vrot.lane.b32.xlu0 %v2149_v31, %s3129_s26  ;;  %v2392_v59 = vmul.f32 %v2389_v43, %v4116_v8  ;;  %v1967_v31 = vmul.f32 %v1964_v44, %v4174_v0 }
 0x469   : > { %2266 = vrot.lane.b32.xlu1 %v2260_v51, %s3130_s29  ;;  %2159 = vrot.lane.b32.xlu0 %v2151_v7, %s3129_s26  ;;  %v2076_v51 = vmul.f32 %v2075_v21, %v4157_v63  ;;  %v2186_v7 = vstv %s2845_s22  ;;  %s2847_s22 = sld [smem:[#allocation8 + $0x53]] }
 0x46a   : > { %v2187_v8 = vmul.f32 %v2186_v7, %v4143_v55  ;;  %v2188_v39 = vmul.f32 %v2186_v7, %v4965_v11 }
 0x46d   : > { %2270 = vrot.lane.b32.xlu1 %v2262_v10, %s3130_s29  ;;  %2268 = vrot.lane.b32.xlu0 %v2261_v42, %s3130_s29  ;;  %v2078_v10 = vmul.f32 %v2075_v21, %v4164_v18  ;;  %v2189_v42 = vmul.f32 %v2186_v7, %v4150_v20 }
 0x471   : > { %1954 = vrot.lane.b32.xlu1 %v1947_v49, %s3134_s5  ;;  %1952 = vrot.lane.b32.xlu0 %v1946_v58, %s3134_s5  ;;  %v2297_v49 = vstv %s2851_s24  ;;  %s2853_s24 = sld [smem:[#allocation8 + $0x59]] }
 0x472   : > { %v2299_v58 = vmul.f32 %v2297_v49, %v4962_v19  ;;  %v2298_v27 = vmul.f32 %v2297_v49, %v4133_v17  ;;  %v2300_v53 = vmul.f32 %v2297_v49, %v4140_v14 }
 0x475   : > { %2063 = vrot.lane.b32.xlu1 %v2057_v57, %s3131_s6  ;;  %1956 = vrot.lane.b32.xlu0 %v1948_v54, %s3134_s5 }
 0x479   : > { %2067 = vrot.lane.b32.xlu1 %v2059_v23, %s3131_s6  ;;  %2065 = vrot.lane.b32.xlu0 %v2058_v41, %s3131_s6 }
 0x47d   : > { %2176 = vrot.lane.b32.xlu1 %v2169_v34, %s3132_s10  ;;  %2174 = vrot.lane.b32.xlu0 %v2168_v61, %s3132_s10 }
 0x481   : > { %2285 = vrot.lane.b32.xlu1 %v2279_v22, %s3129_s26  ;;  %2178 = vrot.lane.b32.xlu0 %v2170_v35, %s3132_s10  ;;  %v2094_v35 = vstv %s2840_s9  ;;  %s2859_s9 = sld [smem:[#allocation8 + $0x5f]] }
 0x482   : > { %v2096_v43 = vmul.f32 %v2094_v35, %v4970_v30 }
 0x485   : > { %2289 = vrot.lane.b32.xlu1 %v2281_v32, %s3129_s26  ;;  %2287 = vrot.lane.b32.xlu0 %v2280_v52, %s3129_s26 }
 0x489   : > { %2398 = vrot.lane.b32.xlu1 %v2391_v37, %s3130_s29  ;;  %2396 = vrot.lane.b32.xlu0 %v2390_v16, %s3130_s29  ;;  %v2095_v37 = vmul.f32 %v2094_v35, %v4167_v25  ;;  %v2205_v16 = vstv %s2846_s17  ;;  %s4536_s17 = sld [smem:[#allocation8 + $0x4d]] }
 0x48a   : > { %v2206_v44 = vmul.f32 %v2205_v16, %v4157_v63  ;;  %v2207_v21 = vmul.f32 %v2205_v16, %v4968_v50 }
 0x48d   : > { %1971 = vrot.lane.b32.xlu1 %v1965_v1, %s3133_s23  ;;  %2400 = vrot.lane.b32.xlu0 %v2392_v59, %s3130_s29  ;;  %s2857_s29 = sld [smem:[#allocation8 + $0x5d]]  ;;  %v2097_v1 = vmul.f32 %v2094_v35, %v4174_v0 }
 0x491   : > { %1975 = vrot.lane.b32.xlu1 %v1967_v31, %s3133_s23  ;;  %1973 = vrot.lane.b32.xlu0 %v1966_v15, %s3133_s23  ;;  %v2208_v15 = vmul.f32 %v2205_v16, %v4164_v18 }
 0x493   : > { %v2408_v57 = vstv %s2857_s29  ;;  %s4515_s29 = sld [smem:[#allocation8 + $0x46]] }
 0x494   : > { %v2409_v41 = vmul.f32 %v2408_v57, %v4119_v62  ;;  %v2411_v62 = vmul.f32 %v2408_v57, %v4126_v45  ;;  %v2410_v22 = vmul.f32 %v2408_v57, %v4959_v9 }
 0x495   : > { %2084 = vrot.lane.b32.xlu1 %v2077_v28, %s3134_s5  ;;  %2082 = vrot.lane.b32.xlu0 %v2076_v51, %s3134_s5  ;;  %v2316_v28 = vstv %s2852_s20  ;;  %s2860_s20 = sld [smem:[#allocation8 + $0x60]] }
 0x499   : > { %2193 = vrot.lane.b32.xlu1 %v2187_v8, %s3131_s6  ;;  %2086 = vrot.lane.b32.xlu0 %v2078_v10, %s3134_s5  ;;  %v2318_v8 = vmul.f32 %v2316_v28, %v4965_v11  ;;  %v2317_v10 = vmul.f32 %v2316_v28, %v4143_v55 }
 0x49d   : > { %2197 = vrot.lane.b32.xlu1 %v2189_v42, %s3131_s6  ;;  %2195 = vrot.lane.b32.xlu0 %v2188_v39, %s3131_s6 }
 0x4a1   : > { %2306 = vrot.lane.b32.xlu1 %v2299_v58, %s3132_s10  ;;  %2304 = vrot.lane.b32.xlu0 %v2298_v27, %s3132_s10  ;;  %v2319_v27 = vmul.f32 %v2316_v28, %v4150_v20  ;;  %v1996_v28 = vstv %s4515_s29 }
 0x4a3   : > { %v1858_v54 = vpop.permute.xlu1 %1857  ;;  %v1856_v23 = vpop.permute.xlu0 %1855 }
 0x4a4   : > { %1865 = vst.msk [vmem:[#allocation3 + $0x28] sm:$0xff] %vm222_vm12, %v1858_v54  ;;  %v4452_v34 = vsel %vm222_vm12, %v1856_v23, %v1858_v54 }
 0x4a5   : > { %1863 = vst.msk [vmem:[#allocation3 + $0x18] sm:$0xff] %vm676_vm0, %v1856_v23  ;;  %2415 = vrot.lane.b32.xlu1 %v2409_v41, %s3129_s26  ;;  %2308 = vrot.lane.b32.xlu0 %v2300_v53, %s3132_s10  ;;  %v2224_v53 = vstv %s2847_s22  ;;  %s2861_s22 = sld [smem:[#allocation8 + $0x61]] }
 0x4a6   : > { %v2225_v35 = vmul.f32 %v2224_v53, %v4167_v25  ;;  %v2227_v16 = vmul.f32 %v2224_v53, %v4174_v0 }
 0x4a7   : > { %v4457_v61 = vpop.permute.xlu1 %1878  ;;  %v4459_v29 = vpop.permute.xlu0 %1876 }
 0x4a9   : > { %2419 = vrot.lane.b32.xlu1 %v2411_v62, %s3129_s26  ;;  %2417 = vrot.lane.b32.xlu0 %v2410_v22, %s3129_s26  ;;  %s2858_s26 = sld [smem:[#allocation8 + $0x5e]]  ;;  %v2226_v22 = vmul.f32 %v2224_v53, %v4970_v30 }
 0x4ab   : > { %v4465_v32 = vpop.permute.xlu1 %1895  ;;  %v4467_v52 = vpop.permute.xlu0 %1880 }
 0x4ad   : > { %2103 = vrot.lane.b32.xlu1 %v2096_v43, %s3133_s23  ;;  %2101 = vrot.lane.b32.xlu0 %v2095_v37, %s3133_s23  ;;  %v2335_v43 = vstv %s2853_s24  ;;  %s2646_s24 = scalar_lea.sflag [#allocation6], %s3312_s4 }
 0x4ae   : > { %v2336_v37 = vmul.f32 %v2335_v43, %v4157_v63 }
 0x4af   : > { %v4473_v45 = vpop.permute.xlu1 %1899  ;;  %v4475_v9 = vpop.permute.xlu0 %1897  ;;  %v2427_v42 = vstv %s2858_s26  ;;  %s4555_s26 = sld [smem:[#allocation8 + $0x54]] }
 0x4b0   : > { %v2428_v58 = vmul.f32 %v2427_v42, %v4133_v17  ;;  %v2430_v23 = vmul.f32 %v2427_v42, %v4140_v14  ;;  %v2429_v41 = vmul.f32 %v2427_v42, %v4962_v19  ;;  %v1998_v42 = vmul.f32 %v1996_v28, %v4972_v38 }
 0x4b1   : > { %2212 = vrot.lane.b32.xlu1 %v2206_v44, %s3134_s5  ;;  %2105 = vrot.lane.b32.xlu0 %v2097_v1, %s3133_s23 }
 0x4b3   : > { %v4481_v59 = vpop.permute.xlu1 %2008  ;;  %v4483_v31 = vpop.permute.xlu0 %2006 }
 0x4b5   : > { %2216 = vrot.lane.b32.xlu1 %v2208_v15, %s3134_s5  ;;  %2214 = vrot.lane.b32.xlu0 %v2207_v21, %s3134_s5  ;;  %v2338_v15 = vmul.f32 %v2335_v43, %v4164_v18  ;;  %v2337_v21 = vmul.f32 %v2335_v43, %v4968_v50 }
 0x4b7   : > { %v4489_v51 = vpop.permute.xlu1 %1914  ;;  %v2011_v7 = vpop.permute.xlu0 %2010 }
 0x4b9   : > { %2325 = vrot.lane.b32.xlu1 %v2318_v8, %s3131_s6  ;;  %2323 = vrot.lane.b32.xlu0 %v2317_v10, %s3131_s6  ;;  %v2446_v8 = vstv %s2859_s9  ;;  %v2013_v10 = vsel %vm559_vm8, %v4481_v59, %v2011_v7 }
 0x4bb   : > { %v4495_v39 = vpop.permute.xlu1 %1918  ;;  %v4497_v49 = vpop.permute.xlu0 %1916 }
 0x4bd   : > { %2434 = vrot.lane.b32.xlu1 %v2428_v58, %s3132_s10  ;;  %2327 = vrot.lane.b32.xlu0 %v2319_v27, %s3131_s6 }
 0x4bf   : > { %v4503_v57 = vpop.permute.xlu1 %2027  ;;  %v4505_v54 = vpop.permute.xlu0 %2025 }
 0x4c1   : > { %2438 = vrot.lane.b32.xlu1 %v2430_v23, %s3132_s10  ;;  %2436 = vrot.lane.b32.xlu0 %v2429_v41, %s3132_s10  ;;  %s2854_s10 = sld [smem:[#allocation8 + $0x5a]]  ;;  %v2448_v23 = vmul.f32 %v2446_v8, %v4965_v11  ;;  %v2447_v41 = vmul.f32 %v2446_v8, %v4143_v55  ;;  %v2449_v11 = vmul.f32 %v2446_v8, %v4150_v20 }
 0x4c3   : > { %v4511_v17 = vpop.permute.xlu1 %2136  ;;  %v2030_v62 = vpop.permute.xlu0 %2029 }
 0x4c4   : > { %v2032_v53 = vsel %vm579_vm9, %v4503_v57, %v2030_v62 }
 0x4c5   : > { %2233 = vrot.lane.b32.xlu1 %v2226_v22, %s3133_s23  ;;  %2231 = vrot.lane.b32.xlu0 %v2225_v35, %s3133_s23  ;;  %v2017_v35 = vadd.f32 %v2013_v10, %v1998_v42 }
 0x4c7   : > { %v2141_v14 = vpop.permute.xlu1 %2140  ;;  %v4519_v19 = vpop.permute.xlu0 %2138  ;;  %v2354_v22 = vstv %s2854_s10  ;;  %v2036_v7 = vadd.f32 %v2032_v53, %v2017_v35 }
 0x4c8   : > { %v2357_v20 = vmul.f32 %v2354_v22, %v4174_v0  ;;  %v2356_v8 = vmul.f32 %v2354_v22, %v4970_v30 }
 0x4c9   : > { %2342 = vrot.lane.b32.xlu1 %v2336_v37, %s3134_s5  ;;  %2235 = vrot.lane.b32.xlu0 %v2227_v16, %s3133_s23  ;;  %v2355_v16 = vmul.f32 %v2354_v22, %v4167_v25 }
 0x4cb   : > { %v4525_v44 = vpop.permute.xlu1 %1935  ;;  %v4527_v1 = vpop.permute.xlu0 %1933 }
 0x4cd   : > { %2346 = vrot.lane.b32.xlu1 %v2338_v15, %s3134_s5  ;;  %2344 = vrot.lane.b32.xlu0 %v2337_v21, %s3134_s5  ;;  %v2126_v21 = vstv %s4536_s17 }
 0x4ce   : > { %v2128_v53 = vmul.f32 %v2126_v21, %v4972_v38 }
 0x4cf   : > { %v2045_v58 = vpop.permute.xlu1 %2044  ;;  %v4541_v27 = vpop.permute.xlu0 %1937 }
 0x4d1   : > { %2455 = vrot.lane.b32.xlu1 %v2448_v23, %s3131_s6  ;;  %2453 = vrot.lane.b32.xlu0 %v2447_v41, %s3131_s6  ;;  %v2465_v41 = vstv %s2860_s20 }
 0x4d3   : > { %v2049_v43 = vpop.permute.xlu1 %2048  ;;  %v2047_v37 = vpop.permute.xlu0 %2046 }
 0x4d4   : > { %v4552_v55 = vsel %vm599_vm10, %v2045_v58, %v2047_v37  ;;  %v2051_v62 = vsel %vm599_vm10, %v2047_v37, %v2049_v43  ;;  %v2143_v58 = vsel %vm559_vm8, %v4519_v19, %v2141_v14  ;;  %v2467_v37 = vmul.f32 %v2465_v41, %v4968_v50 }
 0x4d5   : > { %v4557_v15 = vadd.f32 %v2051_v62, %v2036_v7  ;;  %2361 = vrot.lane.b32.xlu1 %v2355_v16, %s3133_s23  ;;  %2457 = vrot.lane.b32.xlu0 %v2449_v11, %s3131_s6  ;;  %v2147_v35 = vadd.f32 %v2143_v58, %v2128_v53  ;;  %v2466_v16 = vmul.f32 %v2465_v41, %v4157_v63  ;;  %v2256_v11 = vstv %s4555_s26  ;;  %s2827_s6 = sld [smem:[#allocation8 + $0x3f]] }
 0x4d6   : > { %v2484_v14 = vstv %s2861_s22  ;;  %v2468_v53 = vmul.f32 %v2465_v41, %v4164_v18  ;;  %v2142_v41 = vsel %vm559_vm8, %v4511_v17, %v4519_v19  ;;  %v2257_v17 = vmul.f32 %v2256_v11, %v4971_v60 }
 0x4d7   : > { %v2158_v10 = vpop.permute.xlu1 %2157  ;;  %v2156_v42 = vpop.permute.xlu0 %2155  ;;  %v2485_v58 = vmul.f32 %v2484_v14, %v4167_v25 }
 0x4d8   : > { %v2161_v23 = vsel %vm579_vm9, %v2156_v42, %v2158_v10 }
 0x4d9   : > { %2365 = vrot.lane.b32.xlu1 %v2357_v20, %s3133_s23  ;;  %2363 = vrot.lane.b32.xlu0 %v2356_v8, %s3133_s23  ;;  %v2258_v20 = vmul.f32 %v2256_v11, %v4972_v38 }
 0x4db   : > { %v2267_v7 = vpop.permute.xlu1 %2266  ;;  %v2160_v43 = vpop.permute.xlu0 %2159 }
 0x4dc   : > { %v2162_v22 = vsel %vm579_vm9, %v2158_v10, %v2160_v43 }
 0x4dd   : > { %v2166_v62 = vadd.f32 %v2162_v22, %v2147_v35  ;;  %2474 = vrot.lane.b32.xlu1 %v2467_v37, %s3134_s5  ;;  %2472 = vrot.lane.b32.xlu0 %v2466_v16, %s3134_s5  ;;  %v2487_v37 = vmul.f32 %v2484_v14, %v4174_v0  ;;  %v2486_v16 = vmul.f32 %v2484_v14, %v4970_v30 }
 0x4df   : > { %v2271_v42 = vpop.permute.xlu1 %2270  ;;  %v2269_v8 = vpop.permute.xlu0 %2268 }
 0x4e0   : > { %v2272_v50 = vsel %vm559_vm8, %v2267_v7, %v2269_v8  ;;  %v2273_v63 = vsel %vm559_vm8, %v2269_v8, %v2271_v42  ;;  %v2127_v7 = vmul.f32 %v2126_v21, %v4971_v60  ;;  %v1866_v21 = vstv %s2827_s6 }
 0x4e1   : > { %v2277_v10 = vadd.f32 %v2273_v63, %v2258_v20  ;;  %2491 = vrot.lane.b32.xlu1 %v2485_v58, %s3133_s23  ;;  %2476 = vrot.lane.b32.xlu0 %v2468_v53, %s3134_s5  ;;  %v1867_v11 = vmul.f32 %v1866_v21, %v4971_v60  ;;  %s2764_s5 = sshll.u32 %s3312_s4, 4 }
 0x4e2   : > { %v2146_v0 = vadd.f32 %v2142_v41, %v2127_v7  ;;  %v1882_v7 = vsel %vm559_vm8, %v4459_v29, %v4457_v61  ;;  %v1901_v29 = vsel %vm579_vm9, %v4465_v32, %v4475_v9 }
 0x4e3   : > { %v1955_v35 = vpop.permute.xlu1 %1954  ;;  %v1953_v43 = vpop.permute.xlu0 %1952 }
 0x4e4   : > { %v2165_v30 = vadd.f32 %v2161_v23, %v2146_v0  ;;  %v1883_v0 = vsel %vm559_vm8, %v4457_v61, %v4467_v52  ;;  %v1902_v61 = vsel %vm579_vm9, %v4475_v9, %v4473_v45  ;;  %v1886_v52 = vadd.f32 %v1882_v7, %v1867_v11 }
 0x4e5   : > { %2495 = vrot.lane.b32.xlu1 %v2487_v37, %s3133_s23  ;;  %2493 = vrot.lane.b32.xlu0 %v2486_v16, %s3133_s23  ;;  %s4601_s23 = sld [smem:[#allocation8 + $0x5b]]  ;;  %v2276_v16 = vadd.f32 %v2272_v50, %v2257_v17  ;;  %v1939_v45 = vsel %vm619_vm11, %v4527_v1, %v4525_v44  ;;  %v1940_v9 = vsel %vm619_vm11, %v4525_v44, %v4541_v27 }
 0x4e6   : > { %v1958_v7 = vsel %vm639_vm14, %v1953_v43, %v1955_v35 }
 0x4e7   : > { %v4587_v18 = vpop.permute.xlu1 %2063  ;;  %v1957_v25 = vpop.permute.xlu0 %1956 }
 0x4eb   : > { %v4593_v22 = vpop.permute.xlu1 %2067  ;;  %v4595_v42 = vpop.permute.xlu0 %2065  ;;  %v2386_v17 = vstv %s4601_s23 }
 0x4ef   : > { %v2177_v14 = vpop.permute.xlu1 %2176  ;;  %v2175_v20 = vpop.permute.xlu0 %2174 }
 0x4f0   : > { %v2180_v8 = vsel %vm599_vm10, %v2175_v20, %v2177_v14 }
 0x4f1   : > { %v4598_v58 = vadd.f32 %v2180_v8, %v2165_v30 }
 0x4f3   : > { %v2286_v53 = vpop.permute.xlu1 %2285  ;;  %v2179_v63 = vpop.permute.xlu0 %2178 }
 0x4f4   : > { %v2181_v37 = vsel %vm599_vm10, %v2177_v14, %v2179_v63 }
 0x4f5   : > { %v4604_v19 = vadd.f32 %v2181_v37, %v2166_v62  ;;  %v1868_v62 = vmul.f32 %v1866_v21, %v4972_v38  ;;  %v1920_v37 = vsel %vm599_vm10, %v4489_v51, %v4497_v49  ;;  %v1905_v21 = vadd.f32 %v1901_v29, %v1886_v52 }
 0x4f7   : > { %v2290_v41 = vpop.permute.xlu1 %2289  ;;  %v2288_v23 = vpop.permute.xlu0 %2287  ;;  %v1887_v8 = vadd.f32 %v1883_v0, %v1868_v62  ;;  %v1959_v0 = vsel %vm639_vm14, %v1955_v35, %v1957_v25 }
 0x4f8   : > { %v2291_v30 = vsel %vm579_vm9, %v2286_v53, %v2288_v23  ;;  %v2292_v14 = vsel %vm579_vm9, %v2288_v23, %v2290_v41  ;;  %v1924_v41 = vadd.f32 %v1920_v37, %v1905_v21 }
 0x4f9   : > { %v4616_v50 = vadd.f32 %v2291_v30, %v2276_v16  ;;  %v4618_v20 = vadd.f32 %v2292_v14, %v2277_v10  ;;  %v1921_v10 = vsel %vm599_vm10, %v4497_v49, %v4495_v39  ;;  %v1906_v16 = vadd.f32 %v1902_v61, %v1887_v8 }
 0x4fa   : > { %v2388_v39 = vmul.f32 %v2386_v17, %v4972_v38  ;;  %v1943_v14 = vadd.f32 %v1939_v45, %v1924_v41  ;;  %v1997_v45 = vmul.f32 %v1996_v28, %v4971_v60 }
 0x4fb   : > { %v2399_v53 = vpop.permute.xlu1 %2398  ;;  %v2397_v63 = vpop.permute.xlu0 %2396  ;;  %v1925_v51 = vadd.f32 %v1921_v10, %v1906_v16  ;;  %v2012_v16 = vsel %vm559_vm8, %v4483_v31, %v4481_v59 }
 0x4fc   : > { %v4634_v32 = vsel %vm559_vm8, %v2397_v63, %v2399_v53  ;;  %v1962_v62 = vadd.f32 %v1958_v7, %v1943_v14  ;;  %v2016_v41 = vadd.f32 %v2012_v16, %v1997_v45 }
 0x4fd   : > { %v1944_v11 = vadd.f32 %v1940_v9, %v1925_v51  ;;  %v2031_v9 = vsel %vm579_vm9, %v4505_v54, %v4503_v57  ;;  %v2070_v57 = vsel %vm619_vm11, %v4595_v42, %v4593_v22 }
 0x4ff   : > { %v1972_v23 = vpop.permute.xlu1 %1971  ;;  %v2401_v49 = vpop.permute.xlu0 %2400  ;;  %v1963_v29 = vadd.f32 %v1959_v0, %v1944_v11 }
 0x500   : > { %v2403_v30 = vsel %vm559_vm8, %v2399_v53, %v2401_v49  ;;  %v2069_v49 = vsel %vm619_vm11, %v4587_v18, %v4595_v42 }
 0x501   : > { %v4648_v1 = vadd.f32 %v2403_v30, %v2388_v39  ;;  %v2035_v39 = vadd.f32 %v2031_v9, %v2016_v41 }
 0x503   : > { %v1976_v44 = vpop.permute.xlu1 %1975  ;;  %v1974_v27 = vpop.permute.xlu0 %1973  ;;  %v2054_v7 = vadd.f32 %v4552_v55, %v2035_v39  ;;  %v2074_v55 = vadd.f32 %v2070_v57, %v4557_v15 }
 0x504   : > { %v1977_v61 = vsel %vm659_vm15, %v1972_v23, %v1974_v27  ;;  %v1978_v38 = vsel %vm659_vm15, %v1974_v27, %v1976_v44 }
 0x505   : > { %v1981_v52 = vadd.f32 %v1977_v61, %v1962_v62  ;;  %v1982_v8 = vadd.f32 %v1978_v38, %v1963_v29  ;;  %v2073_v28 = vadd.f32 %v2069_v49, %v2054_v7 }
 0x507   : > { %v2085_v43 = vpop.permute.xlu1 %2084  ;;  %1987 = vrot.lane.b32.xlu1 %v1982_v8, %s3135_s11  ;;  %1985 = vrot.lane.b32.xlu0 %v1981_v52, %s3135_s11  ;;  %v2083_v35 = vpop.permute.xlu0 %2082 }
 0x508   : > { %v2088_v31 = vsel %vm639_vm14, %v2083_v35, %v2085_v43 }
 0x509   : > { %v2092_v54 = vadd.f32 %v2088_v31, %v2073_v28 }
 0x50b   : > { %v2194_v25 = vpop.permute.xlu1 %2193  ;;  %v2087_v53 = vpop.permute.xlu0 %2086 }
 0x50c   : > { %v2089_v11 = vsel %vm639_vm14, %v2085_v43, %v2087_v53 }
 0x50d   : > { %v2093_v29 = vadd.f32 %v2089_v11, %v2074_v55 }
 0x50f   : > { %v2198_v63 = vpop.permute.xlu1 %2197  ;;  %v2196_v37 = vpop.permute.xlu0 %2195 }
 0x510   : > { %v2199_v53 = vsel %vm619_vm11, %v2194_v25, %v2196_v37  ;;  %v2200_v41 = vsel %vm619_vm11, %v2196_v37, %v2198_v63 }
 0x511   : > { %v2203_v9 = vadd.f32 %v2199_v53, %v4598_v58  ;;  %v2204_v57 = vadd.f32 %v2200_v41, %v4604_v19 }
 0x513   : > { %v2307_v10 = vpop.permute.xlu1 %2306  ;;  %v2305_v21 = vpop.permute.xlu0 %2304 }
 0x517   : > { %v4663_v51 = vpop.permute.xlu1 %2415  ;;  %v2309_v23 = vpop.permute.xlu0 %2308 }
 0x51b   : > { %v4669_v0 = vpop.permute.xlu1 %2419  ;;  %v4671_v59 = vpop.permute.xlu0 %2417 }
 0x51f   : > { %v2104_v30 = vpop.permute.xlu1 %2103  ;;  %v2102_v14 = vpop.permute.xlu0 %2101 }
 0x520   : > { %v2107_v18 = vsel %vm659_vm15, %v2102_v14, %v2104_v30 }
 0x521   : > { %v2111_v62 = vadd.f32 %v2107_v18, %v2092_v54 }
 0x523   : > { %v2213_v44 = vpop.permute.xlu1 %2212  ;;  %2115 = vrot.lane.b32.xlu0 %v2111_v62, %s3135_s11  ;;  %v2106_v27 = vpop.permute.xlu0 %2105  ;;  %v2310_v62 = vsel %vm599_vm10, %v2305_v21, %v2307_v10 }
 0x524   : > { %v2108_v61 = vsel %vm659_vm15, %v2104_v30, %v2106_v27  ;;  %v2314_v27 = vadd.f32 %v2310_v62, %v4616_v50  ;;  %v2387_v50 = vmul.f32 %v2386_v17, %v4971_v60 }
 0x525   : > { %v2112_v38 = vadd.f32 %v2108_v61, %v2093_v29  ;;  %v2311_v29 = vsel %vm599_vm10, %v2307_v10, %v2309_v23 }
 0x526   : > { %v2315_v61 = vadd.f32 %v2311_v29, %v4618_v20  ;;  %v2520_v29 = vld [vmem:[#allocation3 + $0x18] sm:$0xff] }
 0x527   : > { %v2217_v52 = vpop.permute.xlu1 %2216  ;;  %2117 = vrot.lane.b32.xlu1 %v2112_v38, %s3135_s11  ;;  %v2215_v22 = vpop.permute.xlu0 %2214 }
 0x528   : > { %v2218_v45 = vsel %vm639_vm14, %v2213_v44, %v2215_v22  ;;  %v2219_v31 = vsel %vm639_vm14, %v2215_v22, %v2217_v52 }
 0x529   : > { %v2222_v39 = vadd.f32 %v2218_v45, %v2203_v9  ;;  %v2223_v30 = vadd.f32 %v2219_v31, %v2204_v57 }
 0x52b   : > { %v2326_v42 = vpop.permute.xlu1 %2325  ;;  %v2324_v8 = vpop.permute.xlu0 %2323 }
 0x52c   : > { %v2329_v19 = vsel %vm619_vm11, %v2324_v8, %v2326_v42 }
 0x52d   : > { %v2333_v45 = vadd.f32 %v2329_v19, %v2314_v27  ;;  %v2522_v19 = vld [vmem:[#allocation3 + $0x28] sm:$0xff] }
 0x52f   : > { %v2435_v43 = vpop.permute.xlu1 %2434  ;;  %v2328_v35 = vpop.permute.xlu0 %2327 }
 0x530   : > { %v2330_v44 = vsel %vm619_vm11, %v2326_v42, %v2328_v35 }
 0x531   : > { %v2334_v9 = vadd.f32 %v2330_v44, %v2315_v61 }
 0x533   : > { %v2439_v15 = vpop.permute.xlu1 %2438  ;;  %v2437_v16 = vpop.permute.xlu0 %2436 }
 0x534   : > { %v2440_v60 = vsel %vm599_vm10, %v2435_v43, %v2437_v16  ;;  %v2441_v17 = vsel %vm599_vm10, %v2437_v16, %v2439_v15 }
 0x537   : > { %v2234_v49 = vpop.permute.xlu1 %2233  ;;  %v2232_v7 = vpop.permute.xlu0 %2231 }
 0x538   : > { %v2237_v28 = vsel %vm659_vm15, %v2232_v7, %v2234_v49  ;;  %v2406_v7 = vadd.f32 %v4634_v32, %v2387_v50 }
 0x539   : > { %v2241_v54 = vadd.f32 %v2237_v28, %v2222_v39  ;;  %v2421_v39 = vsel %vm579_vm9, %v4663_v51, %v4671_v59 }
 0x53a   : > { %v2425_v57 = vadd.f32 %v2421_v39, %v2406_v7 }
 0x53b   : > { %v2343_v25 = vpop.permute.xlu1 %2342  ;;  %2245 = vrot.lane.b32.xlu0 %v2241_v54, %s3135_s11  ;;  %v2236_v14 = vpop.permute.xlu0 %2235 }
 0x53c   : > { %v2238_v11 = vsel %vm659_vm15, %v2234_v49, %v2236_v14  ;;  %v2422_v49 = vsel %vm579_vm9, %v4671_v59, %v4669_v0  ;;  %v2444_v0 = vadd.f32 %v2440_v60, %v2425_v57  ;;  %v1483_v57 = vsel %vm1482_vm1, %v4286_v3, %v4308_v12 }
 0x53d   : > { %v2242_v58 = vadd.f32 %v2238_v11, %v2223_v30  ;;  %v2426_v54 = vadd.f32 %v2422_v49, %v4648_v1 }
 0x53f   : > { %v2347_v18 = vpop.permute.xlu1 %2346  ;;  %2247 = vrot.lane.b32.xlu1 %v2242_v58, %s3135_s11  ;;  %v2345_v63 = vpop.permute.xlu0 %2344  ;;  %v2445_v59 = vadd.f32 %v2441_v17, %v2426_v54  ;;  %v1487_v54 = vadd.f32 %v1483_v57, %v4280_v5  ;;  %v1521_v5 = vsel %vm1520_vm3, %v4294_v26, %v4312_v56 }
 0x540   : > { %v2348_v22 = vsel %vm639_vm14, %v2343_v25, %v2345_v63  ;;  %v2349_v53 = vsel %vm639_vm14, %v2345_v63, %v2347_v18 }
 0x541   : > { %v2352_v21 = vadd.f32 %v2348_v22, %v2333_v45  ;;  %v2353_v41 = vadd.f32 %v2349_v53, %v2334_v9 }
 0x543   : > { %v2456_v37 = vpop.permute.xlu1 %2455  ;;  %v2454_v55 = vpop.permute.xlu0 %2453 }
 0x544   : > { %v2459_v51 = vsel %vm619_vm11, %v2454_v55, %v2456_v37 }
 0x545   : > { %v2463_v58 = vadd.f32 %v2459_v51, %v2444_v0 }
 0x547   : > { %v2362_v38 = vpop.permute.xlu1 %2361  ;;  %v2458_v52 = vpop.permute.xlu0 %2457 }
 0x548   : > { %v2460_v30 = vsel %vm619_vm11, %v2456_v37, %v2458_v52 }
 0x549   : > { %v2464_v18 = vadd.f32 %v2460_v30, %v2445_v59  ;;  %v1484_v30 = vsel %vm1482_vm1, %v4308_v12, %v4290_v46  ;;  %v672_v59 = vsel %vm222_vm12, %v4016_v4, %v4012_v2  ;;  %v1503_v46 = vsel %vm1501_vm2, %v4310_v24, %v4288_v48 }
 0x54a   : > { %v1522_v4 = vsel %vm1520_vm3, %v4312_v56, %v4298_v13  ;;  %v4979_v56 = vld [vmem:[#allocation24_spill] sm:$0xff] }
 0x54b   : > { %v2366_v10 = vpop.permute.xlu1 %2365  ;;  %v2364_v23 = vpop.permute.xlu0 %2363 }
 0x54c   : > { %v2367_v8 = vsel %vm659_vm15, %v2362_v38, %v2364_v23  ;;  %v2368_v42 = vsel %vm659_vm15, %v2364_v23, %v2366_v10 }
 0x54d   : > { %v2371_v20 = vadd.f32 %v2367_v8, %v2352_v21  ;;  %v2372_v35 = vadd.f32 %v2368_v42, %v2353_v41 }
 0x54f   : > { %v2475_v31 = vpop.permute.xlu1 %2474  ;;  %2377 = vrot.lane.b32.xlu1 %v2372_v35, %s3135_s11  ;;  %2375 = vrot.lane.b32.xlu0 %v2371_v20, %s3135_s11  ;;  %v2473_v28 = vpop.permute.xlu0 %2472 }
 0x550   : > { %v2478_v14 = vsel %vm639_vm14, %v2473_v28, %v2475_v31 }
 0x551   : > { %v2482_v43 = vadd.f32 %v2478_v14, %v2463_v58 }
 0x553   : > { %v2492_v32 = vpop.permute.xlu1 %2491  ;;  %v2477_v25 = vpop.permute.xlu0 %2476 }
 0x554   : > { %v2479_v11 = vsel %vm639_vm14, %v2475_v31, %v2477_v25  ;;  %v1488_v25 = vadd.f32 %v1484_v30, %v672_v59 }
 0x555   : > { %v2483_v63 = vadd.f32 %v2479_v11, %v2464_v18 }
 0x556   : > { %v1507_v12 = vadd.f32 %v1503_v46, %v1488_v25 }
 0x557   : > { %v2496_v15 = vpop.permute.xlu1 %2495  ;;  %v2494_v16 = vpop.permute.xlu0 %2493 }
 0x558   : > { %v2497_v1 = vsel %vm659_vm15, %v2492_v32, %v2494_v16  ;;  %v2498_v55 = vsel %vm659_vm15, %v2494_v16, %v2496_v15  ;;  %v1502_v32 = vsel %vm1501_vm2, %v4284_v36, %v4310_v24  ;;  %v1540_v36 = vsel %vm1539_vm4, %v4292_v6, %v4314_v47  ;;  %v4978_v24 = vld [vmem:[#allocation45_spill] sm:$0xff] }
 0x559   : > { %v2501_v62 = vadd.f32 %v2497_v1, %v2482_v43  ;;  %v2502_v37 = vadd.f32 %v2498_v55, %v2483_v63  ;;  %v1506_v3 = vadd.f32 %v1502_v32, %v1487_v54  ;;  %v1526_v18 = vadd.f32 %v1522_v4, %v1507_v12 }
 0x55a   : > { %v1558_v63 = vsel %vm222_vm12, %v4302_v33, %v4316_v40  ;;  %v1541_v15 = vsel %vm1539_vm4, %v4314_v47, %v4978_v24  ;;  %v1559_v6 = vsel %vm222_vm12, %v4316_v40, %v4979_v56 }
 0x55b   : > { %2507 = vrot.lane.b32.xlu1 %v2502_v37, %s3135_s11  ;;  %2505 = vrot.lane.b32.xlu0 %v2501_v62, %s3135_s11  ;;  %v1525_v58 = vadd.f32 %v1521_v5, %v1506_v3  ;;  %v1545_v16 = vadd.f32 %v1541_v15, %v1526_v18  ;;  %v4980_v62 = vld [vmem:[#allocation29_spill] sm:$0xff] }
 0x55c   : > { %v4981_v37 = vld [vmem:[#allocation21_spill] sm:$0xff] }
 0x55d   : > { %v1544_v43 = vadd.f32 %v1540_v36, %v1525_v58 }
 0x55f   : > { %2528 = vrot.lane.b32.xlu1 %v4452_v34, %s3137_s30  ;;  %2526 = vrot.lane.b32.xlu0 %v2520_v29, %s3137_s30  ;;  %v1562_v1 = vadd.f32 %v1558_v63, %v1544_v43  ;;  %v1577_v29 = vsel %vm1576_vm5, %v4981_v37, %v4980_v62 }
 0x561   : > { %v1581_v33 = vadd.f32 %v1577_v29, %v1562_v1 }
 0x563   : > { %2530 = vrot.lane.b32.xlu0 %v2522_v19, %s3137_s30  ;;  %v1563_v19 = vadd.f32 %v1559_v6, %v1545_v16 }
 0x579   : > { %v1988_v44 = vpop.permute.xlu1 %1987  ;;  %v1986_v27 = vpop.permute.xlu0 %1985 }
 0x57a   : > { %1995 = vst.msk [vmem:[#allocation3 + $0x40] sm:$0xff] %vm222_vm12, %v1988_v44  ;;  %v1989_v61 = vsel %vm222_vm12, %v1986_v27, %v1988_v44 }
 0x57b   : > { %1993 = vst.msk [vmem:[#allocation3 + $0x30] sm:$0xff] %vm676_vm0, %v1986_v27  ;;  %2546 = vrot.lane.b32.xlu0 %v1989_v61, %s3136_s25  ;;  %v4982_v61 = vld [vmem:[#allocation26_spill] sm:$0xff] }
 0x57c   : > { %v1578_v47 = vsel %vm1576_vm5, %v4980_v62, %v4982_v61 }
 0x581   : > { %v2540_v52 = vld [vmem:[#allocation3 + $0x40] sm:$0xff] }
 0x582   : > { %v2538_v38 = vld [vmem:[#allocation3 + $0x30] sm:$0xff] }
 0x583   : > { %2544 = vrot.lane.b32.xlu1 %v2538_v38, %s3136_s25  ;;  %v2516_v38 = vld [vmem:[#allocation3] sm:$0xff] }
 0x587   : > { %2548 = vrot.lane.b32.xlu1 %v2540_v52, %s3136_s25  ;;  %s215_s25 = scalar_lea.vmem [#allocation11], %s2764_s5 }
 0x588   : > { %s2660_s30 = sshll.u32 %s215_s25, 4  ;;  %s4819_s30 = int_to_ptr.vmem [resolvable:$true] %s2660_s30 }
 0x589   : > { %s3041_s29 = scalar_lea.vmem %s4819_s30, 256 }
 0x58a   : > { %p3042_p12 = scmp.ne.s32.totalorder %s4819_s30, %s3041_s29 }
 0x58c   : > { %p3043_p9 = pnand %p3042_p12, %p4983_p0 }
 0x58e   : > { %p3044_p3 = pneg %p3043_p9 }
 0x595   : > { %v2116_v34 = vpop.permute.xlu0 %2115 }
 0x596   : > { %2123 = vst.msk [vmem:[#allocation3 + $0x48] sm:$0xff] %vm676_vm0, %v2116_v34 }
 0x599   : > { %v2118_v22 = vpop.permute.xlu1 %2117 }
 0x59a   : > { %v2119_v53 = vsel %vm222_vm12, %v2116_v34, %v2118_v22  ;;  %2125 = vst.msk [vmem:[#allocation3 + $0x58] sm:$0xff] %vm222_vm12, %v2118_v22  ;;  %v1582_v34 = vadd.f32 %v1578_v47, %v1563_v19  ;;  %v2518_v22 = vadd.f32 %v2516_v38, %v1581_v33 }
 0x59b   : > { %2564 = vrot.lane.b32.xlu1 %v2119_v53, %s3139_s7 }
 0x59d   : > { %v2556_v45 = vld [vmem:[#allocation3 + $0x48] sm:$0xff] }
 0x59e   : > { %2562 = vrot.lane.b32.xlu0 %v2556_v45, %s3139_s7 }
 0x5a1   : > { %v2558_v9 = vld [vmem:[#allocation3 + $0x58] sm:$0xff] }
 0x5a2   : > { %2566 = vrot.lane.b32.xlu0 %v2558_v9, %s3139_s7  ;;  %v2517_v9 = vld [vmem:[#allocation3 + $0x8] sm:$0xff] }
 0x5ad   : > { %v2246_v21 = vpop.permute.xlu0 %2245 }
 0x5ae   : > { %2253 = vst.msk [vmem:[#allocation3 + $0x60] sm:$0xff] %vm676_vm0, %v2246_v21 }
 0x5b1   : > { %v2248_v41 = vpop.permute.xlu1 %2247 }
 0x5b2   : > { %v2249_v10 = vsel %vm222_vm12, %v2246_v21, %v2248_v41  ;;  %2255 = vst.msk [vmem:[#allocation3 + $0x70] sm:$0xff] %vm222_vm12, %v2248_v41 }
 0x5b3   : > { %2582 = vrot.lane.b32.xlu0 %v2249_v10, %s3138_s18  ;;  %v2519_v10 = vadd.f32 %v2517_v9, %v1582_v34 }
 0x5b5   : > { %v2574_v23 = vld [vmem:[#allocation3 + $0x60] sm:$0xff] }
 0x5b6   : > { %2580 = vrot.lane.b32.xlu1 %v2574_v23, %s3138_s18 }
 0x5b9   : > { %v2576_v8 = vld [vmem:[#allocation3 + $0x70] sm:$0xff] }
 0x5ba   : > { %2584 = vrot.lane.b32.xlu1 %v2576_v8, %s3138_s18 }
 0x5c1   : > { %v2378_v42 = vpop.permute.xlu1 %2377  ;;  %v2376_v50 = vpop.permute.xlu0 %2375 }
 0x5c2   : > { %2385 = vst.msk [vmem:[#allocation3 + $0x88] sm:$0xff] %vm222_vm12, %v2378_v42  ;;  %v2379_v20 = vsel %vm222_vm12, %v2376_v50, %v2378_v42 }
 0x5c3   : > { %2383 = vst.msk [vmem:[#allocation3 + $0x78] sm:$0xff] %vm676_vm0, %v2376_v50  ;;  %2600 = vrot.lane.b32.xlu1 %v2379_v20, %s3135_s11 }
 0x5c9   : > { %v2594_v7 = vld [vmem:[#allocation3 + $0x88] sm:$0xff] }
 0x5ca   : > { %v2592_v35 = vld [vmem:[#allocation3 + $0x78] sm:$0xff] }
 0x5cb   : > { %2598 = vrot.lane.b32.xlu0 %v2592_v35, %s3135_s11 }
 0x5cd   : > { %v2508_v39 = vpop.permute.xlu1 %2507  ;;  %v2506_v49 = vpop.permute.xlu0 %2505 }
 0x5ce   : > { %2515 = vst.msk [vmem:[#allocation3 + $0xa0] sm:$0xff] %vm222_vm12, %v2508_v39  ;;  %v2509_v31 = vsel %vm222_vm12, %v2506_v49, %v2508_v39 }
 0x5cf   : > { %2513 = vst.msk [vmem:[#allocation3 + $0x90] sm:$0xff] %vm676_vm0, %v2506_v49  ;;  %2602 = vrot.lane.b32.xlu0 %v2594_v7, %s3135_s11  ;;  %s2870_s11 = sshll.u32 %s3183_s16, 8  ;;  %s3141_s16 = smov [#allocation11]  }
 0x5d0   : > { %s3045_s9 = sshll.u32 %s3141_s16, 4  ;;  %s3046_s9 = int_to_ptr.vmem [resolvable:$false] %s3045_s9 }
 0x5d1   : > { %v2527_v17 = vpop.permute.xlu0 %2526  ;;  %v2529_v0 = vpop.permute.xlu1 %2528  ;;  %s3047_s10 = scalar_lea.vmem %s3046_s9, 512  ;;  %p3048_p5 = scmp.lt.s32.totalorder %s4819_s30, %s3046_s9 }
 0x5d2   : > { %v2532_v52 = vsel %vm1482_vm1, %v2527_v17, %v2529_v0  ;;  %p3049_p10 = scmp.lt.s32.totalorder %s3047_s10, %s3041_s29 }
 0x5d3   : > { %2618 = vrot.lane.b32.xlu0 %v2509_v31, %s3140_s8  ;;  %v2536_v53 = vadd.f32 %v2532_v52, %v2518_v22 }
 0x5d4   : > { %p3050_p1 = por %p3049_p10, %p3048_p5 }
 0x5d5   : > { %v2612_v60 = vld [vmem:[#allocation3 + $0xa0] sm:$0xff]  ;;  %v2531_v51 = vpop.permute.xlu0 %2530 }
 0x5d6   : > { %v2610_v28 = vld [vmem:[#allocation3 + $0x90] sm:$0xff]  ;;  %v2533_v21 = vsel %vm1482_vm1, %v2529_v0, %v2531_v51  ;;  %p3051_p6 = pnand %p3050_p1, %p3044_p3 }
 0x5d7   : > { %2616 = vrot.lane.b32.xlu1 %v2610_v28, %s3140_s8  ;;  %v2537_v20 = vadd.f32 %v2533_v21, %v2519_v10 }
 0x5db   : > { %2620 = vrot.lane.b32.xlu1 %v2612_v60, %s3140_s8  ;;  %s4817_s8 = scalar_lea.hbm %s4864_s3, %s2870_s11 }
 0x5ed   : > { %v2547_v14 = vpop.permute.xlu0 %2546 }
 0x5f5   : > { %v2545_v11 = vpop.permute.xlu1 %2544 }
 0x5f6   : > { %v2550_v40 = vsel %vm1501_vm2, %v2545_v11, %v2547_v14 }
 0x5f7   : > { %v2554_v23 = vadd.f32 %v2550_v40, %v2536_v53 }
 0x5f9   : > { %v2549_v26 = vpop.permute.xlu1 %2548 }
 0x5fa   : > { %v2551_v42 = vsel %vm1501_vm2, %v2547_v14, %v2549_v26 }
 0x5fb   : > { %v2555_v31 = vadd.f32 %v2551_v42, %v2537_v20 }
 0x60d   : > { %v2565_v13 = vpop.permute.xlu1 %2564 }
 0x610   : > { %v2563_v2 = vpop.permute.xlu0 %2562 }
 0x611   : > { %v2568_v41 = vsel %vm1520_vm3, %v2563_v2, %v2565_v13 }
 0x612   : > { %v2572_v35 = vadd.f32 %v2568_v41, %v2554_v23 }
 0x614   : > { %v2567_v48 = vpop.permute.xlu0 %2566 }
 0x615   : > { %v2569_v49 = vsel %vm1520_vm3, %v2565_v13, %v2567_v48 }
 0x616   : > { %v2573_v17 = vadd.f32 %v2569_v49, %v2555_v31 }
 0x625   : > { %v2583_v55 = vpop.permute.xlu0 %2582 }
 0x628   : > { %v2581_v44 = vpop.permute.xlu1 %2580 }
 0x629   : > { %v2586_v50 = vsel %vm1539_vm4, %v2581_v44, %v2583_v55 }
 0x62a   : > { %v2590_v28 = vadd.f32 %v2586_v50, %v2572_v35 }
 0x62c   : > { %v2585_v45 = vpop.permute.xlu1 %2584 }
 0x62d   : > { %v2587_v60 = vsel %vm1539_vm4, %v2583_v55, %v2585_v45 }
 0x62e   : > { %v2591_v59 = vadd.f32 %v2587_v60, %v2573_v17 }
 0x635   : > { %v2601_v39 = vpop.permute.xlu1 %2600 }
 0x63d   : > { %v2599_v27 = vpop.permute.xlu0 %2598 }
 0x63e   : > { %v2604_v7 = vsel %vm222_vm12, %v2599_v27, %v2601_v39 }
 0x63f   : > { %v2608_v57 = vadd.f32 %v2604_v7, %v2590_v28 }
 0x641   : > { %v2603_v8 = vpop.permute.xlu0 %2602 }
 0x642   : > { %v2605_v30 = vsel %vm222_vm12, %v2601_v39, %v2603_v8 }
 0x643   : > { %v2609_v25 = vadd.f32 %v2605_v30, %v2591_v59 }
 0x645   : > { %v2619_v51 = vpop.permute.xlu0 %2618 }
 0x649   : > { %v2617_v54 = vpop.permute.xlu1 %2616 }
 0x64a   : > { %v2622_v0 = vsel %vm1576_vm5, %v2617_v54, %v2619_v51 }
 0x64b   : > { %v2626_v32 = vadd.f32 %v2622_v0, %v2608_v57 }
 0x64d   : > { %v2862_v3 = vmul.f32 -1.442695, %v2626_v32  ;;  %v2621_v14 = vpop.permute.xlu1 %2620 }
 0x64e   : > { %v2623_v5 = vsel %vm1576_vm5, %v2619_v51, %v2621_v14 }
 0x64f   : > { %2959 = vpow2.f32 %v2862_v3  ;;  %v2627_v11 = vadd.f32 %v2623_v5, %v2609_v25 }
 0x651   : > { %v2863_v46 = vmul.f32 -1.442695, %v2627_v11 }
 0x653   : > { %2961 = vpow2.f32 %v2863_v46 }
 0x659   : > { %v2960_v12 = vpop.eup %2959 }
 0x65a   : > { %v2634_v58 = vadd.f32 1.0, %v2960_v12 }
 0x65c   : > { %2963 = vrcp.f32 %v2634_v58 }
 0x65d   : > { %v2962_v2 = vpop.eup %2961 }
 0x65e   : > { %v2635_v4 = vadd.f32 1.0, %v2962_v2 }
 0x660   : > { %2965 = vrcp.f32 %v2635_v4 }
 0x666   : > { %v2964_v36 = vpop.eup %2963 }
 0x667   : > { %2643 = vst [vmem:[%s215_s25] sm:$0xff] %v2964_v36 }
 0x66a   : > { %v2966_v18 = vpop.eup %2965 }
 0x66b   : > { %2644 = vst [vmem:[%s215_s25 + $0x8] sm:$0xff] %v2966_v18 }
 0x66c   : > { %3054 = shalt.err (!%p3051_p6)
}
 0x66d   : > { %s3055_s4 = scalar_lea.hbm %s4817_s8, 256  ;;  %s3059_s26 = scalar_lea.hbm %s4864_s3, 512 }
 0x66e   : > { %p3056_p13 = scmp.ne.s32.totalorder %s4817_s8, %s3055_s4  ;;  %p3060_p11 = scmp.lt.u32.totalorder %s4817_s8, %s4864_s3 }
 0x66f   : > { %p3061_p8 = scmp.lt.u32.totalorder %s3059_s26, %s3055_s4  ;;  %p3063_p12 = scmp.lt.u32.totalorder %s3055_s4, %s4817_s8 }
 0x670   : > { %p3057_p4 = pnand %p3056_p13, %p4983_p0 }
 0x671   : > { %p3062_p7 = por %p3061_p8, %p3060_p11 }
 0x672   : > { %p3058_p2 = pneg %p3057_p4 }
 0x673   : > { %p3064_p9 = por %p3063_p12, %p3062_p7 }
 0x675   : > { %p3065_p3 = pnand %p3064_p9, %p3058_p2 }
 0x677   : > { %3068 = shalt.err (!%p3065_p3)
}
 0x678   : > { %2881 = dma.vmem_to_hbm [thread:$0]  (%p4983_p0), %s4819_s30, 256, %s4817_s8, %s2646_s24  }
 0x679 PF: > { %s2672_s23 = sand.u32 1, %s3103_s12   ;;  %p4984_p5 = scmp.ne.s32.totalorder %s4901_s19, 0 }
 0x67a   : > { %p4985_p10 = scmp.ge.s32.totalorder %s3115_s15, 2  ;;  %s2673_s5 = scalar_lea.sflag [#allocation6], %s2672_s23 }
 0x67c   : > { %p2895_p1 = pnand %p4985_p10, %p4984_p5 }
 0x67e   : > { %3098 = dma.done.wait (!%p2895_p1), %s2673_s5, 256  }
 0x67f   : > { %3100 = vsyncadd (!%p2895_p1), %s2673_s5, 4294967040  ;;  %p18_p6 = scmp.ge.s32.totalorder %s3253_s21, 4   ;;  %s4986_s12 = smov %s3107_s13 }
 0x680   : > { %s4987_s13 = smov %s3111_s14  ;;  %s4988_s14 = smov %s3269_s28 }
 0x681   : > { %s4989_s15 = smov %s3253_s21  ;;  %20 = sbr.rel (!%p18_p6) target bundleno = 7 (0x7), region = 101 }
 0x688   :  { %2678 = vsyncpa [#allocation5], 1 }
 0x689   :  { %2680 = vsyncpa [#allocation5 + $0x1], 1 }
 0x68a   :  { %2681 = vsyncpa [#allocation10], 1 }
 0x68b   :  { %2682 = vsyncpa [#allocation6], 1 }
 0x68c   :  { %2684 = vsyncpa [#allocation6 + $0x1], 1 }
 0x68d   :  { %2685 = vsyncpa [#allocation7], 1 }
 0x68e   :  { %2687 = vsyncpa [#allocation7 + $0x1], 1 }

</bundles_post_ra>
